<compile_context>
chip_gen: v5e
topology: v5e:2x2
jax: 0.10.0
libtpu: 0.0.40
codegen_flags: <defaults>
</compile_context>

<pallas_src>
import math
import jax
import jax.numpy as jnp
from jax.experimental import pallas as pl
from jax.experimental.pallas import tpu as pltpu

# ----------------------------- configs --------------------------------------
BATCH = 2          # configs.batch_size (== transformer sequence length)
SEQ_LEN = 6        # configs.seq_len
ENC_IN = 5         # configs.enc_in
KERNEL_SIZE = 2    # configs.kernel_size (module's own size math requires 2)
NUM_FILTERS = 2    # configs.num_kernels
LABEL_LEN = 4      # configs.label_len
NHEAD = 3
DIM_FF = 512
NUM_LAYERS = 4

L = SEQ_LEN * ENC_IN                                   # 30
H_PROJ = (ENC_IN * SEQ_LEN) // 2                       # 15 (h-encoder d_model)
V_IN = int((L * 3 - 1 - 2 - 3) * NUM_FILTERS / 2)      # 84
V_OUT = V_IN // 5 + 2                                  # 18 (v-encoder d_model)
D_MODEL = H_PROJ + V_OUT                               # 33 (merged encoder width)
N_HEADS = 2 * NHEAD                                    # 6  (3 h-heads + 3 v-heads)
DFF2 = 2 * DIM_FF                                      # 1024 (block-diag FF width)
OUT_PAD = 128                                          # lane-dense output slab
S = BATCH                                              # sequence length

_VMEM = pl.BlockSpec(memory_space=pltpu.MemorySpace.VMEM)


# ----------------------------- fused forward kernel --------------------------
def fused_forward_kernel(x_ref, front_ref, wqkv_ref, bqkv_ref, wo_ref,
                         w1_ref, b1_ref, w2_ref, vec_ref, misc_ref,
                         segsc_ref, outw_ref, o_ref, qk_scr, wt_scr):
    # small precomputed constants (one (11, 33) slab)
    misc = misc_ref[...]
    seg_expand = misc[0:N_HEADS]                 # (6, 33) 0/1 head membership
    mask_h = misc[N_HEADS:N_HEADS + 1]           # 1 on h columns (0:15)
    mask_v = misc[N_HEADS + 1:N_HEADS + 2]       # 1 on v columns (15:33)
    mh_inv = misc[N_HEADS + 2:N_HEADS + 3]       # mask_h / 15
    mv_inv = misc[N_HEADS + 3:N_HEADS + 4]       # mask_v / 18
    b_front = misc[N_HEADS + 4:N_HEADS + 5]
    seg_scale = segsc_ref[...]                   # (33, 6) (scale folded into Wq)

    def seg_layer_norm(y, g, b):
        # exact per-segment LayerNorm statistics (h over 15 cols, v over 18 cols)
        mu = (jnp.sum(y * mh_inv, axis=-1, keepdims=True) * mask_h
              + jnp.sum(y * mv_inv, axis=-1, keepdims=True) * mask_v)
        d = y - mu
        var = (jnp.sum(d * d * mh_inv, axis=-1, keepdims=True) * mask_h
               + jnp.sum(d * d * mv_inv, axis=-1, keepdims=True) * mask_v)
        return d * jax.lax.rsqrt(var + 1e-5) * g + b

    # -------- folded h_sampling / v_sampling / both projections: ONE matmul --
    x = x_ref[...]                               # (S, L) flattened series
    y = jnp.maximum(
        jnp.dot(x, front_ref[...], preferred_element_type=jnp.float32) + b_front,
        0.0)                                     # (S, 33): cols 0:15 = h, 15:33 = v

    # -------- merged (block-diagonal) 4-layer transformer encoder -----------
    # Python unroll over 4 layers: per-layer live data is a handful of vregs,
    # no spills observed; fall back to lax.fori_loop over the stacked leading
    # axis if a bundle dump ever shows scratch vst/vld.
    for l in range(NUM_LAYERS):
        vec = vec_ref[l]                         # (6, 33): bo, g1, be1, b2, g2, be2
        b_o, g1, be1 = vec[0:1], vec[1:2], vec[2:3]
        b_2, g2, be2 = vec[3:4], vec[4:5], vec[5:6]

        # fused QKV: single (S,33) x (33,99) matmul (1/sqrt(dh) folded into Wq/bq)
        qkv = (jnp.dot(y, wqkv_ref[l], preferred_element_type=jnp.float32)
               + bqkv_ref[l])                    # (S, 99)
        q = qkv[:, 0:D_MODEL]
        k = qkv[:, D_MODEL:2 * D_MODEL]
        v = qkv[:, 2 * D_MODEL:3 * D_MODEL]

        # all (query, key) pairs batched: ONE score matmul + ONE expand matmul
        for j in range(S):
            qk_scr[j * S:(j + 1) * S, :] = q * k[j:j + 1, :]
        sc = jnp.dot(qk_scr[...], seg_scale,
                     preferred_element_type=jnp.float32)          # (S*S, 6)
        sc_j = [sc[j * S:(j + 1) * S] for j in range(S)]
        m = sc_j[0]
        for sj in sc_j[1:]:
            m = jnp.maximum(m, sj)
        e_j = [jnp.exp(sj - m) for sj in sc_j]
        den = e_j[0]
        for ej in e_j[1:]:
            den = den + ej
        inv = 1.0 / den                          # exact softmax (review note)
        for j in range(S):
            wt_scr[j * S:(j + 1) * S, :] = e_j[j] * inv
        wexp = jnp.dot(wt_scr[...], seg_expand,
                       preferred_element_type=jnp.float32)        # (S*S, 33)
        ctx = wexp[0:S, :] * v[0:1, :]
        for j in range(1, S):
            ctx = ctx + wexp[j * S:(j + 1) * S, :] * v[j:j + 1, :]
        attn = jnp.dot(ctx, wo_ref[l], preferred_element_type=jnp.float32) + b_o

        y1 = seg_layer_norm(y + attn, g1, be1)
        mid = jnp.maximum(
            jnp.dot(y1, w1_ref[l], preferred_element_type=jnp.float32)
            + b1_ref[l], 0.0)                    # (S, 1024)
        # W2 stored (1024, 33): plain dot, no in-kernel transpose
        ff = jnp.dot(mid, w2_ref[l], preferred_element_type=jnp.float32) + b_2
        y = seg_layer_norm(y1 + ff, g2, be2)

    # -------- output layer: [h|v] concat is already the column layout of y ---
    o_ref[...] = (jnp.dot(y, outw_ref[0:D_MODEL, :],
                          preferred_element_type=jnp.float32)
                  + outw_ref[D_MODEL:D_MODEL + 1, :])


_fused_call = pl.pallas_call(
    fused_forward_kernel,
    out_shape=jax.ShapeDtypeStruct((BATCH, OUT_PAD), jnp.float32),
    in_specs=[_VMEM] * 12,
    out_specs=_VMEM,
    scratch_shapes=[pltpu.VMEM((S * S, D_MODEL), jnp.float32),
                    pltpu.VMEM((S * S, N_HEADS), jnp.float32)],
)


@jax.jit
def model_forward(params, inputs):
    b, t, e = inputs.shape
    x_flat = inputs.reshape(b, t * e)
    out_pad = _fused_call(
        x_flat, params['front'], params['wqkv'], params['bqkv'], params['wo'],
        params['w1'], params['b1'], params['w2'], params['vecs'],
        params['misc'], params['seg_scale'], params['outw'])
    return out_pad[:, :LABEL_LEN].reshape(b, 1, LABEL_LEN)


# ------------------------------ raw parameters --------------------------------
def init_raw_params(key):
    """Parameters with the same structure as the PyTorch module (eval mode)."""
    keys = iter(jax.random.split(key, 256))

    def nrm(shape, s=0.1):
        return s * jax.random.normal(next(keys), shape, dtype=jnp.float32)

    raw = {
        'w_hp': nrm((ENC_IN,)), 'b_hp': nrm(()),          # horizental_projection
        'w3d': nrm((2,)), 'b3d': nrm(()),                 # Conv3d(1,1,(2,1,1))
        'hp2_w': nrm((L, H_PROJ)), 'hp2_b': nrm((1, H_PROJ)),
        'vp_w': nrm((V_IN, V_OUT)), 'vp_b': nrm((1, V_OUT)),
        'out_w': nrm((H_PROJ + V_OUT, LABEL_LEN)), 'out_b': nrm((1, LABEL_LEN)),
    }
    for d in (1, 2, 3):
        raw[f'conv{d}_w'] = nrm((NUM_FILTERS, KERNEL_SIZE))
        raw[f'conv{d}_b'] = nrm((NUM_FILTERS,))
        raw[f'conv{d}1_w'] = nrm((KERNEL_SIZE,))
        raw[f'conv{d}1_b'] = nrm(())

    def layer(d):
        return {'wq': nrm((d, d)), 'wk': nrm((d, d)), 'wv': nrm((d, d)),
                'bq': nrm((d,)), 'bk': nrm((d,)), 'bv': nrm((d,)),
                'wo': nrm((d, d)), 'bo': nrm((d,)),
                'w1': nrm((d, DIM_FF), 0.05), 'b1': nrm((DIM_FF,)),
                'w2': nrm((DIM_FF, d), 0.05), 'b2': nrm((d,)),
                'g1': jnp.ones((d,), jnp.float32), 'be1': jnp.zeros((d,), jnp.float32),
                'g2': jnp.ones((d,), jnp.float32), 'be2': jnp.zeros((d,), jnp.float32)}

    raw['h_layers'] = [layer(H_PROJ) for _ in range(NUM_LAYERS)]
    raw['v_layers'] = [layer(V_OUT) for _ in range(NUM_LAYERS)]
    return raw


# ------------------------------ parameter folding / packing -------------------
def pack_params(raw):
    p = {}
    E, T, F = ENC_IN, SEQ_LEN, NUM_FILTERS

    # ---- fold h_sampling + Conv3d + horizental_projection_2 into one matmul
    w_rep = jnp.tile(raw['w_hp'].reshape(1, E), (T, 1)).reshape(L)
    tid = jnp.arange(L) // E
    P = (tid[:, None] == tid[None, :]).astype(jnp.float32)        # same-timestep blocks
    I = jnp.eye(L, dtype=jnp.float32)
    M = raw['w3d'][0] * I + raw['w3d'][1] * (w_rep[:, None] * (P - I))
    W_h = M @ raw['hp2_w']                                        # (L, 15)
    b_h = ((raw['w3d'][1] * raw['b_hp'] + raw['b3d'])
           * jnp.sum(raw['hp2_w'], axis=0, keepdims=True) + raw['hp2_b'])

    # ---- fold the 3 dilated-conv branches + vertical_projection into one matmul
    W_v = jnp.zeros((L, V_OUT), jnp.float32)
    b_v = raw['vp_b']
    off = 0
    for d in (1, 2, 3):
        n = L - d
        vp_d = raw['vp_w'][off:off + n]; off += n                 # (n, 18)
        w21, b21 = raw[f'conv{d}1_w'], raw[f'conv{d}1_b']
        cw, cb = raw[f'conv{d}_w'], raw[f'conv{d}_b']
        m_idx = jnp.arange(n)
        for c in range(F):
            q_idx = c * n + jnp.arange(n)                         # channel-major flatten
            D_c = (w21[0] * (q_idx[:, None] == 2 * m_idx[None, :])
                   + w21[1] * (q_idx[:, None] == 2 * m_idx[None, :] + 1)
                   ).astype(jnp.float32)                          # stride-2 deinterleave
            E_c = D_c @ vp_d                                      # (n, 18)
            W_v = W_v.at[0:n].add(cw[c, 0] * E_c)
            W_v = W_v.at[d:d + n].add(cw[c, 1] * E_c)
            b_v = b_v + cb[c] * jnp.sum(E_c, axis=0, keepdims=True)
        b_v = b_v + b21 * jnp.sum(vp_d, axis=0, keepdims=True)

    p['front'] = jnp.concatenate([W_h, W_v], axis=1)              # (30, 33)
    b_front = jnp.concatenate([b_h, b_v], axis=1)                 # (1, 33)

    # ---- merged (block-diagonal) encoder: h stack in cols 0:15, v in 15:33
    def bd(a, b):
        return jnp.block([[a, jnp.zeros((a.shape[0], b.shape[1]), jnp.float32)],
                          [jnp.zeros((b.shape[0], a.shape[1]), jnp.float32), b]])

    sh = 1.0 / math.sqrt(H_PROJ // NHEAD)
    sv = 1.0 / math.sqrt(V_OUT // NHEAD)
    wqkv, bqkv, wo, w1, b1, w2, vecs = [], [], [], [], [], [], []
    for hL, vL in zip(raw['h_layers'], raw['v_layers']):
        wqkv.append(jnp.concatenate(
            [bd(hL['wq'] * sh, vL['wq'] * sv), bd(hL['wk'], vL['wk']),
             bd(hL['wv'], vL['wv'])], axis=1))                    # (33, 99)
        bqkv.append(jnp.concatenate(
            [hL['bq'] * sh, vL['bq'] * sv, hL['bk'], vL['bk'],
             hL['bv'], vL['bv']]).reshape(1, 3 * D_MODEL))
        wo.append(bd(hL['wo'], vL['wo']))                         # (33, 33)
        w1.append(bd(hL['w1'], vL['w1']))                         # (33, 1024)
        b1.append(jnp.concatenate([hL['b1'], vL['b1']]).reshape(1, DFF2))
        w2.append(bd(hL['w2'], vL['w2']))                         # (1024, 33)
        cat = lambda a, b: jnp.concatenate([a, b]).reshape(1, D_MODEL)
        vecs.append(jnp.concatenate(
            [cat(hL['bo'], vL['bo']),
             cat(hL['g1'], vL['g1']), cat(hL['be1'], vL['be1']),
             cat(hL['b2'], vL['b2']),
             cat(hL['g2'], vL['g2']), cat(hL['be2'], vL['be2'])], axis=0))
    p['wqkv'] = jnp.stack(wqkv); p['bqkv'] = jnp.stack(bqkv)
    p['wo'] = jnp.stack(wo); p['w1'] = jnp.stack(w1); p['b1'] = jnp.stack(b1)
    p['w2'] = jnp.stack(w2); p['vecs'] = jnp.stack(vecs)

    # ---- attention head-membership + LN masks + b_front packed into one slab
    head_id = jnp.concatenate([
        jnp.repeat(jnp.arange(NHEAD), H_PROJ // NHEAD),
        NHEAD + jnp.repeat(jnp.arange(NHEAD), V_OUT // NHEAD)])   # (33,)
    seg = (head_id[:, None] == jnp.arange(N_HEADS)[None, :]).astype(jnp.float32)
    p['seg_scale'] = seg                                          # (33, 6)
    mask_h = (jnp.arange(D_MODEL) < H_PROJ).astype(jnp.float32).reshape(1, D_MODEL)
    mask_v = 1.0 - mask_h
    p['misc'] = jnp.concatenate(
        [seg.T, mask_h, mask_v, mask_h / H_PROJ, mask_v / V_OUT, b_front],
        axis=0)                                                   # (11, 33)

    # ---- output layer, lane-padded to 128 columns (cropped host-side)
    wout = jnp.pad(raw['out_w'], ((0, 0), (0, OUT_PAD - LABEL_LEN)))
    bout = jnp.pad(raw['out_b'], ((0, 0), (0, OUT_PAD - LABEL_LEN)))
    p['outw'] = jnp.concatenate([wout, bout], axis=0)             # (34, 128)
    return p


# ------------------------------ pure-JAX reference ----------------------------
def reference_forward(raw, inputs):
    """Direct jnp mirror of the PyTorch Model.forward (eval mode)."""
    B, T, E = inputs.shape
    x = inputs.reshape(B, T * E)

    # h_sampling
    xt = inputs.reshape(B * T, E)
    full = jnp.sum(xt * raw['w_hp'][None, :], axis=-1, keepdims=True)
    proj = full - xt * raw['w_hp'][None, :] + raw['b_hp']
    h = (raw['w3d'][0] * xt + raw['w3d'][1] * proj + raw['b3d']).reshape(B, T * E)
    h = jax.nn.relu(h @ raw['hp2_w'] + raw['hp2_b'])

    # v_sampling
    zs = []
    for d in (1, 2, 3):
        n = T * E - d
        cw, cb = raw[f'conv{d}_w'], raw[f'conv{d}_b']
        y = jnp.stack([cw[c, 0] * x[:, 0:n] + cw[c, 1] * x[:, d:d + n] + cb[c]
                       for c in range(NUM_FILTERS)], axis=1)      # (B, F, n)
        flat = y.reshape(B, NUM_FILTERS * n)
        w21, b21 = raw[f'conv{d}1_w'], raw[f'conv{d}1_b']
        zs.append(w21[0] * flat[:, 0::2] + w21[1] * flat[:, 1::2] + b21)
    v = jax.nn.relu(jnp.concatenate(zs, axis=1) @ raw['vp_w'] + raw['vp_b'])

    def encoder(xx, layers, d):
        dh = d // NHEAD
        for lay in layers:
            q = (xx @ lay['wq'] + lay['bq']) * (1.0 / math.sqrt(dh))
            k = xx @ lay['wk'] + lay['bk']
            vv = xx @ lay['wv'] + lay['bv']
            s_len = xx.shape[0]
            qh = q.reshape(s_len, NHEAD, dh)
            kh = k.reshape(s_len, NHEAD, dh)
            vh = vv.reshape(s_len, NHEAD, dh)
            sc = jnp.einsum('ihd,jhd->hij', qh, kh)
            w = jax.nn.softmax(sc, axis=-1)
            ctx = jnp.einsum('hij,jhd->ihd', w, vh).reshape(s_len, d)
            attn = ctx @ lay['wo'] + lay['bo']

            def ln(yy, g, b):
                mu = jnp.mean(yy, axis=-1, keepdims=True)
                var = jnp.mean((yy - mu) ** 2, axis=-1, keepdims=True)
                return (yy - mu) * jax.lax.rsqrt(var + 1e-5) * g + b

            x1 = ln(xx + attn, lay['g1'], lay['be1'])
            mid = jax.nn.relu(x1 @ lay['w1'] + lay['b1'])
            ff = mid @ lay['w2'] + lay['b2']
            xx = ln(x1 + ff, lay['g2'], lay['be2'])
        return xx

    h = encoder(h, raw['h_layers'], H_PROJ)
    v = encoder(v, raw['v_layers'], V_OUT)
    out = jnp.concatenate([h, v], axis=1) @ raw['out_w'] + raw['out_b']
    return out.reshape(B, 1, LABEL_LEN)


# ------------------------------ main ------------------------------------------
if __name__ == "__main__":
    key = jax.random.PRNGKey(0)
    k_in, k_par = jax.random.split(key)
    raw = init_raw_params(k_par)
    params = pack_params(raw)
    inputs = jax.random.normal(k_in, (BATCH, SEQ_LEN, ENC_IN), dtype=jnp.float32)

    out = jax.block_until_ready(model_forward(params, inputs))
    assert out.shape == (BATCH, 1, LABEL_LEN), out.shape
    assert bool(jnp.all(jnp.isfinite(out)))

    # correctness gate against a pure-JAX mirror of the PyTorch module
    with jax.default_matmul_precision("float32"):
        ref = jax.block_until_ready(jax.jit(reference_forward)(raw, inputs))
    max_err = float(jnp.max(jnp.abs(out - ref)))
    assert bool(jnp.allclose(out, ref, rtol=2e-2, atol=2e-3)), max_err

    print("KERNEL_OK")
</pallas_src>

<mosaic_0001>
module attributes {stable_mosaic.version = 11 : i64} {
  func.func @fused_forward_kernel(%arg0: memref<2x30xf32, #tpu.memory_space<vmem>>, %arg1: memref<30x33xf32, #tpu.memory_space<vmem>>, %arg2: memref<4x33x99xf32, #tpu.memory_space<vmem>>, %arg3: memref<4x1x99xf32, #tpu.memory_space<vmem>>, %arg4: memref<4x33x33xf32, #tpu.memory_space<vmem>>, %arg5: memref<4x33x1024xf32, #tpu.memory_space<vmem>>, %arg6: memref<4x1x1024xf32, #tpu.memory_space<vmem>>, %arg7: memref<4x1024x33xf32, #tpu.memory_space<vmem>>, %arg8: memref<4x6x33xf32, #tpu.memory_space<vmem>>, %arg9: memref<11x33xf32, #tpu.memory_space<vmem>>, %arg10: memref<33x6xf32, #tpu.memory_space<vmem>>, %arg11: memref<34x128xf32, #tpu.memory_space<vmem>>, %arg12: memref<2x128xf32, #tpu.memory_space<vmem>>, %arg13: memref<4x33xf32, #tpu.memory_space<vmem>>, %arg14: memref<4x6xf32, #tpu.memory_space<vmem>>) attributes {dimension_semantics = [], scalar_prefetch = 0 : i64, scratch_operands = 2 : i64, tpu.core_type = #tpu.core_type<tc>} {
    %c0 = arith.constant 0 : index
    %c0_0 = arith.constant 0 : index
    %0 = vector.load %arg9[%c0, %c0_0] : memref<11x33xf32, #tpu.memory_space<vmem>>, vector<11x33xf32>
    %1 = vector.extract_strided_slice %0 {offsets = [0, 0], sizes = [6, 33], strides = [1, 1]} : vector<11x33xf32> to vector<6x33xf32>
    %2 = vector.extract_strided_slice %0 {offsets = [6, 0], sizes = [1, 33], strides = [1, 1]} : vector<11x33xf32> to vector<1x33xf32>
    %3 = vector.extract_strided_slice %0 {offsets = [7, 0], sizes = [1, 33], strides = [1, 1]} : vector<11x33xf32> to vector<1x33xf32>
    %4 = vector.extract_strided_slice %0 {offsets = [8, 0], sizes = [1, 33], strides = [1, 1]} : vector<11x33xf32> to vector<1x33xf32>
    %5 = vector.extract_strided_slice %0 {offsets = [9, 0], sizes = [1, 33], strides = [1, 1]} : vector<11x33xf32> to vector<1x33xf32>
    %6 = vector.extract_strided_slice %0 {offsets = [10, 0], sizes = [1, 33], strides = [1, 1]} : vector<11x33xf32> to vector<1x33xf32>
    %c0_1 = arith.constant 0 : index
    %c0_2 = arith.constant 0 : index
    %7 = vector.load %arg10[%c0_1, %c0_2] : memref<33x6xf32, #tpu.memory_space<vmem>>, vector<33x6xf32>
    %c0_3 = arith.constant 0 : index
    %c0_4 = arith.constant 0 : index
    %8 = vector.load %arg0[%c0_3, %c0_4] : memref<2x30xf32, #tpu.memory_space<vmem>>, vector<2x30xf32>
    %c0_5 = arith.constant 0 : index
    %c0_6 = arith.constant 0 : index
    %9 = vector.load %arg1[%c0_5, %c0_6] : memref<30x33xf32, #tpu.memory_space<vmem>>, vector<30x33xf32>
    %cst = arith.constant dense<0.000000e+00> : vector<2x33xf32>
    %10 = tpu.matmul %8, %9, %cst {dimension_numbers = #tpu.dot_dimension_numbers<[1], [0], [0], [1], [0, 0, 1, 1], [], []>} : vector<2x30xf32>, vector<30x33xf32>, vector<2x33xf32> -> vector<2x33xf32>
    %11 = vector.broadcast %6 : vector<1x33xf32> to vector<2x33xf32>
    %12 = arith.addf %10, %11 : vector<2x33xf32>
    %cst_7 = arith.constant 0.000000e+00 : f32
    %13 = vector.broadcast %cst_7 : f32 to vector<2x33xf32>
    %14 = arith.maximumf %12, %13 : vector<2x33xf32>
    %c0_8 = arith.constant 0 : index
    %c0_9 = arith.constant 0 : index
    %c0_10 = arith.constant 0 : index
    %15 = vector.load %arg8[%c0_8, %c0_9, %c0_10] : memref<4x6x33xf32, #tpu.memory_space<vmem>>, vector<1x6x33xf32>
    %16 = vector.shape_cast %15 : vector<1x6x33xf32> to vector<6x33xf32>
    %17 = vector.extract_strided_slice %16 {offsets = [0, 0], sizes = [1, 33], strides = [1, 1]} : vector<6x33xf32> to vector<1x33xf32>
    %18 = vector.extract_strided_slice %16 {offsets = [1, 0], sizes = [1, 33], strides = [1, 1]} : vector<6x33xf32> to vector<1x33xf32>
    %19 = vector.extract_strided_slice %16 {offsets = [2, 0], sizes = [1, 33], strides = [1, 1]} : vector<6x33xf32> to vector<1x33xf32>
    %20 = vector.extract_strided_slice %16 {offsets = [3, 0], sizes = [1, 33], strides = [1, 1]} : vector<6x33xf32> to vector<1x33xf32>
    %21 = vector.extract_strided_slice %16 {offsets = [4, 0], sizes = [1, 33], strides = [1, 1]} : vector<6x33xf32> to vector<1x33xf32>
    %22 = vector.extract_strided_slice %16 {offsets = [5, 0], sizes = [1, 33], strides = [1, 1]} : vector<6x33xf32> to vector<1x33xf32>
    %c0_11 = arith.constant 0 : index
    %c0_12 = arith.constant 0 : index
    %c0_13 = arith.constant 0 : index
    %23 = vector.load %arg2[%c0_11, %c0_12, %c0_13] : memref<4x33x99xf32, #tpu.memory_space<vmem>>, vector<1x33x99xf32>
    %24 = vector.shape_cast %23 : vector<1x33x99xf32> to vector<33x99xf32>
    %cst_14 = arith.constant dense<0.000000e+00> : vector<2x99xf32>
    %25 = tpu.matmul %14, %24, %cst_14 {dimension_numbers = #tpu.dot_dimension_numbers<[1], [0], [0], [1], [0, 0, 1, 1], [], []>} : vector<2x33xf32>, vector<33x99xf32>, vector<2x99xf32> -> vector<2x99xf32>
    %c0_15 = arith.constant 0 : index
    %c0_16 = arith.constant 0 : index
    %c0_17 = arith.constant 0 : index
    %26 = vector.load %arg3[%c0_15, %c0_16, %c0_17] : memref<4x1x99xf32, #tpu.memory_space<vmem>>, vector<1x1x99xf32>
    %27 = vector.shape_cast %26 : vector<1x1x99xf32> to vector<1x99xf32>
    %28 = vector.broadcast %27 : vector<1x99xf32> to vector<2x99xf32>
    %29 = arith.addf %25, %28 : vector<2x99xf32>
    %30 = vector.extract_strided_slice %29 {offsets = [0, 0], sizes = [2, 33], strides = [1, 1]} : vector<2x99xf32> to vector<2x33xf32>
    %31 = vector.extract_strided_slice %29 {offsets = [0, 33], sizes = [2, 33], strides = [1, 1]} : vector<2x99xf32> to vector<2x33xf32>
    %32 = vector.extract_strided_slice %29 {offsets = [0, 66], sizes = [2, 33], strides = [1, 1]} : vector<2x99xf32> to vector<2x33xf32>
    %33 = vector.extract_strided_slice %31 {offsets = [0, 0], sizes = [1, 33], strides = [1, 1]} : vector<2x33xf32> to vector<1x33xf32>
    %34 = vector.broadcast %33 : vector<1x33xf32> to vector<2x33xf32>
    %35 = arith.mulf %30, %34 : vector<2x33xf32>
    %c0_18 = arith.constant 0 : index
    %c0_19 = arith.constant 0 : index
    %36 = vector.load %arg13[%c0_18, %c0_19] : memref<4x33xf32, #tpu.memory_space<vmem>>, vector<2x33xf32>
    tpu.vector_store %arg13[%c0_18, %c0_19], %35 {strides = array<i32>} : memref<4x33xf32, #tpu.memory_space<vmem>>, vector<2x33xf32>,
    %37 = vector.extract_strided_slice %31 {offsets = [1, 0], sizes = [1, 33], strides = [1, 1]} : vector<2x33xf32> to vector<1x33xf32>
    %38 = vector.broadcast %37 : vector<1x33xf32> to vector<2x33xf32>
    %39 = arith.mulf %30, %38 : vector<2x33xf32>
    %c2 = arith.constant 2 : index
    %c0_20 = arith.constant 0 : index
    %40 = vector.load %arg13[%c2, %c0_20] : memref<4x33xf32, #tpu.memory_space<vmem>>, vector<2x33xf32>
    tpu.vector_store %arg13[%c2, %c0_20], %39 {strides = array<i32>} : memref<4x33xf32, #tpu.memory_space<vmem>>, vector<2x33xf32>,
    %c0_21 = arith.constant 0 : index
    %c0_22 = arith.constant 0 : index
    %41 = vector.load %arg13[%c0_21, %c0_22] : memref<4x33xf32, #tpu.memory_space<vmem>>, vector<4x33xf32>
    %cst_23 = arith.constant dense<0.000000e+00> : vector<4x6xf32>
    %42 = tpu.matmul %41, %7, %cst_23 {dimension_numbers = #tpu.dot_dimension_numbers<[1], [0], [0], [1], [0, 0, 1, 1], [], []>} : vector<4x33xf32>, vector<33x6xf32>, vector<4x6xf32> -> vector<4x6xf32>
    %43 = vector.extract_strided_slice %42 {offsets = [0, 0], sizes = [2, 6], strides = [1, 1]} : vector<4x6xf32> to vector<2x6xf32>
    %44 = vector.extract_strided_slice %42 {offsets = [2, 0], sizes = [2, 6], strides = [1, 1]} : vector<4x6xf32> to vector<2x6xf32>
    %45 = arith.maximumf %43, %44 : vector<2x6xf32>
    %46 = arith.subf %43, %45 : vector<2x6xf32>
    %47 = math.exp %46 : vector<2x6xf32>
    %48 = arith.subf %44, %45 : vector<2x6xf32>
    %49 = math.exp %48 : vector<2x6xf32>
    %50 = arith.addf %47, %49 : vector<2x6xf32>
    %cst_24 = arith.constant 1.000000e+00 : f32
    %51 = vector.broadcast %cst_24 : f32 to vector<2x6xf32>
    %52 = arith.divf %51, %50 : vector<2x6xf32>
    %53 = arith.mulf %47, %52 : vector<2x6xf32>
    %c0_25 = arith.constant 0 : index
    %c0_26 = arith.constant 0 : index
    %54 = vector.load %arg14[%c0_25, %c0_26] : memref<4x6xf32, #tpu.memory_space<vmem>>, vector<2x6xf32>
    tpu.vector_store %arg14[%c0_25, %c0_26], %53 {strides = array<i32>} : memref<4x6xf32, #tpu.memory_space<vmem>>, vector<2x6xf32>,
    %55 = arith.mulf %49, %52 : vector<2x6xf32>
    %c2_27 = arith.constant 2 : index
    %c0_28 = arith.constant 0 : index
    %56 = vector.load %arg14[%c2_27, %c0_28] : memref<4x6xf32, #tpu.memory_space<vmem>>, vector<2x6xf32>
    tpu.vector_store %arg14[%c2_27, %c0_28], %55 {strides = array<i32>} : memref<4x6xf32, #tpu.memory_space<vmem>>, vector<2x6xf32>,
    %c0_29 = arith.constant 0 : index
    %c0_30 = arith.constant 0 : index
    %57 = vector.load %arg14[%c0_29, %c0_30] : memref<4x6xf32, #tpu.memory_space<vmem>>, vector<4x6xf32>
    %cst_31 = arith.constant dense<0.000000e+00> : vector<4x33xf32>
    %58 = tpu.matmul %57, %1, %cst_31 {dimension_numbers = #tpu.dot_dimension_numbers<[1], [0], [0], [1], [0, 0, 1, 1], [], []>} : vector<4x6xf32>, vector<6x33xf32>, vector<4x33xf32> -> vector<4x33xf32>
    %59 = vector.extract_strided_slice %58 {offsets = [0, 0], sizes = [2, 33], strides = [1, 1]} : vector<4x33xf32> to vector<2x33xf32>
    %60 = vector.extract_strided_slice %32 {offsets = [0, 0], sizes = [1, 33], strides = [1, 1]} : vector<2x33xf32> to vector<1x33xf32>
    %61 = vector.broadcast %60 : vector<1x33xf32> to vector<2x33xf32>
    %62 = arith.mulf %59, %61 : vector<2x33xf32>
    %63 = vector.extract_strided_slice %58 {offsets = [2, 0], sizes = [2, 33], strides = [1, 1]} : vector<4x33xf32> to vector<2x33xf32>
    %64 = vector.extract_strided_slice %32 {offsets = [1, 0], sizes = [1, 33], strides = [1, 1]} : vector<2x33xf32> to vector<1x33xf32>
    %65 = vector.broadcast %64 : vector<1x33xf32> to vector<2x33xf32>
    %66 = arith.mulf %63, %65 : vector<2x33xf32>
    %67 = arith.addf %62, %66 : vector<2x33xf32>
    %c0_32 = arith.constant 0 : index
    %c0_33 = arith.constant 0 : index
    %c0_34 = arith.constant 0 : index
    %68 = vector.load %arg4[%c0_32, %c0_33, %c0_34] : memref<4x33x33xf32, #tpu.memory_space<vmem>>, vector<1x33x33xf32>
    %69 = vector.shape_cast %68 : vector<1x33x33xf32> to vector<33x33xf32>
    %cst_35 = arith.constant dense<0.000000e+00> : vector<2x33xf32>
    %70 = tpu.matmul %67, %69, %cst_35 {dimension_numbers = #tpu.dot_dimension_numbers<[1], [0], [0], [1], [0, 0, 1, 1], [], []>} : vector<2x33xf32>, vector<33x33xf32>, vector<2x33xf32> -> vector<2x33xf32>
    %71 = vector.broadcast %17 : vector<1x33xf32> to vector<2x33xf32>
    %72 = arith.addf %70, %71 : vector<2x33xf32>
    %73 = arith.addf %14, %72 : vector<2x33xf32>
    %74 = vector.broadcast %4 : vector<1x33xf32> to vector<2x33xf32>
    %75 = arith.mulf %73, %74 : vector<2x33xf32>
    %cst_36 = arith.constant dense<0.000000e+00> : vector<2xf32>
    %76 = vector.multi_reduction <add>, %75, %cst_36 [1] : vector<2x33xf32> to vector<2xf32>
    %77 = vector.shape_cast %76 : vector<2xf32> to vector<2x1xf32>
    %78 = vector.broadcast %77 : vector<2x1xf32> to vector<2x33xf32>
    %79 = vector.broadcast %2 : vector<1x33xf32> to vector<2x33xf32>
    %80 = arith.mulf %78, %79 : vector<2x33xf32>
    %81 = vector.broadcast %5 : vector<1x33xf32> to vector<2x33xf32>
    %82 = arith.mulf %73, %81 : vector<2x33xf32>
    %cst_37 = arith.constant dense<0.000000e+00> : vector<2xf32>
    %83 = vector.multi_reduction <add>, %82, %cst_37 [1] : vector<2x33xf32> to vector<2xf32>
    %84 = vector.shape_cast %83 : vector<2xf32> to vector<2x1xf32>
    %85 = vector.broadcast %84 : vector<2x1xf32> to vector<2x33xf32>
    %86 = vector.broadcast %3 : vector<1x33xf32> to vector<2x33xf32>
    %87 = arith.mulf %85, %86 : vector<2x33xf32>
    %88 = arith.addf %80, %87 : vector<2x33xf32>
    %89 = arith.subf %73, %88 : vector<2x33xf32>
    %90 = arith.mulf %89, %89 : vector<2x33xf32>
    %91 = vector.broadcast %4 : vector<1x33xf32> to vector<2x33xf32>
    %92 = arith.mulf %90, %91 : vector<2x33xf32>
    %cst_38 = arith.constant dense<0.000000e+00> : vector<2xf32>
    %93 = vector.multi_reduction <add>, %92, %cst_38 [1] : vector<2x33xf32> to vector<2xf32>
    %94 = vector.shape_cast %93 : vector<2xf32> to vector<2x1xf32>
    %95 = vector.broadcast %94 : vector<2x1xf32> to vector<2x33xf32>
    %96 = vector.broadcast %2 : vector<1x33xf32> to vector<2x33xf32>
    %97 = arith.mulf %95, %96 : vector<2x33xf32>
    %98 = arith.mulf %89, %89 : vector<2x33xf32>
    %99 = vector.broadcast %5 : vector<1x33xf32> to vector<2x33xf32>
    %100 = arith.mulf %98, %99 : vector<2x33xf32>
    %cst_39 = arith.constant dense<0.000000e+00> : vector<2xf32>
    %101 = vector.multi_reduction <add>, %100, %cst_39 [1] : vector<2x33xf32> to vector<2xf32>
    %102 = vector.shape_cast %101 : vector<2xf32> to vector<2x1xf32>
    %103 = vector.broadcast %102 : vector<2x1xf32> to vector<2x33xf32>
    %104 = vector.broadcast %3 : vector<1x33xf32> to vector<2x33xf32>
    %105 = arith.mulf %103, %104 : vector<2x33xf32>
    %106 = arith.addf %97, %105 : vector<2x33xf32>
    %cst_40 = arith.constant 9.99999974E-6 : f32
    %107 = vector.broadcast %cst_40 : f32 to vector<2x33xf32>
    %108 = arith.addf %106, %107 : vector<2x33xf32>
    %109 = math.rsqrt %108 : vector<2x33xf32>
    %110 = arith.mulf %89, %109 : vector<2x33xf32>
    %111 = vector.broadcast %18 : vector<1x33xf32> to vector<2x33xf32>
    %112 = arith.mulf %110, %111 : vector<2x33xf32>
    %113 = vector.broadcast %19 : vector<1x33xf32> to vector<2x33xf32>
    %114 = arith.addf %112, %113 : vector<2x33xf32>
    %c0_41 = arith.constant 0 : index
    %c0_42 = arith.constant 0 : index
    %c0_43 = arith.constant 0 : index
    %115 = vector.load %arg5[%c0_41, %c0_42, %c0_43] : memref<4x33x1024xf32, #tpu.memory_space<vmem>>, vector<1x33x1024xf32>
    %116 = vector.shape_cast %115 : vector<1x33x1024xf32> to vector<33x1024xf32>
    %cst_44 = arith.constant dense<0.000000e+00> : vector<2x1024xf32>
    %117 = tpu.matmul %114, %116, %cst_44 {dimension_numbers = #tpu.dot_dimension_numbers<[1], [0], [0], [1], [0, 0, 1, 1], [], []>} : vector<2x33xf32>, vector<33x1024xf32>, vector<2x1024xf32> -> vector<2x1024xf32>
    %c0_45 = arith.constant 0 : index
    %c0_46 = arith.constant 0 : index
    %c0_47 = arith.constant 0 : index
    %118 = vector.load %arg6[%c0_45, %c0_46, %c0_47] : memref<4x1x1024xf32, #tpu.memory_space<vmem>>, vector<1x1x1024xf32>
    %119 = vector.shape_cast %118 : vector<1x1x1024xf32> to vector<1x1024xf32>
    %120 = vector.broadcast %119 : vector<1x1024xf32> to vector<2x1024xf32>
    %121 = arith.addf %117, %120 : vector<2x1024xf32>
    %cst_48 = arith.constant 0.000000e+00 : f32
    %122 = vector.broadcast %cst_48 : f32 to vector<2x1024xf32>
    %123 = arith.maximumf %121, %122 : vector<2x1024xf32>
    %c0_49 = arith.constant 0 : index
    %c0_50 = arith.constant 0 : index
    %c0_51 = arith.constant 0 : index
    %124 = vector.load %arg7[%c0_49, %c0_50, %c0_51] : memref<4x1024x33xf32, #tpu.memory_space<vmem>>, vector<1x1024x33xf32>
    %125 = vector.shape_cast %124 : vector<1x1024x33xf32> to vector<1024x33xf32>
    %cst_52 = arith.constant dense<0.000000e+00> : vector<2x33xf32>
    %126 = tpu.matmul %123, %125, %cst_52 {dimension_numbers = #tpu.dot_dimension_numbers<[1], [0], [0], [1], [0, 0, 1, 1], [], []>} : vector<2x1024xf32>, vector<1024x33xf32>, vector<2x33xf32> -> vector<2x33xf32>
    %127 = vector.broadcast %20 : vector<1x33xf32> to vector<2x33xf32>
    %128 = arith.addf %126, %127 : vector<2x33xf32>
    %129 = arith.addf %114, %128 : vector<2x33xf32>
    %130 = vector.broadcast %4 : vector<1x33xf32> to vector<2x33xf32>
    %131 = arith.mulf %129, %130 : vector<2x33xf32>
    %cst_53 = arith.constant dense<0.000000e+00> : vector<2xf32>
    %132 = vector.multi_reduction <add>, %131, %cst_53 [1] : vector<2x33xf32> to vector<2xf32>
    %133 = vector.shape_cast %132 : vector<2xf32> to vector<2x1xf32>
    %134 = vector.broadcast %133 : vector<2x1xf32> to vector<2x33xf32>
    %135 = vector.broadcast %2 : vector<1x33xf32> to vector<2x33xf32>
    %136 = arith.mulf %134, %135 : vector<2x33xf32>
    %137 = vector.broadcast %5 : vector<1x33xf32> to vector<2x33xf32>
    %138 = arith.mulf %129, %137 : vector<2x33xf32>
    %cst_54 = arith.constant dense<0.000000e+00> : vector<2xf32>
    %139 = vector.multi_reduction <add>, %138, %cst_54 [1] : vector<2x33xf32> to vector<2xf32>
    %140 = vector.shape_cast %139 : vector<2xf32> to vector<2x1xf32>
    %141 = vector.broadcast %140 : vector<2x1xf32> to vector<2x33xf32>
    %142 = vector.broadcast %3 : vector<1x33xf32> to vector<2x33xf32>
    %143 = arith.mulf %141, %142 : vector<2x33xf32>
    %144 = arith.addf %136, %143 : vector<2x33xf32>
    %145 = arith.subf %129, %144 : vector<2x33xf32>
    %146 = arith.mulf %145, %145 : vector<2x33xf32>
    %147 = vector.broadcast %4 : vector<1x33xf32> to vector<2x33xf32>
    %148 = arith.mulf %146, %147 : vector<2x33xf32>
    %cst_55 = arith.constant dense<0.000000e+00> : vector<2xf32>
    %149 = vector.multi_reduction <add>, %148, %cst_55 [1] : vector<2x33xf32> to vector<2xf32>
    %150 = vector.shape_cast %149 : vector<2xf32> to vector<2x1xf32>
    %151 = vector.broadcast %150 : vector<2x1xf32> to vector<2x33xf32>
    %152 = vector.broadcast %2 : vector<1x33xf32> to vector<2x33xf32>
    %153 = arith.mulf %151, %152 : vector<2x33xf32>
    %154 = arith.mulf %145, %145 : vector<2x33xf32>
    %155 = vector.broadcast %5 : vector<1x33xf32> to vector<2x33xf32>
    %156 = arith.mulf %154, %155 : vector<2x33xf32>
    %cst_56 = arith.constant dense<0.000000e+00> : vector<2xf32>
    %157 = vector.multi_reduction <add>, %156, %cst_56 [1] : vector<2x33xf32> to vector<2xf32>
    %158 = vector.shape_cast %157 : vector<2xf32> to vector<2x1xf32>
    %159 = vector.broadcast %158 : vector<2x1xf32> to vector<2x33xf32>
    %160 = vector.broadcast %3 : vector<1x33xf32> to vector<2x33xf32>
    %161 = arith.mulf %159, %160 : vector<2x33xf32>
    %162 = arith.addf %153, %161 : vector<2x33xf32>
    %cst_57 = arith.constant 9.99999974E-6 : f32
    %163 = vector.broadcast %cst_57 : f32 to vector<2x33xf32>
    %164 = arith.addf %162, %163 : vector<2x33xf32>
    %165 = math.rsqrt %164 : vector<2x33xf32>
    %166 = arith.mulf %145, %165 : vector<2x33xf32>
    %167 = vector.broadcast %21 : vector<1x33xf32> to vector<2x33xf32>
    %168 = arith.mulf %166, %167 : vector<2x33xf32>
    %169 = vector.broadcast %22 : vector<1x33xf32> to vector<2x33xf32>
    %170 = arith.addf %168, %169 : vector<2x33xf32>
    %c1 = arith.constant 1 : index
    %c0_58 = arith.constant 0 : index
    %c0_59 = arith.constant 0 : index
    %171 = vector.load %arg8[%c1, %c0_58, %c0_59] : memref<4x6x33xf32, #tpu.memory_space<vmem>>, vector<1x6x33xf32>
    %172 = vector.shape_cast %171 : vector<1x6x33xf32> to vector<6x33xf32>
    %173 = vector.extract_strided_slice %172 {offsets = [0, 0], sizes = [1, 33], strides = [1, 1]} : vector<6x33xf32> to vector<1x33xf32>
    %174 = vector.extract_strided_slice %172 {offsets = [1, 0], sizes = [1, 33], strides = [1, 1]} : vector<6x33xf32> to vector<1x33xf32>
    %175 = vector.extract_strided_slice %172 {offsets = [2, 0], sizes = [1, 33], strides = [1, 1]} : vector<6x33xf32> to vector<1x33xf32>
    %176 = vector.extract_strided_slice %172 {offsets = [3, 0], sizes = [1, 33], strides = [1, 1]} : vector<6x33xf32> to vector<1x33xf32>
    %177 = vector.extract_strided_slice %172 {offsets = [4, 0], sizes = [1, 33], strides = [1, 1]} : vector<6x33xf32> to vector<1x33xf32>
    %178 = vector.extract_strided_slice %172 {offsets = [5, 0], sizes = [1, 33], strides = [1, 1]} : vector<6x33xf32> to vector<1x33xf32>
    %c1_60 = arith.constant 1 : index
    %c0_61 = arith.constant 0 : index
    %c0_62 = arith.constant 0 : index
    %179 = vector.load %arg2[%c1_60, %c0_61, %c0_62] : memref<4x33x99xf32, #tpu.memory_space<vmem>>, vector<1x33x99xf32>
    %180 = vector.shape_cast %179 : vector<1x33x99xf32> to vector<33x99xf32>
    %cst_63 = arith.constant dense<0.000000e+00> : vector<2x99xf32>
    %181 = tpu.matmul %170, %180, %cst_63 {dimension_numbers = #tpu.dot_dimension_numbers<[1], [0], [0], [1], [0, 0, 1, 1], [], []>} : vector<2x33xf32>, vector<33x99xf32>, vector<2x99xf32> -> vector<2x99xf32>
    %c1_64 = arith.constant 1 : index
    %c0_65 = arith.constant 0 : index
    %c0_66 = arith.constant 0 : index
    %182 = vector.load %arg3[%c1_64, %c0_65, %c0_66] : memref<4x1x99xf32, #tpu.memory_space<vmem>>, vector<1x1x99xf32>
    %183 = vector.shape_cast %182 : vector<1x1x99xf32> to vector<1x99xf32>
    %184 = vector.broadcast %183 : vector<1x99xf32> to vector<2x99xf32>
    %185 = arith.addf %181, %184 : vector<2x99xf32>
    %186 = vector.extract_strided_slice %185 {offsets = [0, 0], sizes = [2, 33], strides = [1, 1]} : vector<2x99xf32> to vector<2x33xf32>
    %187 = vector.extract_strided_slice %185 {offsets = [0, 33], sizes = [2, 33], strides = [1, 1]} : vector<2x99xf32> to vector<2x33xf32>
    %188 = vector.extract_strided_slice %185 {offsets = [0, 66], sizes = [2, 33], strides = [1, 1]} : vector<2x99xf32> to vector<2x33xf32>
    %189 = vector.extract_strided_slice %187 {offsets = [0, 0], sizes = [1, 33], strides = [1, 1]} : vector<2x33xf32> to vector<1x33xf32>
    %190 = vector.broadcast %189 : vector<1x33xf32> to vector<2x33xf32>
    %191 = arith.mulf %186, %190 : vector<2x33xf32>
    %c0_67 = arith.constant 0 : index
    %c0_68 = arith.constant 0 : index
    %192 = vector.load %arg13[%c0_67, %c0_68] : memref<4x33xf32, #tpu.memory_space<vmem>>, vector<2x33xf32>
    tpu.vector_store %arg13[%c0_67, %c0_68], %191 {strides = array<i32>} : memref<4x33xf32, #tpu.memory_space<vmem>>, vector<2x33xf32>,
    %193 = vector.extract_strided_slice %187 {offsets = [1, 0], sizes = [1, 33], strides = [1, 1]} : vector<2x33xf32> to vector<1x33xf32>
    %194 = vector.broadcast %193 : vector<1x33xf32> to vector<2x33xf32>
    %195 = arith.mulf %186, %194 : vector<2x33xf32>
    %c2_69 = arith.constant 2 : index
    %c0_70 = arith.constant 0 : index
    %196 = vector.load %arg13[%c2_69, %c0_70] : memref<4x33xf32, #tpu.memory_space<vmem>>, vector<2x33xf32>
    tpu.vector_store %arg13[%c2_69, %c0_70], %195 {strides = array<i32>} : memref<4x33xf32, #tpu.memory_space<vmem>>, vector<2x33xf32>,
    %c0_71 = arith.constant 0 : index
    %c0_72 = arith.constant 0 : index
    %197 = vector.load %arg13[%c0_71, %c0_72] : memref<4x33xf32, #tpu.memory_space<vmem>>, vector<4x33xf32>
    %cst_73 = arith.constant dense<0.000000e+00> : vector<4x6xf32>
    %198 = tpu.matmul %197, %7, %cst_73 {dimension_numbers = #tpu.dot_dimension_numbers<[1], [0], [0], [1], [0, 0, 1, 1], [], []>} : vector<4x33xf32>, vector<33x6xf32>, vector<4x6xf32> -> vector<4x6xf32>
    %199 = vector.extract_strided_slice %198 {offsets = [0, 0], sizes = [2, 6], strides = [1, 1]} : vector<4x6xf32> to vector<2x6xf32>
    %200 = vector.extract_strided_slice %198 {offsets = [2, 0], sizes = [2, 6], strides = [1, 1]} : vector<4x6xf32> to vector<2x6xf32>
    %201 = arith.maximumf %199, %200 : vector<2x6xf32>
    %202 = arith.subf %199, %201 : vector<2x6xf32>
    %203 = math.exp %202 : vector<2x6xf32>
    %204 = arith.subf %200, %201 : vector<2x6xf32>
    %205 = math.exp %204 : vector<2x6xf32>
    %206 = arith.addf %203, %205 : vector<2x6xf32>
    %cst_74 = arith.constant 1.000000e+00 : f32
    %207 = vector.broadcast %cst_74 : f32 to vector<2x6xf32>
    %208 = arith.divf %207, %206 : vector<2x6xf32>
    %209 = arith.mulf %203, %208 : vector<2x6xf32>
    %c0_75 = arith.constant 0 : index
    %c0_76 = arith.constant 0 : index
    %210 = vector.load %arg14[%c0_75, %c0_76] : memref<4x6xf32, #tpu.memory_space<vmem>>, vector<2x6xf32>
    tpu.vector_store %arg14[%c0_75, %c0_76], %209 {strides = array<i32>} : memref<4x6xf32, #tpu.memory_space<vmem>>, vector<2x6xf32>,
    %211 = arith.mulf %205, %208 : vector<2x6xf32>
    %c2_77 = arith.constant 2 : index
    %c0_78 = arith.constant 0 : index
    %212 = vector.load %arg14[%c2_77, %c0_78] : memref<4x6xf32, #tpu.memory_space<vmem>>, vector<2x6xf32>
    tpu.vector_store %arg14[%c2_77, %c0_78], %211 {strides = array<i32>} : memref<4x6xf32, #tpu.memory_space<vmem>>, vector<2x6xf32>,
    %c0_79 = arith.constant 0 : index
    %c0_80 = arith.constant 0 : index
    %213 = vector.load %arg14[%c0_79, %c0_80] : memref<4x6xf32, #tpu.memory_space<vmem>>, vector<4x6xf32>
    %cst_81 = arith.constant dense<0.000000e+00> : vector<4x33xf32>
    %214 = tpu.matmul %213, %1, %cst_81 {dimension_numbers = #tpu.dot_dimension_numbers<[1], [0], [0], [1], [0, 0, 1, 1], [], []>} : vector<4x6xf32>, vector<6x33xf32>, vector<4x33xf32> -> vector<4x33xf32>
    %215 = vector.extract_strided_slice %214 {offsets = [0, 0], sizes = [2, 33], strides = [1, 1]} : vector<4x33xf32> to vector<2x33xf32>
    %216 = vector.extract_strided_slice %188 {offsets = [0, 0], sizes = [1, 33], strides = [1, 1]} : vector<2x33xf32> to vector<1x33xf32>
    %217 = vector.broadcast %216 : vector<1x33xf32> to vector<2x33xf32>
    %218 = arith.mulf %215, %217 : vector<2x33xf32>
    %219 = vector.extract_strided_slice %214 {offsets = [2, 0], sizes = [2, 33], strides = [1, 1]} : vector<4x33xf32> to vector<2x33xf32>
    %220 = vector.extract_strided_slice %188 {offsets = [1, 0], sizes = [1, 33], strides = [1, 1]} : vector<2x33xf32> to vector<1x33xf32>
    %221 = vector.broadcast %220 : vector<1x33xf32> to vector<2x33xf32>
    %222 = arith.mulf %219, %221 : vector<2x33xf32>
    %223 = arith.addf %218, %222 : vector<2x33xf32>
    %c1_82 = arith.constant 1 : index
    %c0_83 = arith.constant 0 : index
    %c0_84 = arith.constant 0 : index
    %224 = vector.load %arg4[%c1_82, %c0_83, %c0_84] : memref<4x33x33xf32, #tpu.memory_space<vmem>>, vector<1x33x33xf32>
    %225 = vector.shape_cast %224 : vector<1x33x33xf32> to vector<33x33xf32>
    %cst_85 = arith.constant dense<0.000000e+00> : vector<2x33xf32>
    %226 = tpu.matmul %223, %225, %cst_85 {dimension_numbers = #tpu.dot_dimension_numbers<[1], [0], [0], [1], [0, 0, 1, 1], [], []>} : vector<2x33xf32>, vector<33x33xf32>, vector<2x33xf32> -> vector<2x33xf32>
    %227 = vector.broadcast %173 : vector<1x33xf32> to vector<2x33xf32>
    %228 = arith.addf %226, %227 : vector<2x33xf32>
    %229 = arith.addf %170, %228 : vector<2x33xf32>
    %230 = vector.broadcast %4 : vector<1x33xf32> to vector<2x33xf32>
    %231 = arith.mulf %229, %230 : vector<2x33xf32>
    %cst_86 = arith.constant dense<0.000000e+00> : vector<2xf32>
    %232 = vector.multi_reduction <add>, %231, %cst_86 [1] : vector<2x33xf32> to vector<2xf32>
    %233 = vector.shape_cast %232 : vector<2xf32> to vector<2x1xf32>
    %234 = vector.broadcast %233 : vector<2x1xf32> to vector<2x33xf32>
    %235 = vector.broadcast %2 : vector<1x33xf32> to vector<2x33xf32>
    %236 = arith.mulf %234, %235 : vector<2x33xf32>
    %237 = vector.broadcast %5 : vector<1x33xf32> to vector<2x33xf32>
    %238 = arith.mulf %229, %237 : vector<2x33xf32>
    %cst_87 = arith.constant dense<0.000000e+00> : vector<2xf32>
    %239 = vector.multi_reduction <add>, %238, %cst_87 [1] : vector<2x33xf32> to vector<2xf32>
    %240 = vector.shape_cast %239 : vector<2xf32> to vector<2x1xf32>
    %241 = vector.broadcast %240 : vector<2x1xf32> to vector<2x33xf32>
    %242 = vector.broadcast %3 : vector<1x33xf32> to vector<2x33xf32>
    %243 = arith.mulf %241, %242 : vector<2x33xf32>
    %244 = arith.addf %236, %243 : vector<2x33xf32>
    %245 = arith.subf %229, %244 : vector<2x33xf32>
    %246 = arith.mulf %245, %245 : vector<2x33xf32>
    %247 = vector.broadcast %4 : vector<1x33xf32> to vector<2x33xf32>
    %248 = arith.mulf %246, %247 : vector<2x33xf32>
    %cst_88 = arith.constant dense<0.000000e+00> : vector<2xf32>
    %249 = vector.multi_reduction <add>, %248, %cst_88 [1] : vector<2x33xf32> to vector<2xf32>
    %250 = vector.shape_cast %249 : vector<2xf32> to vector<2x1xf32>
    %251 = vector.broadcast %250 : vector<2x1xf32> to vector<2x33xf32>
    %252 = vector.broadcast %2 : vector<1x33xf32> to vector<2x33xf32>
    %253 = arith.mulf %251, %252 : vector<2x33xf32>
    %254 = arith.mulf %245, %245 : vector<2x33xf32>
    %255 = vector.broadcast %5 : vector<1x33xf32> to vector<2x33xf32>
    %256 = arith.mulf %254, %255 : vector<2x33xf32>
    %cst_89 = arith.constant dense<0.000000e+00> : vector<2xf32>
    %257 = vector.multi_reduction <add>, %256, %cst_89 [1] : vector<2x33xf32> to vector<2xf32>
    %258 = vector.shape_cast %257 : vector<2xf32> to vector<2x1xf32>
    %259 = vector.broadcast %258 : vector<2x1xf32> to vector<2x33xf32>
    %260 = vector.broadcast %3 : vector<1x33xf32> to vector<2x33xf32>
    %261 = arith.mulf %259, %260 : vector<2x33xf32>
    %262 = arith.addf %253, %261 : vector<2x33xf32>
    %cst_90 = arith.constant 9.99999974E-6 : f32
    %263 = vector.broadcast %cst_90 : f32 to vector<2x33xf32>
    %264 = arith.addf %262, %263 : vector<2x33xf32>
    %265 = math.rsqrt %264 : vector<2x33xf32>
    %266 = arith.mulf %245, %265 : vector<2x33xf32>
    %267 = vector.broadcast %174 : vector<1x33xf32> to vector<2x33xf32>
    %268 = arith.mulf %266, %267 : vector<2x33xf32>
    %269 = vector.broadcast %175 : vector<1x33xf32> to vector<2x33xf32>
    %270 = arith.addf %268, %269 : vector<2x33xf32>
    %c1_91 = arith.constant 1 : index
    %c0_92 = arith.constant 0 : index
    %c0_93 = arith.constant 0 : index
    %271 = vector.load %arg5[%c1_91, %c0_92, %c0_93] : memref<4x33x1024xf32, #tpu.memory_space<vmem>>, vector<1x33x1024xf32>
    %272 = vector.shape_cast %271 : vector<1x33x1024xf32> to vector<33x1024xf32>
    %cst_94 = arith.constant dense<0.000000e+00> : vector<2x1024xf32>
    %273 = tpu.matmul %270, %272, %cst_94 {dimension_numbers = #tpu.dot_dimension_numbers<[1], [0], [0], [1], [0, 0, 1, 1], [], []>} : vector<2x33xf32>, vector<33x1024xf32>, vector<2x1024xf32> -> vector<2x1024xf32>
    %c1_95 = arith.constant 1 : index
    %c0_96 = arith.constant 0 : index
    %c0_97 = arith.constant 0 : index
    %274 = vector.load %arg6[%c1_95, %c0_96, %c0_97] : memref<4x1x1024xf32, #tpu.memory_space<vmem>>, vector<1x1x1024xf32>
    %275 = vector.shape_cast %274 : vector<1x1x1024xf32> to vector<1x1024xf32>
    %276 = vector.broadcast %275 : vector<1x1024xf32> to vector<2x1024xf32>
    %277 = arith.addf %273, %276 : vector<2x1024xf32>
    %cst_98 = arith.constant 0.000000e+00 : f32
    %278 = vector.broadcast %cst_98 : f32 to vector<2x1024xf32>
    %279 = arith.maximumf %277, %278 : vector<2x1024xf32>
    %c1_99 = arith.constant 1 : index
    %c0_100 = arith.constant 0 : index
    %c0_101 = arith.constant 0 : index
    %280 = vector.load %arg7[%c1_99, %c0_100, %c0_101] : memref<4x1024x33xf32, #tpu.memory_space<vmem>>, vector<1x1024x33xf32>
    %281 = vector.shape_cast %280 : vector<1x1024x33xf32> to vector<1024x33xf32>
    %cst_102 = arith.constant dense<0.000000e+00> : vector<2x33xf32>
    %282 = tpu.matmul %279, %281, %cst_102 {dimension_numbers = #tpu.dot_dimension_numbers<[1], [0], [0], [1], [0, 0, 1, 1], [], []>} : vector<2x1024xf32>, vector<1024x33xf32>, vector<2x33xf32> -> vector<2x33xf32>
    %283 = vector.broadcast %176 : vector<1x33xf32> to vector<2x33xf32>
    %284 = arith.addf %282, %283 : vector<2x33xf32>
    %285 = arith.addf %270, %284 : vector<2x33xf32>
    %286 = vector.broadcast %4 : vector<1x33xf32> to vector<2x33xf32>
    %287 = arith.mulf %285, %286 : vector<2x33xf32>
    %cst_103 = arith.constant dense<0.000000e+00> : vector<2xf32>
    %288 = vector.multi_reduction <add>, %287, %cst_103 [1] : vector<2x33xf32> to vector<2xf32>
    %289 = vector.shape_cast %288 : vector<2xf32> to vector<2x1xf32>
    %290 = vector.broadcast %289 : vector<2x1xf32> to vector<2x33xf32>
    %291 = vector.broadcast %2 : vector<1x33xf32> to vector<2x33xf32>
    %292 = arith.mulf %290, %291 : vector<2x33xf32>
    %293 = vector.broadcast %5 : vector<1x33xf32> to vector<2x33xf32>
    %294 = arith.mulf %285, %293 : vector<2x33xf32>
    %cst_104 = arith.constant dense<0.000000e+00> : vector<2xf32>
    %295 = vector.multi_reduction <add>, %294, %cst_104 [1] : vector<2x33xf32> to vector<2xf32>
    %296 = vector.shape_cast %295 : vector<2xf32> to vector<2x1xf32>
    %297 = vector.broadcast %296 : vector<2x1xf32> to vector<2x33xf32>
    %298 = vector.broadcast %3 : vector<1x33xf32> to vector<2x33xf32>
    %299 = arith.mulf %297, %298 : vector<2x33xf32>
    %300 = arith.addf %292, %299 : vector<2x33xf32>
    %301 = arith.subf %285, %300 : vector<2x33xf32>
    %302 = arith.mulf %301, %301 : vector<2x33xf32>
    %303 = vector.broadcast %4 : vector<1x33xf32> to vector<2x33xf32>
    %304 = arith.mulf %302, %303 : vector<2x33xf32>
    %cst_105 = arith.constant dense<0.000000e+00> : vector<2xf32>
    %305 = vector.multi_reduction <add>, %304, %cst_105 [1] : vector<2x33xf32> to vector<2xf32>
    %306 = vector.shape_cast %305 : vector<2xf32> to vector<2x1xf32>
    %307 = vector.broadcast %306 : vector<2x1xf32> to vector<2x33xf32>
    %308 = vector.broadcast %2 : vector<1x33xf32> to vector<2x33xf32>
    %309 = arith.mulf %307, %308 : vector<2x33xf32>
    %310 = arith.mulf %301, %301 : vector<2x33xf32>
    %311 = vector.broadcast %5 : vector<1x33xf32> to vector<2x33xf32>
    %312 = arith.mulf %310, %311 : vector<2x33xf32>
    %cst_106 = arith.constant dense<0.000000e+00> : vector<2xf32>
    %313 = vector.multi_reduction <add>, %312, %cst_106 [1] : vector<2x33xf32> to vector<2xf32>
    %314 = vector.shape_cast %313 : vector<2xf32> to vector<2x1xf32>
    %315 = vector.broadcast %314 : vector<2x1xf32> to vector<2x33xf32>
    %316 = vector.broadcast %3 : vector<1x33xf32> to vector<2x33xf32>
    %317 = arith.mulf %315, %316 : vector<2x33xf32>
    %318 = arith.addf %309, %317 : vector<2x33xf32>
    %cst_107 = arith.constant 9.99999974E-6 : f32
    %319 = vector.broadcast %cst_107 : f32 to vector<2x33xf32>
    %320 = arith.addf %318, %319 : vector<2x33xf32>
    %321 = math.rsqrt %320 : vector<2x33xf32>
    %322 = arith.mulf %301, %321 : vector<2x33xf32>
    %323 = vector.broadcast %177 : vector<1x33xf32> to vector<2x33xf32>
    %324 = arith.mulf %322, %323 : vector<2x33xf32>
    %325 = vector.broadcast %178 : vector<1x33xf32> to vector<2x33xf32>
    %326 = arith.addf %324, %325 : vector<2x33xf32>
    %c2_108 = arith.constant 2 : index
    %c0_109 = arith.constant 0 : index
    %c0_110 = arith.constant 0 : index
    %327 = vector.load %arg8[%c2_108, %c0_109, %c0_110] : memref<4x6x33xf32, #tpu.memory_space<vmem>>, vector<1x6x33xf32>
    %328 = vector.shape_cast %327 : vector<1x6x33xf32> to vector<6x33xf32>
    %329 = vector.extract_strided_slice %328 {offsets = [0, 0], sizes = [1, 33], strides = [1, 1]} : vector<6x33xf32> to vector<1x33xf32>
    %330 = vector.extract_strided_slice %328 {offsets = [1, 0], sizes = [1, 33], strides = [1, 1]} : vector<6x33xf32> to vector<1x33xf32>
    %331 = vector.extract_strided_slice %328 {offsets = [2, 0], sizes = [1, 33], strides = [1, 1]} : vector<6x33xf32> to vector<1x33xf32>
    %332 = vector.extract_strided_slice %328 {offsets = [3, 0], sizes = [1, 33], strides = [1, 1]} : vector<6x33xf32> to vector<1x33xf32>
    %333 = vector.extract_strided_slice %328 {offsets = [4, 0], sizes = [1, 33], strides = [1, 1]} : vector<6x33xf32> to vector<1x33xf32>
    %334 = vector.extract_strided_slice %328 {offsets = [5, 0], sizes = [1, 33], strides = [1, 1]} : vector<6x33xf32> to vector<1x33xf32>
    %c2_111 = arith.constant 2 : index
    %c0_112 = arith.constant 0 : index
    %c0_113 = arith.constant 0 : index
    %335 = vector.load %arg2[%c2_111, %c0_112, %c0_113] : memref<4x33x99xf32, #tpu.memory_space<vmem>>, vector<1x33x99xf32>
    %336 = vector.shape_cast %335 : vector<1x33x99xf32> to vector<33x99xf32>
    %cst_114 = arith.constant dense<0.000000e+00> : vector<2x99xf32>
    %337 = tpu.matmul %326, %336, %cst_114 {dimension_numbers = #tpu.dot_dimension_numbers<[1], [0], [0], [1], [0, 0, 1, 1], [], []>} : vector<2x33xf32>, vector<33x99xf32>, vector<2x99xf32> -> vector<2x99xf32>
    %c2_115 = arith.constant 2 : index
    %c0_116 = arith.constant 0 : index
    %c0_117 = arith.constant 0 : index
    %338 = vector.load %arg3[%c2_115, %c0_116, %c0_117] : memref<4x1x99xf32, #tpu.memory_space<vmem>>, vector<1x1x99xf32>
    %339 = vector.shape_cast %338 : vector<1x1x99xf32> to vector<1x99xf32>
    %340 = vector.broadcast %339 : vector<1x99xf32> to vector<2x99xf32>
    %341 = arith.addf %337, %340 : vector<2x99xf32>
    %342 = vector.extract_strided_slice %341 {offsets = [0, 0], sizes = [2, 33], strides = [1, 1]} : vector<2x99xf32> to vector<2x33xf32>
    %343 = vector.extract_strided_slice %341 {offsets = [0, 33], sizes = [2, 33], strides = [1, 1]} : vector<2x99xf32> to vector<2x33xf32>
    %344 = vector.extract_strided_slice %341 {offsets = [0, 66], sizes = [2, 33], strides = [1, 1]} : vector<2x99xf32> to vector<2x33xf32>
    %345 = vector.extract_strided_slice %343 {offsets = [0, 0], sizes = [1, 33], strides = [1, 1]} : vector<2x33xf32> to vector<1x33xf32>
    %346 = vector.broadcast %345 : vector<1x33xf32> to vector<2x33xf32>
    %347 = arith.mulf %342, %346 : vector<2x33xf32>
    %c0_118 = arith.constant 0 : index
    %c0_119 = arith.constant 0 : index
    %348 = vector.load %arg13[%c0_118, %c0_119] : memref<4x33xf32, #tpu.memory_space<vmem>>, vector<2x33xf32>
    tpu.vector_store %arg13[%c0_118, %c0_119], %347 {strides = array<i32>} : memref<4x33xf32, #tpu.memory_space<vmem>>, vector<2x33xf32>,
    %349 = vector.extract_strided_slice %343 {offsets = [1, 0], sizes = [1, 33], strides = [1, 1]} : vector<2x33xf32> to vector<1x33xf32>
    %350 = vector.broadcast %349 : vector<1x33xf32> to vector<2x33xf32>
    %351 = arith.mulf %342, %350 : vector<2x33xf32>
    %c2_120 = arith.constant 2 : index
    %c0_121 = arith.constant 0 : index
    %352 = vector.load %arg13[%c2_120, %c0_121] : memref<4x33xf32, #tpu.memory_space<vmem>>, vector<2x33xf32>
    tpu.vector_store %arg13[%c2_120, %c0_121], %351 {strides = array<i32>} : memref<4x33xf32, #tpu.memory_space<vmem>>, vector<2x33xf32>,
    %c0_122 = arith.constant 0 : index
    %c0_123 = arith.constant 0 : index
    %353 = vector.load %arg13[%c0_122, %c0_123] : memref<4x33xf32, #tpu.memory_space<vmem>>, vector<4x33xf32>
    %cst_124 = arith.constant dense<0.000000e+00> : vector<4x6xf32>
    %354 = tpu.matmul %353, %7, %cst_124 {dimension_numbers = #tpu.dot_dimension_numbers<[1], [0], [0], [1], [0, 0, 1, 1], [], []>} : vector<4x33xf32>, vector<33x6xf32>, vector<4x6xf32> -> vector<4x6xf32>
    %355 = vector.extract_strided_slice %354 {offsets = [0, 0], sizes = [2, 6], strides = [1, 1]} : vector<4x6xf32> to vector<2x6xf32>
    %356 = vector.extract_strided_slice %354 {offsets = [2, 0], sizes = [2, 6], strides = [1, 1]} : vector<4x6xf32> to vector<2x6xf32>
    %357 = arith.maximumf %355, %356 : vector<2x6xf32>
    %358 = arith.subf %355, %357 : vector<2x6xf32>
    %359 = math.exp %358 : vector<2x6xf32>
    %360 = arith.subf %356, %357 : vector<2x6xf32>
    %361 = math.exp %360 : vector<2x6xf32>
    %362 = arith.addf %359, %361 : vector<2x6xf32>
    %cst_125 = arith.constant 1.000000e+00 : f32
    %363 = vector.broadcast %cst_125 : f32 to vector<2x6xf32>
    %364 = arith.divf %363, %362 : vector<2x6xf32>
    %365 = arith.mulf %359, %364 : vector<2x6xf32>
    %c0_126 = arith.constant 0 : index
    %c0_127 = arith.constant 0 : index
    %366 = vector.load %arg14[%c0_126, %c0_127] : memref<4x6xf32, #tpu.memory_space<vmem>>, vector<2x6xf32>
    tpu.vector_store %arg14[%c0_126, %c0_127], %365 {strides = array<i32>} : memref<4x6xf32, #tpu.memory_space<vmem>>, vector<2x6xf32>,
    %367 = arith.mulf %361, %364 : vector<2x6xf32>
    %c2_128 = arith.constant 2 : index
    %c0_129 = arith.constant 0 : index
    %368 = vector.load %arg14[%c2_128, %c0_129] : memref<4x6xf32, #tpu.memory_space<vmem>>, vector<2x6xf32>
    tpu.vector_store %arg14[%c2_128, %c0_129], %367 {strides = array<i32>} : memref<4x6xf32, #tpu.memory_space<vmem>>, vector<2x6xf32>,
    %c0_130 = arith.constant 0 : index
    %c0_131 = arith.constant 0 : index
    %369 = vector.load %arg14[%c0_130, %c0_131] : memref<4x6xf32, #tpu.memory_space<vmem>>, vector<4x6xf32>
    %cst_132 = arith.constant dense<0.000000e+00> : vector<4x33xf32>
    %370 = tpu.matmul %369, %1, %cst_132 {dimension_numbers = #tpu.dot_dimension_numbers<[1], [0], [0], [1], [0, 0, 1, 1], [], []>} : vector<4x6xf32>, vector<6x33xf32>, vector<4x33xf32> -> vector<4x33xf32>
    %371 = vector.extract_strided_slice %370 {offsets = [0, 0], sizes = [2, 33], strides = [1, 1]} : vector<4x33xf32> to vector<2x33xf32>
    %372 = vector.extract_strided_slice %344 {offsets = [0, 0], sizes = [1, 33], strides = [1, 1]} : vector<2x33xf32> to vector<1x33xf32>
    %373 = vector.broadcast %372 : vector<1x33xf32> to vector<2x33xf32>
    %374 = arith.mulf %371, %373 : vector<2x33xf32>
    %375 = vector.extract_strided_slice %370 {offsets = [2, 0], sizes = [2, 33], strides = [1, 1]} : vector<4x33xf32> to vector<2x33xf32>
    %376 = vector.extract_strided_slice %344 {offsets = [1, 0], sizes = [1, 33], strides = [1, 1]} : vector<2x33xf32> to vector<1x33xf32>
    %377 = vector.broadcast %376 : vector<1x33xf32> to vector<2x33xf32>
    %378 = arith.mulf %375, %377 : vector<2x33xf32>
    %379 = arith.addf %374, %378 : vector<2x33xf32>
    %c2_133 = arith.constant 2 : index
    %c0_134 = arith.constant 0 : index
    %c0_135 = arith.constant 0 : index
    %380 = vector.load %arg4[%c2_133, %c0_134, %c0_135] : memref<4x33x33xf32, #tpu.memory_space<vmem>>, vector<1x33x33xf32>
    %381 = vector.shape_cast %380 : vector<1x33x33xf32> to vector<33x33xf32>
    %cst_136 = arith.constant dense<0.000000e+00> : vector<2x33xf32>
    %382 = tpu.matmul %379, %381, %cst_136 {dimension_numbers = #tpu.dot_dimension_numbers<[1], [0], [0], [1], [0, 0, 1, 1], [], []>} : vector<2x33xf32>, vector<33x33xf32>, vector<2x33xf32> -> vector<2x33xf32>
    %383 = vector.broadcast %329 : vector<1x33xf32> to vector<2x33xf32>
    %384 = arith.addf %382, %383 : vector<2x33xf32>
    %385 = arith.addf %326, %384 : vector<2x33xf32>
    %386 = vector.broadcast %4 : vector<1x33xf32> to vector<2x33xf32>
    %387 = arith.mulf %385, %386 : vector<2x33xf32>
    %cst_137 = arith.constant dense<0.000000e+00> : vector<2xf32>
    %388 = vector.multi_reduction <add>, %387, %cst_137 [1] : vector<2x33xf32> to vector<2xf32>
    %389 = vector.shape_cast %388 : vector<2xf32> to vector<2x1xf32>
    %390 = vector.broadcast %389 : vector<2x1xf32> to vector<2x33xf32>
    %391 = vector.broadcast %2 : vector<1x33xf32> to vector<2x33xf32>
    %392 = arith.mulf %390, %391 : vector<2x33xf32>
    %393 = vector.broadcast %5 : vector<1x33xf32> to vector<2x33xf32>
    %394 = arith.mulf %385, %393 : vector<2x33xf32>
    %cst_138 = arith.constant dense<0.000000e+00> : vector<2xf32>
    %395 = vector.multi_reduction <add>, %394, %cst_138 [1] : vector<2x33xf32> to vector<2xf32>
    %396 = vector.shape_cast %395 : vector<2xf32> to vector<2x1xf32>
    %397 = vector.broadcast %396 : vector<2x1xf32> to vector<2x33xf32>
    %398 = vector.broadcast %3 : vector<1x33xf32> to vector<2x33xf32>
    %399 = arith.mulf %397, %398 : vector<2x33xf32>
    %400 = arith.addf %392, %399 : vector<2x33xf32>
    %401 = arith.subf %385, %400 : vector<2x33xf32>
    %402 = arith.mulf %401, %401 : vector<2x33xf32>
    %403 = vector.broadcast %4 : vector<1x33xf32> to vector<2x33xf32>
    %404 = arith.mulf %402, %403 : vector<2x33xf32>
    %cst_139 = arith.constant dense<0.000000e+00> : vector<2xf32>
    %405 = vector.multi_reduction <add>, %404, %cst_139 [1] : vector<2x33xf32> to vector<2xf32>
    %406 = vector.shape_cast %405 : vector<2xf32> to vector<2x1xf32>
    %407 = vector.broadcast %406 : vector<2x1xf32> to vector<2x33xf32>
    %408 = vector.broadcast %2 : vector<1x33xf32> to vector<2x33xf32>
    %409 = arith.mulf %407, %408 : vector<2x33xf32>
    %410 = arith.mulf %401, %401 : vector<2x33xf32>
    %411 = vector.broadcast %5 : vector<1x33xf32> to vector<2x33xf32>
    %412 = arith.mulf %410, %411 : vector<2x33xf32>
    %cst_140 = arith.constant dense<0.000000e+00> : vector<2xf32>
    %413 = vector.multi_reduction <add>, %412, %cst_140 [1] : vector<2x33xf32> to vector<2xf32>
    %414 = vector.shape_cast %413 : vector<2xf32> to vector<2x1xf32>
    %415 = vector.broadcast %414 : vector<2x1xf32> to vector<2x33xf32>
    %416 = vector.broadcast %3 : vector<1x33xf32> to vector<2x33xf32>
    %417 = arith.mulf %415, %416 : vector<2x33xf32>
    %418 = arith.addf %409, %417 : vector<2x33xf32>
    %cst_141 = arith.constant 9.99999974E-6 : f32
    %419 = vector.broadcast %cst_141 : f32 to vector<2x33xf32>
    %420 = arith.addf %418, %419 : vector<2x33xf32>
    %421 = math.rsqrt %420 : vector<2x33xf32>
    %422 = arith.mulf %401, %421 : vector<2x33xf32>
    %423 = vector.broadcast %330 : vector<1x33xf32> to vector<2x33xf32>
    %424 = arith.mulf %422, %423 : vector<2x33xf32>
    %425 = vector.broadcast %331 : vector<1x33xf32> to vector<2x33xf32>
    %426 = arith.addf %424, %425 : vector<2x33xf32>
    %c2_142 = arith.constant 2 : index
    %c0_143 = arith.constant 0 : index
    %c0_144 = arith.constant 0 : index
    %427 = vector.load %arg5[%c2_142, %c0_143, %c0_144] : memref<4x33x1024xf32, #tpu.memory_space<vmem>>, vector<1x33x1024xf32>
    %428 = vector.shape_cast %427 : vector<1x33x1024xf32> to vector<33x1024xf32>
    %cst_145 = arith.constant dense<0.000000e+00> : vector<2x1024xf32>
    %429 = tpu.matmul %426, %428, %cst_145 {dimension_numbers = #tpu.dot_dimension_numbers<[1], [0], [0], [1], [0, 0, 1, 1], [], []>} : vector<2x33xf32>, vector<33x1024xf32>, vector<2x1024xf32> -> vector<2x1024xf32>
    %c2_146 = arith.constant 2 : index
    %c0_147 = arith.constant 0 : index
    %c0_148 = arith.constant 0 : index
    %430 = vector.load %arg6[%c2_146, %c0_147, %c0_148] : memref<4x1x1024xf32, #tpu.memory_space<vmem>>, vector<1x1x1024xf32>
    %431 = vector.shape_cast %430 : vector<1x1x1024xf32> to vector<1x1024xf32>
    %432 = vector.broadcast %431 : vector<1x1024xf32> to vector<2x1024xf32>
    %433 = arith.addf %429, %432 : vector<2x1024xf32>
    %cst_149 = arith.constant 0.000000e+00 : f32
    %434 = vector.broadcast %cst_149 : f32 to vector<2x1024xf32>
    %435 = arith.maximumf %433, %434 : vector<2x1024xf32>
    %c2_150 = arith.constant 2 : index
    %c0_151 = arith.constant 0 : index
    %c0_152 = arith.constant 0 : index
    %436 = vector.load %arg7[%c2_150, %c0_151, %c0_152] : memref<4x1024x33xf32, #tpu.memory_space<vmem>>, vector<1x1024x33xf32>
    %437 = vector.shape_cast %436 : vector<1x1024x33xf32> to vector<1024x33xf32>
    %cst_153 = arith.constant dense<0.000000e+00> : vector<2x33xf32>
    %438 = tpu.matmul %435, %437, %cst_153 {dimension_numbers = #tpu.dot_dimension_numbers<[1], [0], [0], [1], [0, 0, 1, 1], [], []>} : vector<2x1024xf32>, vector<1024x33xf32>, vector<2x33xf32> -> vector<2x33xf32>
    %439 = vector.broadcast %332 : vector<1x33xf32> to vector<2x33xf32>
    %440 = arith.addf %438, %439 : vector<2x33xf32>
    %441 = arith.addf %426, %440 : vector<2x33xf32>
    %442 = vector.broadcast %4 : vector<1x33xf32> to vector<2x33xf32>
    %443 = arith.mulf %441, %442 : vector<2x33xf32>
    %cst_154 = arith.constant dense<0.000000e+00> : vector<2xf32>
    %444 = vector.multi_reduction <add>, %443, %cst_154 [1] : vector<2x33xf32> to vector<2xf32>
    %445 = vector.shape_cast %444 : vector<2xf32> to vector<2x1xf32>
    %446 = vector.broadcast %445 : vector<2x1xf32> to vector<2x33xf32>
    %447 = vector.broadcast %2 : vector<1x33xf32> to vector<2x33xf32>
    %448 = arith.mulf %446, %447 : vector<2x33xf32>
    %449 = vector.broadcast %5 : vector<1x33xf32> to vector<2x33xf32>
    %450 = arith.mulf %441, %449 : vector<2x33xf32>
    %cst_155 = arith.constant dense<0.000000e+00> : vector<2xf32>
    %451 = vector.multi_reduction <add>, %450, %cst_155 [1] : vector<2x33xf32> to vector<2xf32>
    %452 = vector.shape_cast %451 : vector<2xf32> to vector<2x1xf32>
    %453 = vector.broadcast %452 : vector<2x1xf32> to vector<2x33xf32>
    %454 = vector.broadcast %3 : vector<1x33xf32> to vector<2x33xf32>
    %455 = arith.mulf %453, %454 : vector<2x33xf32>
    %456 = arith.addf %448, %455 : vector<2x33xf32>
    %457 = arith.subf %441, %456 : vector<2x33xf32>
    %458 = arith.mulf %457, %457 : vector<2x33xf32>
    %459 = vector.broadcast %4 : vector<1x33xf32> to vector<2x33xf32>
    %460 = arith.mulf %458, %459 : vector<2x33xf32>
    %cst_156 = arith.constant dense<0.000000e+00> : vector<2xf32>
    %461 = vector.multi_reduction <add>, %460, %cst_156 [1] : vector<2x33xf32> to vector<2xf32>
    %462 = vector.shape_cast %461 : vector<2xf32> to vector<2x1xf32>
    %463 = vector.broadcast %462 : vector<2x1xf32> to vector<2x33xf32>
    %464 = vector.broadcast %2 : vector<1x33xf32> to vector<2x33xf32>
    %465 = arith.mulf %463, %464 : vector<2x33xf32>
    %466 = arith.mulf %457, %457 : vector<2x33xf32>
    %467 = vector.broadcast %5 : vector<1x33xf32> to vector<2x33xf32>
    %468 = arith.mulf %466, %467 : vector<2x33xf32>
    %cst_157 = arith.constant dense<0.000000e+00> : vector<2xf32>
    %469 = vector.multi_reduction <add>, %468, %cst_157 [1] : vector<2x33xf32> to vector<2xf32>
    %470 = vector.shape_cast %469 : vector<2xf32> to vector<2x1xf32>
    %471 = vector.broadcast %470 : vector<2x1xf32> to vector<2x33xf32>
    %472 = vector.broadcast %3 : vector<1x33xf32> to vector<2x33xf32>
    %473 = arith.mulf %471, %472 : vector<2x33xf32>
    %474 = arith.addf %465, %473 : vector<2x33xf32>
    %cst_158 = arith.constant 9.99999974E-6 : f32
    %475 = vector.broadcast %cst_158 : f32 to vector<2x33xf32>
    %476 = arith.addf %474, %475 : vector<2x33xf32>
    %477 = math.rsqrt %476 : vector<2x33xf32>
    %478 = arith.mulf %457, %477 : vector<2x33xf32>
    %479 = vector.broadcast %333 : vector<1x33xf32> to vector<2x33xf32>
    %480 = arith.mulf %478, %479 : vector<2x33xf32>
    %481 = vector.broadcast %334 : vector<1x33xf32> to vector<2x33xf32>
    %482 = arith.addf %480, %481 : vector<2x33xf32>
    %c3 = arith.constant 3 : index
    %c0_159 = arith.constant 0 : index
    %c0_160 = arith.constant 0 : index
    %483 = vector.load %arg8[%c3, %c0_159, %c0_160] : memref<4x6x33xf32, #tpu.memory_space<vmem>>, vector<1x6x33xf32>
    %484 = vector.shape_cast %483 : vector<1x6x33xf32> to vector<6x33xf32>
    %485 = vector.extract_strided_slice %484 {offsets = [0, 0], sizes = [1, 33], strides = [1, 1]} : vector<6x33xf32> to vector<1x33xf32>
    %486 = vector.extract_strided_slice %484 {offsets = [1, 0], sizes = [1, 33], strides = [1, 1]} : vector<6x33xf32> to vector<1x33xf32>
    %487 = vector.extract_strided_slice %484 {offsets = [2, 0], sizes = [1, 33], strides = [1, 1]} : vector<6x33xf32> to vector<1x33xf32>
    %488 = vector.extract_strided_slice %484 {offsets = [3, 0], sizes = [1, 33], strides = [1, 1]} : vector<6x33xf32> to vector<1x33xf32>
    %489 = vector.extract_strided_slice %484 {offsets = [4, 0], sizes = [1, 33], strides = [1, 1]} : vector<6x33xf32> to vector<1x33xf32>
    %490 = vector.extract_strided_slice %484 {offsets = [5, 0], sizes = [1, 33], strides = [1, 1]} : vector<6x33xf32> to vector<1x33xf32>
    %c3_161 = arith.constant 3 : index
    %c0_162 = arith.constant 0 : index
    %c0_163 = arith.constant 0 : index
    %491 = vector.load %arg2[%c3_161, %c0_162, %c0_163] : memref<4x33x99xf32, #tpu.memory_space<vmem>>, vector<1x33x99xf32>
    %492 = vector.shape_cast %491 : vector<1x33x99xf32> to vector<33x99xf32>
    %cst_164 = arith.constant dense<0.000000e+00> : vector<2x99xf32>
    %493 = tpu.matmul %482, %492, %cst_164 {dimension_numbers = #tpu.dot_dimension_numbers<[1], [0], [0], [1], [0, 0, 1, 1], [], []>} : vector<2x33xf32>, vector<33x99xf32>, vector<2x99xf32> -> vector<2x99xf32>
    %c3_165 = arith.constant 3 : index
    %c0_166 = arith.constant 0 : index
    %c0_167 = arith.constant 0 : index
    %494 = vector.load %arg3[%c3_165, %c0_166, %c0_167] : memref<4x1x99xf32, #tpu.memory_space<vmem>>, vector<1x1x99xf32>
    %495 = vector.shape_cast %494 : vector<1x1x99xf32> to vector<1x99xf32>
    %496 = vector.broadcast %495 : vector<1x99xf32> to vector<2x99xf32>
    %497 = arith.addf %493, %496 : vector<2x99xf32>
    %498 = vector.extract_strided_slice %497 {offsets = [0, 0], sizes = [2, 33], strides = [1, 1]} : vector<2x99xf32> to vector<2x33xf32>
    %499 = vector.extract_strided_slice %497 {offsets = [0, 33], sizes = [2, 33], strides = [1, 1]} : vector<2x99xf32> to vector<2x33xf32>
    %500 = vector.extract_strided_slice %497 {offsets = [0, 66], sizes = [2, 33], strides = [1, 1]} : vector<2x99xf32> to vector<2x33xf32>
    %501 = vector.extract_strided_slice %499 {offsets = [0, 0], sizes = [1, 33], strides = [1, 1]} : vector<2x33xf32> to vector<1x33xf32>
    %502 = vector.broadcast %501 : vector<1x33xf32> to vector<2x33xf32>
    %503 = arith.mulf %498, %502 : vector<2x33xf32>
    %c0_168 = arith.constant 0 : index
    %c0_169 = arith.constant 0 : index
    %504 = vector.load %arg13[%c0_168, %c0_169] : memref<4x33xf32, #tpu.memory_space<vmem>>, vector<2x33xf32>
    tpu.vector_store %arg13[%c0_168, %c0_169], %503 {strides = array<i32>} : memref<4x33xf32, #tpu.memory_space<vmem>>, vector<2x33xf32>,
    %505 = vector.extract_strided_slice %499 {offsets = [1, 0], sizes = [1, 33], strides = [1, 1]} : vector<2x33xf32> to vector<1x33xf32>
    %506 = vector.broadcast %505 : vector<1x33xf32> to vector<2x33xf32>
    %507 = arith.mulf %498, %506 : vector<2x33xf32>
    %c2_170 = arith.constant 2 : index
    %c0_171 = arith.constant 0 : index
    %508 = vector.load %arg13[%c2_170, %c0_171] : memref<4x33xf32, #tpu.memory_space<vmem>>, vector<2x33xf32>
    tpu.vector_store %arg13[%c2_170, %c0_171], %507 {strides = array<i32>} : memref<4x33xf32, #tpu.memory_space<vmem>>, vector<2x33xf32>,
    %c0_172 = arith.constant 0 : index
    %c0_173 = arith.constant 0 : index
    %509 = vector.load %arg13[%c0_172, %c0_173] : memref<4x33xf32, #tpu.memory_space<vmem>>, vector<4x33xf32>
    %cst_174 = arith.constant dense<0.000000e+00> : vector<4x6xf32>
    %510 = tpu.matmul %509, %7, %cst_174 {dimension_numbers = #tpu.dot_dimension_numbers<[1], [0], [0], [1], [0, 0, 1, 1], [], []>} : vector<4x33xf32>, vector<33x6xf32>, vector<4x6xf32> -> vector<4x6xf32>
    %511 = vector.extract_strided_slice %510 {offsets = [0, 0], sizes = [2, 6], strides = [1, 1]} : vector<4x6xf32> to vector<2x6xf32>
    %512 = vector.extract_strided_slice %510 {offsets = [2, 0], sizes = [2, 6], strides = [1, 1]} : vector<4x6xf32> to vector<2x6xf32>
    %513 = arith.maximumf %511, %512 : vector<2x6xf32>
    %514 = arith.subf %511, %513 : vector<2x6xf32>
    %515 = math.exp %514 : vector<2x6xf32>
    %516 = arith.subf %512, %513 : vector<2x6xf32>
    %517 = math.exp %516 : vector<2x6xf32>
    %518 = arith.addf %515, %517 : vector<2x6xf32>
    %cst_175 = arith.constant 1.000000e+00 : f32
    %519 = vector.broadcast %cst_175 : f32 to vector<2x6xf32>
    %520 = arith.divf %519, %518 : vector<2x6xf32>
    %521 = arith.mulf %515, %520 : vector<2x6xf32>
    %c0_176 = arith.constant 0 : index
    %c0_177 = arith.constant 0 : index
    %522 = vector.load %arg14[%c0_176, %c0_177] : memref<4x6xf32, #tpu.memory_space<vmem>>, vector<2x6xf32>
    tpu.vector_store %arg14[%c0_176, %c0_177], %521 {strides = array<i32>} : memref<4x6xf32, #tpu.memory_space<vmem>>, vector<2x6xf32>,
    %523 = arith.mulf %517, %520 : vector<2x6xf32>
    %c2_178 = arith.constant 2 : index
    %c0_179 = arith.constant 0 : index
    %524 = vector.load %arg14[%c2_178, %c0_179] : memref<4x6xf32, #tpu.memory_space<vmem>>, vector<2x6xf32>
    tpu.vector_store %arg14[%c2_178, %c0_179], %523 {strides = array<i32>} : memref<4x6xf32, #tpu.memory_space<vmem>>, vector<2x6xf32>,
    %c0_180 = arith.constant 0 : index
    %c0_181 = arith.constant 0 : index
    %525 = vector.load %arg14[%c0_180, %c0_181] : memref<4x6xf32, #tpu.memory_space<vmem>>, vector<4x6xf32>
    %cst_182 = arith.constant dense<0.000000e+00> : vector<4x33xf32>
    %526 = tpu.matmul %525, %1, %cst_182 {dimension_numbers = #tpu.dot_dimension_numbers<[1], [0], [0], [1], [0, 0, 1, 1], [], []>} : vector<4x6xf32>, vector<6x33xf32>, vector<4x33xf32> -> vector<4x33xf32>
    %527 = vector.extract_strided_slice %526 {offsets = [0, 0], sizes = [2, 33], strides = [1, 1]} : vector<4x33xf32> to vector<2x33xf32>
    %528 = vector.extract_strided_slice %500 {offsets = [0, 0], sizes = [1, 33], strides = [1, 1]} : vector<2x33xf32> to vector<1x33xf32>
    %529 = vector.broadcast %528 : vector<1x33xf32> to vector<2x33xf32>
    %530 = arith.mulf %527, %529 : vector<2x33xf32>
    %531 = vector.extract_strided_slice %526 {offsets = [2, 0], sizes = [2, 33], strides = [1, 1]} : vector<4x33xf32> to vector<2x33xf32>
    %532 = vector.extract_strided_slice %500 {offsets = [1, 0], sizes = [1, 33], strides = [1, 1]} : vector<2x33xf32> to vector<1x33xf32>
    %533 = vector.broadcast %532 : vector<1x33xf32> to vector<2x33xf32>
    %534 = arith.mulf %531, %533 : vector<2x33xf32>
    %535 = arith.addf %530, %534 : vector<2x33xf32>
    %c3_183 = arith.constant 3 : index
    %c0_184 = arith.constant 0 : index
    %c0_185 = arith.constant 0 : index
    %536 = vector.load %arg4[%c3_183, %c0_184, %c0_185] : memref<4x33x33xf32, #tpu.memory_space<vmem>>, vector<1x33x33xf32>
    %537 = vector.shape_cast %536 : vector<1x33x33xf32> to vector<33x33xf32>
    %cst_186 = arith.constant dense<0.000000e+00> : vector<2x33xf32>
    %538 = tpu.matmul %535, %537, %cst_186 {dimension_numbers = #tpu.dot_dimension_numbers<[1], [0], [0], [1], [0, 0, 1, 1], [], []>} : vector<2x33xf32>, vector<33x33xf32>, vector<2x33xf32> -> vector<2x33xf32>
    %539 = vector.broadcast %485 : vector<1x33xf32> to vector<2x33xf32>
    %540 = arith.addf %538, %539 : vector<2x33xf32>
    %541 = arith.addf %482, %540 : vector<2x33xf32>
    %542 = vector.broadcast %4 : vector<1x33xf32> to vector<2x33xf32>
    %543 = arith.mulf %541, %542 : vector<2x33xf32>
    %cst_187 = arith.constant dense<0.000000e+00> : vector<2xf32>
    %544 = vector.multi_reduction <add>, %543, %cst_187 [1] : vector<2x33xf32> to vector<2xf32>
    %545 = vector.shape_cast %544 : vector<2xf32> to vector<2x1xf32>
    %546 = vector.broadcast %545 : vector<2x1xf32> to vector<2x33xf32>
    %547 = vector.broadcast %2 : vector<1x33xf32> to vector<2x33xf32>
    %548 = arith.mulf %546, %547 : vector<2x33xf32>
    %549 = vector.broadcast %5 : vector<1x33xf32> to vector<2x33xf32>
    %550 = arith.mulf %541, %549 : vector<2x33xf32>
    %cst_188 = arith.constant dense<0.000000e+00> : vector<2xf32>
    %551 = vector.multi_reduction <add>, %550, %cst_188 [1] : vector<2x33xf32> to vector<2xf32>
    %552 = vector.shape_cast %551 : vector<2xf32> to vector<2x1xf32>
    %553 = vector.broadcast %552 : vector<2x1xf32> to vector<2x33xf32>
    %554 = vector.broadcast %3 : vector<1x33xf32> to vector<2x33xf32>
    %555 = arith.mulf %553, %554 : vector<2x33xf32>
    %556 = arith.addf %548, %555 : vector<2x33xf32>
    %557 = arith.subf %541, %556 : vector<2x33xf32>
    %558 = arith.mulf %557, %557 : vector<2x33xf32>
    %559 = vector.broadcast %4 : vector<1x33xf32> to vector<2x33xf32>
    %560 = arith.mulf %558, %559 : vector<2x33xf32>
    %cst_189 = arith.constant dense<0.000000e+00> : vector<2xf32>
    %561 = vector.multi_reduction <add>, %560, %cst_189 [1] : vector<2x33xf32> to vector<2xf32>
    %562 = vector.shape_cast %561 : vector<2xf32> to vector<2x1xf32>
    %563 = vector.broadcast %562 : vector<2x1xf32> to vector<2x33xf32>
    %564 = vector.broadcast %2 : vector<1x33xf32> to vector<2x33xf32>
    %565 = arith.mulf %563, %564 : vector<2x33xf32>
    %566 = arith.mulf %557, %557 : vector<2x33xf32>
    %567 = vector.broadcast %5 : vector<1x33xf32> to vector<2x33xf32>
    %568 = arith.mulf %566, %567 : vector<2x33xf32>
    %cst_190 = arith.constant dense<0.000000e+00> : vector<2xf32>
    %569 = vector.multi_reduction <add>, %568, %cst_190 [1] : vector<2x33xf32> to vector<2xf32>
    %570 = vector.shape_cast %569 : vector<2xf32> to vector<2x1xf32>
    %571 = vector.broadcast %570 : vector<2x1xf32> to vector<2x33xf32>
    %572 = vector.broadcast %3 : vector<1x33xf32> to vector<2x33xf32>
    %573 = arith.mulf %571, %572 : vector<2x33xf32>
    %574 = arith.addf %565, %573 : vector<2x33xf32>
    %cst_191 = arith.constant 9.99999974E-6 : f32
    %575 = vector.broadcast %cst_191 : f32 to vector<2x33xf32>
    %576 = arith.addf %574, %575 : vector<2x33xf32>
    %577 = math.rsqrt %576 : vector<2x33xf32>
    %578 = arith.mulf %557, %577 : vector<2x33xf32>
    %579 = vector.broadcast %486 : vector<1x33xf32> to vector<2x33xf32>
    %580 = arith.mulf %578, %579 : vector<2x33xf32>
    %581 = vector.broadcast %487 : vector<1x33xf32> to vector<2x33xf32>
    %582 = arith.addf %580, %581 : vector<2x33xf32>
    %c3_192 = arith.constant 3 : index
    %c0_193 = arith.constant 0 : index
    %c0_194 = arith.constant 0 : index
    %583 = vector.load %arg5[%c3_192, %c0_193, %c0_194] : memref<4x33x1024xf32, #tpu.memory_space<vmem>>, vector<1x33x1024xf32>
    %584 = vector.shape_cast %583 : vector<1x33x1024xf32> to vector<33x1024xf32>
    %cst_195 = arith.constant dense<0.000000e+00> : vector<2x1024xf32>
    %585 = tpu.matmul %582, %584, %cst_195 {dimension_numbers = #tpu.dot_dimension_numbers<[1], [0], [0], [1], [0, 0, 1, 1], [], []>} : vector<2x33xf32>, vector<33x1024xf32>, vector<2x1024xf32> -> vector<2x1024xf32>
    %c3_196 = arith.constant 3 : index
    %c0_197 = arith.constant 0 : index
    %c0_198 = arith.constant 0 : index
    %586 = vector.load %arg6[%c3_196, %c0_197, %c0_198] : memref<4x1x1024xf32, #tpu.memory_space<vmem>>, vector<1x1x1024xf32>
    %587 = vector.shape_cast %586 : vector<1x1x1024xf32> to vector<1x1024xf32>
    %588 = vector.broadcast %587 : vector<1x1024xf32> to vector<2x1024xf32>
    %589 = arith.addf %585, %588 : vector<2x1024xf32>
    %cst_199 = arith.constant 0.000000e+00 : f32
    %590 = vector.broadcast %cst_199 : f32 to vector<2x1024xf32>
    %591 = arith.maximumf %589, %590 : vector<2x1024xf32>
    %c3_200 = arith.constant 3 : index
    %c0_201 = arith.constant 0 : index
    %c0_202 = arith.constant 0 : index
    %592 = vector.load %arg7[%c3_200, %c0_201, %c0_202] : memref<4x1024x33xf32, #tpu.memory_space<vmem>>, vector<1x1024x33xf32>
    %593 = vector.shape_cast %592 : vector<1x1024x33xf32> to vector<1024x33xf32>
    %cst_203 = arith.constant dense<0.000000e+00> : vector<2x33xf32>
    %594 = tpu.matmul %591, %593, %cst_203 {dimension_numbers = #tpu.dot_dimension_numbers<[1], [0], [0], [1], [0, 0, 1, 1], [], []>} : vector<2x1024xf32>, vector<1024x33xf32>, vector<2x33xf32> -> vector<2x33xf32>
    %595 = vector.broadcast %488 : vector<1x33xf32> to vector<2x33xf32>
    %596 = arith.addf %594, %595 : vector<2x33xf32>
    %597 = arith.addf %582, %596 : vector<2x33xf32>
    %598 = vector.broadcast %4 : vector<1x33xf32> to vector<2x33xf32>
    %599 = arith.mulf %597, %598 : vector<2x33xf32>
    %cst_204 = arith.constant dense<0.000000e+00> : vector<2xf32>
    %600 = vector.multi_reduction <add>, %599, %cst_204 [1] : vector<2x33xf32> to vector<2xf32>
    %601 = vector.shape_cast %600 : vector<2xf32> to vector<2x1xf32>
    %602 = vector.broadcast %601 : vector<2x1xf32> to vector<2x33xf32>
    %603 = vector.broadcast %2 : vector<1x33xf32> to vector<2x33xf32>
    %604 = arith.mulf %602, %603 : vector<2x33xf32>
    %605 = vector.broadcast %5 : vector<1x33xf32> to vector<2x33xf32>
    %606 = arith.mulf %597, %605 : vector<2x33xf32>
    %cst_205 = arith.constant dense<0.000000e+00> : vector<2xf32>
    %607 = vector.multi_reduction <add>, %606, %cst_205 [1] : vector<2x33xf32> to vector<2xf32>
    %608 = vector.shape_cast %607 : vector<2xf32> to vector<2x1xf32>
    %609 = vector.broadcast %608 : vector<2x1xf32> to vector<2x33xf32>
    %610 = vector.broadcast %3 : vector<1x33xf32> to vector<2x33xf32>
    %611 = arith.mulf %609, %610 : vector<2x33xf32>
    %612 = arith.addf %604, %611 : vector<2x33xf32>
    %613 = arith.subf %597, %612 : vector<2x33xf32>
    %614 = arith.mulf %613, %613 : vector<2x33xf32>
    %615 = vector.broadcast %4 : vector<1x33xf32> to vector<2x33xf32>
    %616 = arith.mulf %614, %615 : vector<2x33xf32>
    %cst_206 = arith.constant dense<0.000000e+00> : vector<2xf32>
    %617 = vector.multi_reduction <add>, %616, %cst_206 [1] : vector<2x33xf32> to vector<2xf32>
    %618 = vector.shape_cast %617 : vector<2xf32> to vector<2x1xf32>
    %619 = vector.broadcast %618 : vector<2x1xf32> to vector<2x33xf32>
    %620 = vector.broadcast %2 : vector<1x33xf32> to vector<2x33xf32>
    %621 = arith.mulf %619, %620 : vector<2x33xf32>
    %622 = arith.mulf %613, %613 : vector<2x33xf32>
    %623 = vector.broadcast %5 : vector<1x33xf32> to vector<2x33xf32>
    %624 = arith.mulf %622, %623 : vector<2x33xf32>
    %cst_207 = arith.constant dense<0.000000e+00> : vector<2xf32>
    %625 = vector.multi_reduction <add>, %624, %cst_207 [1] : vector<2x33xf32> to vector<2xf32>
    %626 = vector.shape_cast %625 : vector<2xf32> to vector<2x1xf32>
    %627 = vector.broadcast %626 : vector<2x1xf32> to vector<2x33xf32>
    %628 = vector.broadcast %3 : vector<1x33xf32> to vector<2x33xf32>
    %629 = arith.mulf %627, %628 : vector<2x33xf32>
    %630 = arith.addf %621, %629 : vector<2x33xf32>
    %cst_208 = arith.constant 9.99999974E-6 : f32
    %631 = vector.broadcast %cst_208 : f32 to vector<2x33xf32>
    %632 = arith.addf %630, %631 : vector<2x33xf32>
    %633 = math.rsqrt %632 : vector<2x33xf32>
    %634 = arith.mulf %613, %633 : vector<2x33xf32>
    %635 = vector.broadcast %489 : vector<1x33xf32> to vector<2x33xf32>
    %636 = arith.mulf %634, %635 : vector<2x33xf32>
    %637 = vector.broadcast %490 : vector<1x33xf32> to vector<2x33xf32>
    %638 = arith.addf %636, %637 : vector<2x33xf32>
    %c0_209 = arith.constant 0 : index
    %c0_210 = arith.constant 0 : index
    %639 = vector.load %arg11[%c0_209, %c0_210] : memref<34x128xf32, #tpu.memory_space<vmem>>, vector<33x128xf32>
    %cst_211 = arith.constant dense<0.000000e+00> : vector<2x128xf32>
    %640 = tpu.matmul %638, %639, %cst_211 {dimension_numbers = #tpu.dot_dimension_numbers<[1], [0], [0], [1], [0, 0, 1, 1], [], []>} : vector<2x33xf32>, vector<33x128xf32>, vector<2x128xf32> -> vector<2x128xf32>
    %c33 = arith.constant 33 : index
    %c0_212 = arith.constant 0 : index
    %641 = vector.load %arg11[%c33, %c0_212] : memref<34x128xf32, #tpu.memory_space<vmem>>, vector<1x128xf32>
    %642 = vector.broadcast %641 : vector<1x128xf32> to vector<2x128xf32>
    %643 = arith.addf %640, %642 : vector<2x128xf32>
    %c0_213 = arith.constant 0 : index
    %c0_214 = arith.constant 0 : index
    %644 = vector.load %arg12[%c0_213, %c0_214] : memref<2x128xf32, #tpu.memory_space<vmem>>, vector<2x128xf32>
    tpu.vector_store %arg12[%c0_213, %c0_214], %643 {strides = array<i32>} : memref<2x128xf32, #tpu.memory_space<vmem>>, vector<2x128xf32>,
    return
  }
}

</mosaic_0001>

<bundles_post_ra>
// kernel: model_forward.1
= control target key start
LH: loop header
LB: loop body
LE: loop exit
PB: predicated region body
PF: predicated region fallthrough
CT: control target
= control target key end

     0   :  { %vm59_vm0 = vcmask 1045504   ;;  %vm98_vm1 = vcmask 1040384   ;;  %s6834_s0 = inlined_call_operand.vmem [shape: f32[2,30], index: 0, kind: input, shape index: {}]   ;;  %s6835_s1 = inlined_call_operand.vmem [shape: f32[30,33], index: 1, kind: input, shape index: {}]   ;;  %s6836_s2 = inlined_call_operand.vmem [shape: f32[4,33,99], index: 2, kind: input, shape index: {}]   ;;  %s6837_s3 = inlined_call_operand.vmem [shape: f32[4,1,99], index: 3, kind: input, shape index: {}]   ;;  %s6838_s4 = inlined_call_operand.vmem [shape: f32[4,33,33], index: 4, kind: input, shape index: {}]   ;;  %s6839_s5 = inlined_call_operand.vmem [shape: f32[4,33,1024], index: 5, kind: input, shape index: {}]   ;;  %s6840_s6 = inlined_call_operand.vmem [shape: f32[4,1,1024], index: 6, kind: input, shape index: {}]   ;;  %s6841_s7 = inlined_call_operand.vmem [shape: f32[4,1024,33], index: 7, kind: input, shape index: {}]   ;;  %s6842_s8 = inlined_call_operand.vmem [shape: f32[4,6,33], index: 8, kind: input, shape index: {}]   ;;  %s6843_s9 = inlined_call_operand.vmem [shape: f32[11,33], index: 9, kind: input, shape index: {}]   ;;  %s6844_s10 = inlined_call_operand.vmem [shape: f32[33,6], index: 10, kind: input, shape index: {}]   ;;  %s6845_s11 = inlined_call_operand.vmem [shape: f32[34,128], index: 11, kind: input, shape index: {}]   ;;  %s6846_s12 = inlined_call_operand.hbm [shape: f32[2,128], index: 12, kind: output, shape index: {}]  }
   0x1   :  { %v53_v0 = vld [vmem:[%s6835_s1 + $0x18] sm:$0x3f]  ;;  %v52_v1 = vld [vmem:[%s6835_s1 + $0x10] sm:$0xff]  ;;  %v89_v2 = vld [vmem:[%s6836_s2 + $0x20] sm:$0x1] }
   0x2   :  { %3391 = vmatpush.msk.msra.mxu0 %vm59_vm0, %v53_v0  ;;  %v51_v3 = vld [vmem:[%s6835_s1 + $0x8] sm:$0xff]  ;;  %3393 = vmatpush.msk.msra.mxu1 %vm98_vm1, %v89_v2  ;;  %v88_v4 = vld [vmem:[%s6836_s2 + $0x18] sm:$0xff]  ;;  %v50_v5 = vld [vmem:[%s6835_s1] sm:$0xff] }
   0x4   :  { %76 = vmatpush.msra.mxu0 %v52_v1  ;;  %114 = vmatpush.msra.mxu1 %v88_v4 }
   0x5   :  { %17 = vsyncpa [#allocation5], 0  ;;  %v49_v6 = vld [vmem:[%s6834_s0] sm:$0x3]  ;;  %vm55_vm2 = vcmask 244736   ;;  %v87_v7 = vld [vmem:[%s6836_s2 + $0x10] sm:$0xff] }
   0x6   :  { %77 = vmatpush.msra.mxu0 %v51_v3  ;;  %115 = vmatpush.msra.mxu1 %v87_v7  ;;  %v86_v8 = vld [vmem:[%s6836_s2 + $0x8] sm:$0xff]  ;;  %v85_v9 = vld [vmem:[%s6836_s2] sm:$0xff]  ;;  %vm94_vm3 = vcmask 269312   ;;  %s4120_s25 = smov 62   ;;  %s4121_s26 = smov 95   ;;  %v4249_v21 = vld [vmem:[%s6844_s10 + $0x18] sm:$0xff] }
   0x7   :  { %v4223_v10 = vld [vmem:[%s6843_s9 + $0x8] sm:$0x7]  ;;  %v4037_v15 = vld [vmem:[%s6837_s3] ss:$0 sm:$0xff]  ;;  %v4254_v22 = vld [vmem:[%s6844_s10 + $0x10] sm:$0xff]  ;;  %vm128_vm4 = vcmask 263168  }
   0x8   :  { %78 = vmatpush.msra.mxu0 %v50_v5  ;;  %116 = vmatpush.msra.mxu1 %v86_v8  ;;  %v54_v11 = vperm.slane %v4223_v10, 2  ;;  %v4242_v20 = vld [vmem:[%s6844_s10 + $0x20] sm:$0x1]  ;;  %v4260_v23 = vld [vmem:[%s6844_s10 + $0x8] sm:$0xff]  ;;  %vm197_vm9 = vcmask 41984   ;;  %vm203_vm10 = vcmask 44034  }
   0x9   :  { %3392 = vmatmul.msk.f32.vlgmr.msra.gmra.mxu0 %vm55_vm2, %v49_v6  ;;  %3395 = vmatpush.msk.msra.mxu2 %vm98_vm1, %v4242_v20  ;;  %v4266_v24 = vld [vmem:[%s6844_s10] sm:$0xff]  ;;  %vm206_vm11 = vcmask 48128   ;;  %v248_v58 = vld [vmem:[%s6838_s4 + $0x18] sm:$0xff]  ;;  %v247_v59 = vld [vmem:[%s6838_s4 + $0x10] sm:$0xff]  ;;  %v4307_v8 = vperm.slane %v4223_v10, 0 }
   0xa   :  { %117 = vmatpush.msra.mxu1 %v85_v9  ;;  %v4276_v38 = vld [vmem:[%s6843_s9] sm:$0xff]  ;;  %v246_v60 = vld [vmem:[%s6838_s4 + $0x8] sm:$0xff] }
   0xb   :  { %156 = vmatpush.msra.mxu2 %v4249_v21  ;;  %3397 = vmatpush.msk.msra.mxu3 %vm59_vm0, %v4276_v38  ;;  %v249_v42 = vld [vmem:[%s6838_s4 + $0x20] sm:$0x1] }
   0xc   :  { %v245_v61 = vld [vmem:[%s6838_s4] sm:$0xff] }
   0xd   :  { %157 = vmatpush.msra.mxu2 %v4254_v22  ;;  %3399 = vmatpush.msk.msrb.mxu3 %vm98_vm1, %v249_v42  ;;  %v4303_v5 = vld [vmem:[%s6842_s8] sm:$0x3f]  ;;  %v349_v42 = vld [vmem:[%s6839_s5 + $0xd8] sm:$0xff] }
   0xe   :  { %v250_v6 = vperm.slane %v4303_v5, 0 }
   0xf   :  { %158 = vmatpush.msra.mxu2 %v4260_v23  ;;  %269 = vmatpush.msrb.mxu3 %v248_v58  ;;  %v361_v58 = vld [vmem:[%s6839_s5 + $0x138] sm:$0x1] }
  0x11   :  { %159 = vmatpush.msra.mxu2 %v4266_v24  ;;  %270 = vmatpush.msrb.mxu3 %v247_v59 }
  0x13   :  { %271 = vmatpush.msrb.mxu3 %v246_v60 }
  0x15   :  { %272 = vmatpush.msrb.mxu3 %v245_v61  ;;  %v350_v61 = vld [vmem:[%s6839_s5 + $0xe0] sm:$0xff] }
  0x86   :  { %v80_v12 = vpop.f32.mrf.mxu0 }
  0x87   :  { %v4226_v13 = vadd.f32 %v80_v12, %v54_v11 }
  0x89   :  { %v83_v14 = vmax.f32 %v4226_v13, 0.0  ;;  %v4322_v13 = vperm.slane %v4276_v38, 7 }
  0x8b   :  { %3394 = vmatmul.msk.f32.vlgmr.msra.gmra.mxu1 %vm94_vm3, %v83_v14 }
 0x108   :  { %v119_v16 = vpop.f32.mrf.mxu1 }
 0x109   :  { %v120_v17 = vadd.f32 %v4037_v15, %v119_v16  ;;  %v4313_v15 = vperm.slane %v4223_v10, 1 }
 0x10b   :  { %v130_v18 = vperm.slane %v120_v17, 1  ;;  %v122_v19 = vperm.slane %v120_v17, 0 }
 0x10d   :  { %237 = vrot.lane.b32.xlu1 %v130_v18, %s4120_s25  ;;  %124 = vrot.lane.b32.xlu0 %v122_v19, %s4121_s26 }
 0x115   :  { %233 = vrot.lane.b32.xlu1 %v122_v19, %s4120_s25  ;;  %132 = vrot.lane.b32.xlu0 %v130_v18, %s4121_s26 }
 0x17f   :  { %v125_v25 = vpop.permute.xlu0 %124  ;;  %v238_v62 = vpop.permute.xlu1 %237 }
 0x180   :  { %v127_v26 = vmul.f32 %v125_v25, %v120_v17  ;;  %v4319_v25 = vperm.slane %v4276_v38, 6 }
 0x182   :  { %129 = vst.msk [vmem:[#allocation2] sm:$0x3] %vm128_vm4, %v127_v26 }
 0x187   :  { %v133_v27 = vpop.permute.xlu0 %132  ;;  %v234_v1 = vpop.permute.xlu1 %233 }
 0x188   :  { %v135_v28 = vmul.f32 %v133_v27, %v120_v17 }
 0x18a   :  { %136 = vst.msk [vmem:[#allocation2 + $0x2] sm:$0x3] %vm128_vm4, %v135_v28 }
 0x191   :  { %v137_v29 = vld [vmem:[#allocation2] sm:$0xf] }
 0x192   :  { %3396 = vmatmul.msk.f32.vlgmr.msra.gmra.mxu2 %vm94_vm3, %v137_v29 }
 0x215   :  { %v161_v30 = vpop.f32.mrf.mxu2 }
 0x216   :  { %v165_v31 = vrot.slane %v161_v30, 2 }
 0x218   :  { %v167_v32 = vmax.f32 %v161_v30, %v165_v31 }
 0x21a   :  { %v168_v33 = vsub.f32 %v161_v30, %v167_v32  ;;  %v172_v34 = vrot.slane %v167_v32, 6 }
 0x21c   :  { %v174_v35 = vsub.f32 %v161_v30, %v172_v34  ;;  %v169_v36 = vmul.f32 1.442695, %v168_v33  ;;  %v354_v34 = vld [vmem:[%s6839_s5 + $0x100] sm:$0x1] }
 0x21d   :  { %3401 = vmatpush.msk.msrb.mxu0 %vm98_vm1, %v354_v34  ;;  %v318_v34 = vperm.slane %v4303_v5, 1 }
 0x21e   :  { %v175_v37 = vmul.f32 1.442695, %v174_v35  ;;  %v355_v35 = vld [vmem:[%s6839_s5 + $0x108] sm:$0x1] }
 0x21f   :  { %3403 = vmatpush.msk.msrb.mxu1 %vm98_vm1, %v355_v35 }
 0x220   :  { %4042 = vpow2.f32 %v175_v37  ;;  %v357_v37 = vld [vmem:[%s6839_s5 + $0x118] sm:$0x1] }
 0x221   :  { %4044 = vpow2.f32 %v169_v36  ;;  %v356_v36 = vld [vmem:[%s6839_s5 + $0x110] sm:$0x1] }
 0x222   :  { %3405 = vmatpush.msk.msrb.mxu2 %vm98_vm1, %v356_v36  ;;  %v320_v36 = vperm.slane %v4303_v5, 2 }
 0x226   :  { %v4043_v39 = vpop.eup %4042 }
 0x227   :  { %v178_v40 = vrot.slane %v4043_v39, 2  ;;  %v4045_v41 = vpop.eup %4044 }
 0x229   :  { %v180_v43 = vadd.f32 %v4045_v41, %v178_v40  ;;  %v347_v40 = vld [vmem:[%s6839_s5 + $0xc8] sm:$0xff] }
 0x22a   :  { %439 = vmatpush.msrb.mxu1 %v347_v40 }
 0x22b   :  { %4046 = vrcp.f32 %v180_v43  ;;  %v192_v47 = vand.u32 2147483648, %v180_v43  ;;  %v190_v49 = vand.u32 2147483647, %v180_v43  ;;  %vm186_vm6 = vweird.f32 %v180_v43 }
 0x22d   :  { %v193_v51 = vor.u32 1.1754944e-38, %v192_v47  ;;  %vm191_vm8 = vcmp.eq.f32.partialorder %v190_v49, 8.507059e+37  ;;  %v330_v47 = vld [vmem:[%s6839_s5 + $0x40] sm:$0xff]  ;;  %v332_v49 = vld [vmem:[%s6839_s5 + $0x50] sm:$0xff] }
 0x231   :  { %v4047_v44 = vpop.eup %4046 }
 0x232   :  { %v182_v45 = vmul.f32 %v4047_v44, %v180_v43  ;;  %vm187_vm5 = vweird.f32 %v4047_v44  ;;  %v338_v43 = vld [vmem:[%s6839_s5 + $0x80] sm:$0xff] }
 0x233   :  { %vm188_vm7 = vmor %vm186_vm6, %vm187_vm5 }
 0x234   :  { %v183_v46 = vsub.f32 1.0, %v182_v45  ;;  %v340_v45 = vld [vmem:[%s6839_s5 + $0x90] sm:$0xff] }
 0x236   :  { %v184_v48 = vmul.f32 %v4047_v44, %v183_v46  ;;  %v341_v46 = vld [vmem:[%s6839_s5 + $0x98] sm:$0xff] }
 0x238   :  { %v185_v50 = vadd.f32 %v4047_v44, %v184_v48  ;;  %v331_v48 = vld [vmem:[%s6839_s5 + $0x48] sm:$0xff] }
 0x23a   :  { %v189_v52 = vsel %vm188_vm7, %v4047_v44, %v185_v50  ;;  %v339_v44 = vld [vmem:[%s6839_s5 + $0x88] sm:$0xff]  ;;  %v333_v50 = vld [vmem:[%s6839_s5 + $0x58] sm:$0xff] }
 0x23b   :  { %v194_v53 = vsel %vm191_vm8, %v193_v51, %v189_v52  ;;  %440 = vmatpush.msrb.mxu1 %v339_v44  ;;  %v322_v51 = vld [vmem:[%s6839_s5] sm:$0xff]  ;;  %v323_v52 = vld [vmem:[%s6839_s5 + $0x8] sm:$0xff]  ;;  %v589_v44 = vld [vmem:[%s6841_s7 + $0x70] sm:$0xff] }
 0x23c   :  { %v196_v54 = vmul.f32 %v4045_v41, %v194_v53  ;;  %v200_v55 = vrot.slane %v194_v53, 6  ;;  %v348_v41 = vld [vmem:[%s6839_s5 + $0xd0] sm:$0xff] }
 0x23d   :  { %459 = vmatpush.msrb.mxu2 %v348_v41  ;;  %441 = vmatpush.msrb.mxu1 %v331_v48  ;;  %v324_v53 = vld [vmem:[%s6839_s5 + $0x10] sm:$0xff]  ;;  %v590_v41 = vld [vmem:[%s6841_s7 + $0x78] sm:$0xff]  ;;  %v588_v48 = vld [vmem:[%s6841_s7 + $0x68] sm:$0xff] }
 0x23e   :  { %198 = vst.msk [vmem:[#allocation3] sm:$0x3] %vm197_vm9, %v196_v54  ;;  %v202_v56 = vmul.f32 %v4043_v39, %v200_v55  ;;  %v346_v39 = vld [vmem:[%s6839_s5 + $0xc0] sm:$0xff]  ;;  %v325_v54 = vld [vmem:[%s6839_s5 + $0x18] sm:$0xff] }
 0x23f   :  { %419 = vmatpush.msrb.mxu0 %v346_v39  ;;  %460 = vmatpush.msrb.mxu2 %v340_v45  ;;  %v358_v55 = vld [vmem:[%s6839_s5 + $0x120] sm:$0x1]  ;;  %v605_v45 = vld [vmem:[%s6841_s7 + $0xf0] sm:$0xff] }
 0x240   :  { %204 = vst.msk [vmem:[#allocation3] sm:$0xc] %vm203_vm10, %v202_v56  ;;  %442 = vmatpush.msrb.mxu1 %v323_v52  ;;  %v359_v56 = vld [vmem:[%s6839_s5 + $0x128] sm:$0x1]  ;;  %v587_v52 = vld [vmem:[%s6841_s7 + $0x60] sm:$0xff] }
 0x241   :  { %420 = vmatpush.msrb.mxu0 %v338_v43  ;;  %461 = vmatpush.msrb.mxu2 %v332_v49  ;;  %v638_v43 = vld [vmem:[%s6841_s7 + $0x1f8] sm:$0xff]  ;;  %v604_v49 = vld [vmem:[%s6841_s7 + $0xe8] sm:$0xff] }
 0x242   :  { %3411 = vmatpush.msk.msra.mxu1 %vm98_vm1, %v359_v56  ;;  %v586_v56 = vld [vmem:[%s6841_s7 + $0x58] sm:$0xff] }
 0x243   :  { %421 = vmatpush.msrb.mxu0 %v330_v47  ;;  %462 = vmatpush.msrb.mxu2 %v324_v53  ;;  %v637_v47 = vld [vmem:[%s6841_s7 + $0x1f0] sm:$0xff]  ;;  %v603_v53 = vld [vmem:[%s6841_s7 + $0xe0] sm:$0xff] }
 0x245   :  { %422 = vmatpush.msrb.mxu0 %v322_v51  ;;  %v636_v51 = vld [vmem:[%s6841_s7 + $0x1e8] sm:$0xff] }
 0x247   :  { %v205_v57 = vld [vmem:[#allocation3] sm:$0xf]  ;;  %3409 = vmatpush.msk.msra.mxu0 %vm98_vm1, %v358_v55 }
 0x248   :  { %3398 = vmatmul.msk.f32.vlgmr.msra.gmra.mxu3 %vm206_vm11, %v205_v57  ;;  %v360_v57 = vld [vmem:[%s6839_s5 + $0x130] sm:$0x1]  ;;  %v635_v55 = vld [vmem:[%s6841_s7 + $0x1e0] sm:$0xff] }
 0x249   :  { %3407 = vmatpush.msk.msra.mxu3 %vm98_vm1, %v357_v37  ;;  %3413 = vmatpush.msk.msra.mxu2 %vm98_vm1, %v360_v57  ;;  %v602_v57 = vld [vmem:[%s6841_s7 + $0xd8] sm:$0xff] }
 0x24a   :  { %499 = vmatpush.msra.mxu0 %v350_v61  ;;  %v601_v61 = vld [vmem:[%s6841_s7 + $0xd0] sm:$0xff] }
 0x24b   :  { %479 = vmatpush.msra.mxu3 %v349_v42  ;;  %v606_v42 = vld [vmem:[%s6841_s7 + $0xf8] sm:$0xff] }
 0x24d   :  { %480 = vmatpush.msra.mxu3 %v341_v46  ;;  %v621_v46 = vld [vmem:[%s6841_s7 + $0x170] sm:$0xff] }
 0x24f   :  { %481 = vmatpush.msra.mxu3 %v333_v50  ;;  %v620_v50 = vld [vmem:[%s6841_s7 + $0x168] sm:$0xff] }
 0x251   :  { %482 = vmatpush.msra.mxu3 %v325_v54  ;;  %v619_v54 = vld [vmem:[%s6841_s7 + $0x160] sm:$0xff] }
 0x2cb   :  { %v230_v63 = vpop.f32.mrf.mxu3 }
 0x2cc   :  { %v240_v0 = vmul.f32 %v238_v62, %v230_v63  ;;  %v236_v2 = vmul.f32 %v234_v1, %v230_v63  ;;  %v351_v62 = vld [vmem:[%s6839_s5 + $0xe8] sm:$0xff]  ;;  %v352_v63 = vld [vmem:[%s6839_s5 + $0xf0] sm:$0xff] }
 0x2cd   :  { %519 = vmatpush.msra.mxu1 %v351_v62  ;;  %539 = vmatpush.msra.mxu2 %v352_v63  ;;  %v617_v62 = vld [vmem:[%s6841_s7 + $0x150] sm:$0xff] }
 0x2ce   :  { %v242_v3 = vrot.slane %v240_v0, 2  ;;  %v633_v63 = vld [vmem:[%s6841_s7 + $0x1d0] sm:$0xff] }
 0x2d0   :  { %v244_v4 = vadd.f32 %v242_v3, %v236_v2  ;;  %v353_v2 = vld [vmem:[%s6839_s5 + $0xf8] sm:$0xff]  ;;  %v342_v3 = vld [vmem:[%s6839_s5 + $0xa0] sm:$0xff] }
 0x2d1   :  { %500 = vmatpush.msra.mxu0 %v342_v3  ;;  %v632_v3 = vld [vmem:[%s6841_s7 + $0x1c8] sm:$0xff] }
 0x2d2   :  { %3400 = vmatmul.msk.f32.vlgmr.msrb.gmra.mxu3 %vm94_vm3, %v244_v4  ;;  %v343_v4 = vld [vmem:[%s6839_s5 + $0xa8] sm:$0xff] }
 0x2d3   :  { %3415 = vmatpush.msk.msrb.mxu3 %vm98_vm1, %v361_v58  ;;  %520 = vmatpush.msra.mxu1 %v343_v4  ;;  %v618_v58 = vld [vmem:[%s6841_s7 + $0x158] sm:$0xff]  ;;  %v583_v4 = vld [vmem:[%s6841_s7 + $0x40] sm:$0xff] }
 0x2d5   :  { %559 = vmatpush.msrb.mxu3 %v353_v2  ;;  %v616_v2 = vld [vmem:[%s6841_s7 + $0x148] sm:$0xff] }
 0x355   :  { %v274_v7 = vpop.f32.mrf.mxu3 }
 0x356   :  { %v275_v9 = vadd.f32 %v274_v7, %v250_v6  ;;  %v344_v6 = vld [vmem:[%s6839_s5 + $0xb0] sm:$0xff]  ;;  %v345_v7 = vld [vmem:[%s6839_s5 + $0xb8] sm:$0xff] }
 0x357   :  { %540 = vmatpush.msra.mxu2 %v344_v6  ;;  %560 = vmatpush.msrb.mxu3 %v345_v7  ;;  %v599_v6 = vld [vmem:[%s6841_s7 + $0xc0] sm:$0xff] }
 0x358   :  { %v277_v11 = vadd.f32 %v275_v9, %v83_v14  ;;  %v334_v9 = vld [vmem:[%s6839_s5 + $0x60] sm:$0xff] }
 0x359   :  { %501 = vmatpush.msra.mxu0 %v334_v9  ;;  %v615_v7 = vld [vmem:[%s6841_s7 + $0x140] sm:$0xff] }
 0x35a   :  { %v279_v12 = vmul.f32 %v4307_v8, %v277_v11  ;;  %v286_v17 = vmul.f32 %v4313_v15, %v277_v11  ;;  %v631_v9 = vld [vmem:[%s6841_s7 + $0x1c0] sm:$0xff] }
 0x35c   :  { %v280_v16 = vsel %vm128_vm4, %v279_v12, 0.0  ;;  %v287_v18 = vsel %vm128_vm4, %v286_v17, 0.0  ;;  %v335_v12 = vld [vmem:[%s6839_s5 + $0x68] sm:$0xff]  ;;  %v337_v17 = vld [vmem:[%s6839_s5 + $0x78] sm:$0xff] }
 0x35d   :  { %281 = vadd.xlane.f32.xlu2 %v280_v16  ;;  %v336_v16 = vld [vmem:[%s6839_s5 + $0x70] sm:$0xff]  ;;  %521 = vmatpush.msra.mxu1 %v335_v12  ;;  %v598_v12 = vld [vmem:[%s6841_s7 + $0xb8] sm:$0xff] }
 0x35e   :  { %541 = vmatpush.msra.mxu2 %v336_v16  ;;  %561 = vmatpush.msrb.mxu3 %v337_v17  ;;  %v614_v16 = vld [vmem:[%s6841_s7 + $0x138] sm:$0xff] }
 0x35f   :  { %v630_v17 = vld [vmem:[%s6841_s7 + $0x1b8] sm:$0xff] }
 0x365   :  { %288 = vadd.xlane.f32.xlu2 %v287_v18  ;;  %v326_v18 = vld [vmem:[%s6839_s5 + $0x20] sm:$0xff] }
 0x366   :  { %502 = vmatpush.msra.mxu0 %v326_v18  ;;  %v581_v18 = vld [vmem:[%s6841_s7 + $0x30] sm:$0xff] }
 0x3d0   :  { %v282_v19 = vpop.xlane.xlu2 %281 }
 0x3d1   :  { %v284_v26 = vmul.f32 %v4319_v25, %v282_v19  ;;  %v327_v19 = vld [vmem:[%s6839_s5 + $0x28] sm:$0xff] }
 0x3d2   :  { %522 = vmatpush.msra.mxu1 %v327_v19  ;;  %v597_v19 = vld [vmem:[%s6841_s7 + $0xb0] sm:$0xff] }
 0x3d8   :  { %v289_v14 = vpop.xlane.xlu2 %288 }
 0x3d9   :  { %v291_v10 = vmul.f32 %v4322_v13, %v289_v14 }
 0x3db   :  { %v292_v27 = vadd.f32 %v291_v10, %v284_v26  ;;  %v328_v26 = vld [vmem:[%s6839_s5 + $0x30] sm:$0xff]  ;;  %v329_v10 = vld [vmem:[%s6839_s5 + $0x38] sm:$0xff] }
 0x3dc   :  { %542 = vmatpush.msra.mxu2 %v328_v26  ;;  %562 = vmatpush.msrb.mxu3 %v329_v10  ;;  %v629_v26 = vld [vmem:[%s6841_s7 + $0x1b0] sm:$0xff]  ;;  %v580_v10 = vld [vmem:[%s6841_s7 + $0x28] sm:$0xff] }
 0x3dd   :  { %v4326_v28 = vsub.f32 %v277_v11, %v292_v27 }
 0x3df   :  { %v294_v29 = vmul.f32 %v4326_v28, %v4326_v28 }
 0x3e1   :  { %v300_v30 = vmul.f32 %v294_v29, %v4313_v15  ;;  %v295_v31 = vmul.f32 %v294_v29, %v4307_v8 }
 0x3e3   :  { %v301_v32 = vsel %vm128_vm4, %v300_v30, 0.0  ;;  %v296_v33 = vsel %vm128_vm4, %v295_v31, 0.0 }
 0x3e4   :  { %302 = vadd.xlane.f32.xlu1 %v301_v32  ;;  %297 = vadd.xlane.f32.xlu0 %v296_v33 }
 0x457   :  { %v303_v59 = vpop.xlane.xlu1 %302  ;;  %v298_v60 = vpop.xlane.xlu0 %297 }
 0x458   :  { %v304_v0 = vmul.f32 %v303_v59, %v4322_v13  ;;  %v299_v1 = vmul.f32 %v298_v60, %v4319_v25  ;;  %v634_v59 = vld [vmem:[%s6841_s7 + $0x1d8] sm:$0xff]  ;;  %v585_v60 = vld [vmem:[%s6841_s7 + $0x50] sm:$0xff] }
 0x45a   :  { %v305_v11 = vadd.f32 %v304_v0, %v299_v1  ;;  %v584_v0 = vld [vmem:[%s6841_s7 + $0x48] sm:$0xff] }
 0x45b   :  { %v600_v1 = vld [vmem:[%s6841_s7 + $0xc8] sm:$0xff] }
 0x45c   :  { %v306_v14 = vadd.f32 1e-05, %v305_v11  ;;  %v582_v11 = vld [vmem:[%s6841_s7 + $0x38] sm:$0xff] }
 0x45e   :  { %4048 = vrsqrt.f32 %v306_v14  ;;  %vm313_vm13 = vweird.f32 %v306_v14 }
 0x464   :  { %v4049_v27 = vpop.eup %4048 }
 0x465   :  { %v308_v29 = vmul.f32 %v4049_v27, %v306_v14  ;;  %vm314_vm12 = vweird.f32 %v4049_v27  ;;  %v613_v14 = vld [vmem:[%s6841_s7 + $0x130] sm:$0xff] }
 0x466   :  { %vm315_vm14 = vmor %vm313_vm13, %vm314_vm12 }
 0x467   :  { %v309_v30 = vmul.f32 %v4049_v27, %v308_v29  ;;  %v612_v29 = vld [vmem:[%s6841_s7 + $0x128] sm:$0xff] }
 0x469   :  { %v310_v31 = vmul.f32 0.5, %v309_v30  ;;  %v628_v30 = vld [vmem:[%s6841_s7 + $0x1a8] sm:$0xff] }
 0x46b   :  { %v311_v32 = vsub.f32 1.5, %v310_v31  ;;  %v579_v31 = vld [vmem:[%s6841_s7 + $0x20] sm:$0xff] }
 0x46d   :  { %v312_v33 = vmul.f32 %v4049_v27, %v311_v32  ;;  %v595_v32 = vld [vmem:[%s6841_s7 + $0xa0] sm:$0xff] }
 0x46f   :  { %v316_v35 = vsel %vm315_vm14, %v4049_v27, %v312_v33  ;;  %v596_v27 = vld [vmem:[%s6841_s7 + $0xa8] sm:$0xff]  ;;  %v611_v33 = vld [vmem:[%s6841_s7 + $0x120] sm:$0xff] }
 0x470   :  { %v317_v37 = vmul.f32 %v316_v35, %v4326_v28  ;;  %v622_v28 = vld [vmem:[%s6841_s7 + $0x178] sm:$0xff] }
 0x471   :  { %v578_v35 = vld [vmem:[%s6841_s7 + $0x18] sm:$0xff] }
 0x472   :  { %v319_v39 = vmul.f32 %v318_v34, %v317_v37  ;;  %v627_v34 = vld [vmem:[%s6841_s7 + $0x1a0] sm:$0xff]  ;;  %v610_v37 = vld [vmem:[%s6841_s7 + $0x118] sm:$0xff] }
 0x474   :  { %v4467_v40 = vadd.f32 %v320_v36, %v319_v39  ;;  %v594_v36 = vld [vmem:[%s6841_s7 + $0x98] sm:$0xff] }
 0x475   :  { %v626_v39 = vld [vmem:[%s6841_s7 + $0x198] sm:$0xff] }
 0x476   :  { %3402 = vmatmul.msk.f32.vlgmr.msrb.gmra.mxu0 %vm94_vm3, %v4467_v40  ;;  %3404 = vmatmul.msk.f32.vlgmr.msrb.gmra.mxu1 %vm94_vm3, %v4467_v40 }
 0x477   :  { %3406 = vmatmul.msk.f32.vlgmr.msrb.gmra.mxu2 %vm94_vm3, %v4467_v40  ;;  %3408 = vmatmul.msk.f32.vlgmr.msra.gmra.mxu3 %vm94_vm3, %v4467_v40 }
 0x478   :  { %704 = vmatpush.msrb.mxu0 %v590_v41  ;;  %724 = vmatpush.msrb.mxu1 %v606_v42  ;;  %v577_v41 = vld [vmem:[%s6841_s7 + $0x10] sm:$0xff] }
 0x479   :  { %744 = vmatpush.msrb.mxu2 %v622_v28  ;;  %764 = vmatpush.msra.mxu3 %v638_v43  ;;  %v593_v42 = vld [vmem:[%s6841_s7 + $0x90] sm:$0xff] }
 0x47a   :  { %705 = vmatpush.msrb.mxu0 %v589_v44  ;;  %725 = vmatpush.msrb.mxu1 %v605_v45  ;;  %v609_v28 = vld [vmem:[%s6841_s7 + $0x110] sm:$0xff]  ;;  %v576_v44 = vld [vmem:[%s6841_s7 + $0x8] sm:$0xff] }
 0x47b   :  { %745 = vmatpush.msrb.mxu2 %v621_v46  ;;  %765 = vmatpush.msra.mxu3 %v637_v47  ;;  %v625_v43 = vld [vmem:[%s6841_s7 + $0x190] sm:$0xff]  ;;  %v592_v45 = vld [vmem:[%s6841_s7 + $0x88] sm:$0xff] }
 0x47c   :  { %706 = vmatpush.msrb.mxu0 %v588_v48  ;;  %726 = vmatpush.msrb.mxu1 %v604_v49  ;;  %v608_v46 = vld [vmem:[%s6841_s7 + $0x108] sm:$0xff]  ;;  %v575_v48 = vld [vmem:[%s6841_s7] sm:$0xff] }
 0x47d   :  { %746 = vmatpush.msrb.mxu2 %v620_v50  ;;  %766 = vmatpush.msra.mxu3 %v636_v51  ;;  %v624_v47 = vld [vmem:[%s6841_s7 + $0x188] sm:$0xff]  ;;  %v591_v49 = vld [vmem:[%s6841_s7 + $0x80] sm:$0xff]  ;;  %v654_v50 = vld [vmem:[%s6841_s7 + $0x278] sm:$0xff] }
 0x47e   :  { %3410 = vmatmul.msk.f32.vlgmr.msra.gmra.mxu0 %vm94_vm3, %v4467_v40  ;;  %3412 = vmatmul.msk.f32.vlgmr.msra.gmra.mxu1 %vm94_vm3, %v4467_v40  ;;  %v670_v51 = vld [vmem:[%s6841_s7 + $0x2f8] sm:$0xff] }
 0x47f   :  { %3414 = vmatmul.msk.f32.vlgmr.msra.gmra.mxu2 %vm94_vm3, %v4467_v40  ;;  %3416 = vmatmul.msk.f32.vlgmr.msrb.gmra.mxu3 %vm94_vm3, %v4467_v40 }
 0x480   :  { %707 = vmatpush.msrb.mxu0 %v587_v52  ;;  %727 = vmatpush.msrb.mxu1 %v603_v53  ;;  %v607_v52 = vld [vmem:[%s6841_s7 + $0x100] sm:$0xff] }
 0x481   :  { %747 = vmatpush.msrb.mxu2 %v619_v54  ;;  %767 = vmatpush.msra.mxu3 %v635_v55  ;;  %v623_v53 = vld [vmem:[%s6841_s7 + $0x180] sm:$0xff]  ;;  %v653_v54 = vld [vmem:[%s6841_s7 + $0x270] sm:$0xff] }
 0x482   :  { %708 = vmatpush.msrb.mxu0 %v586_v56  ;;  %728 = vmatpush.msrb.mxu1 %v602_v57  ;;  %v669_v55 = vld [vmem:[%s6841_s7 + $0x2f0] sm:$0xff]  ;;  %v686_v56 = vld [vmem:[%s6841_s7 + $0x378] sm:$0xff] }
 0x483   :  { %748 = vmatpush.msrb.mxu2 %v618_v58  ;;  %768 = vmatpush.msra.mxu3 %v634_v59  ;;  %v702_v57 = vld [vmem:[%s6841_s7 + $0x3f8] sm:$0xff]  ;;  %v652_v58 = vld [vmem:[%s6841_s7 + $0x268] sm:$0xff] }
 0x484   :  { %709 = vmatpush.msrb.mxu0 %v585_v60  ;;  %729 = vmatpush.msrb.mxu1 %v601_v61  ;;  %v668_v59 = vld [vmem:[%s6841_s7 + $0x2e8] sm:$0xff]  ;;  %v685_v60 = vld [vmem:[%s6841_s7 + $0x370] sm:$0xff] }
 0x485   :  { %749 = vmatpush.msrb.mxu2 %v617_v62  ;;  %769 = vmatpush.msra.mxu3 %v633_v63  ;;  %v701_v61 = vld [vmem:[%s6841_s7 + $0x3f0] sm:$0xff]  ;;  %v651_v62 = vld [vmem:[%s6841_s7 + $0x260] sm:$0xff] }
 0x486   :  { %710 = vmatpush.msrb.mxu0 %v584_v0  ;;  %730 = vmatpush.msrb.mxu1 %v600_v1  ;;  %v667_v63 = vld [vmem:[%s6841_s7 + $0x2e0] sm:$0xff]  ;;  %v684_v0 = vld [vmem:[%s6841_s7 + $0x368] sm:$0xff] }
 0x487   :  { %750 = vmatpush.msrb.mxu2 %v616_v2  ;;  %770 = vmatpush.msra.mxu3 %v632_v3  ;;  %v700_v1 = vld [vmem:[%s6841_s7 + $0x3e8] sm:$0xff]  ;;  %v650_v2 = vld [vmem:[%s6841_s7 + $0x258] sm:$0xff] }
 0x488   :  { %711 = vmatpush.msrb.mxu0 %v583_v4  ;;  %731 = vmatpush.msrb.mxu1 %v599_v6  ;;  %v666_v3 = vld [vmem:[%s6841_s7 + $0x2d8] sm:$0xff]  ;;  %v683_v4 = vld [vmem:[%s6841_s7 + $0x360] sm:$0xff] }
 0x489   :  { %751 = vmatpush.msrb.mxu2 %v615_v7  ;;  %771 = vmatpush.msra.mxu3 %v631_v9  ;;  %v699_v6 = vld [vmem:[%s6841_s7 + $0x3e0] sm:$0xff]  ;;  %v649_v7 = vld [vmem:[%s6841_s7 + $0x250] sm:$0xff] }
 0x48a   :  { %712 = vmatpush.msrb.mxu0 %v582_v11  ;;  %732 = vmatpush.msrb.mxu1 %v598_v12  ;;  %v665_v9 = vld [vmem:[%s6841_s7 + $0x2d0] sm:$0xff]  ;;  %v682_v11 = vld [vmem:[%s6841_s7 + $0x358] sm:$0xff] }
 0x48b   :  { %752 = vmatpush.msrb.mxu2 %v614_v16  ;;  %772 = vmatpush.msra.mxu3 %v630_v17  ;;  %v698_v12 = vld [vmem:[%s6841_s7 + $0x3d8] sm:$0xff]  ;;  %v648_v16 = vld [vmem:[%s6841_s7 + $0x248] sm:$0xff] }
 0x48c   :  { %713 = vmatpush.msrb.mxu0 %v581_v18  ;;  %733 = vmatpush.msrb.mxu1 %v597_v19  ;;  %v664_v17 = vld [vmem:[%s6841_s7 + $0x2c8] sm:$0xff]  ;;  %v681_v18 = vld [vmem:[%s6841_s7 + $0x350] sm:$0xff] }
 0x48d   :  { %753 = vmatpush.msrb.mxu2 %v613_v14  ;;  %773 = vmatpush.msra.mxu3 %v629_v26  ;;  %v697_v19 = vld [vmem:[%s6841_s7 + $0x3d0] sm:$0xff]  ;;  %v647_v14 = vld [vmem:[%s6841_s7 + $0x240] sm:$0xff] }
 0x48e   :  { %714 = vmatpush.msrb.mxu0 %v580_v10  ;;  %734 = vmatpush.msrb.mxu1 %v596_v27  ;;  %v663_v26 = vld [vmem:[%s6841_s7 + $0x2c0] sm:$0xff]  ;;  %v646_v10 = vld [vmem:[%s6841_s7 + $0x238] sm:$0xff] }
 0x48f   :  { %754 = vmatpush.msrb.mxu2 %v612_v29  ;;  %774 = vmatpush.msra.mxu3 %v628_v30  ;;  %v662_v27 = vld [vmem:[%s6841_s7 + $0x2b8] sm:$0xff]  ;;  %v645_v29 = vld [vmem:[%s6841_s7 + $0x230] sm:$0xff] }
 0x490   :  { %715 = vmatpush.msrb.mxu0 %v579_v31  ;;  %735 = vmatpush.msrb.mxu1 %v595_v32  ;;  %v661_v30 = vld [vmem:[%s6841_s7 + $0x2b0] sm:$0xff]  ;;  %v680_v31 = vld [vmem:[%s6841_s7 + $0x348] sm:$0xff] }
 0x491   :  { %755 = vmatpush.msrb.mxu2 %v611_v33  ;;  %775 = vmatpush.msra.mxu3 %v627_v34  ;;  %v696_v32 = vld [vmem:[%s6841_s7 + $0x3c8] sm:$0xff] }
 0x492   :  { %716 = vmatpush.msrb.mxu0 %v578_v35  ;;  %736 = vmatpush.msrb.mxu1 %v594_v36  ;;  %v644_v33 = vld [vmem:[%s6841_s7 + $0x228] sm:$0xff]  ;;  %v679_v35 = vld [vmem:[%s6841_s7 + $0x340] sm:$0xff] }
 0x493   :  { %756 = vmatpush.msrb.mxu2 %v610_v37  ;;  %776 = vmatpush.msra.mxu3 %v626_v39  ;;  %v660_v34 = vld [vmem:[%s6841_s7 + $0x2a8] sm:$0xff]  ;;  %v695_v36 = vld [vmem:[%s6841_s7 + $0x3c0] sm:$0xff] }
 0x494   :  { %717 = vmatpush.msrb.mxu0 %v577_v41  ;;  %737 = vmatpush.msrb.mxu1 %v593_v42  ;;  %v643_v37 = vld [vmem:[%s6841_s7 + $0x220] sm:$0xff]  ;;  %v678_v41 = vld [vmem:[%s6841_s7 + $0x338] sm:$0xff] }
 0x495   :  { %757 = vmatpush.msrb.mxu2 %v609_v28  ;;  %777 = vmatpush.msra.mxu3 %v625_v43  ;;  %v659_v39 = vld [vmem:[%s6841_s7 + $0x2a0] sm:$0xff]  ;;  %v694_v42 = vld [vmem:[%s6841_s7 + $0x3b8] sm:$0xff] }
 0x496   :  { %718 = vmatpush.msrb.mxu0 %v576_v44  ;;  %738 = vmatpush.msrb.mxu1 %v592_v45  ;;  %v642_v28 = vld [vmem:[%s6841_s7 + $0x218] sm:$0xff]  ;;  %v677_v44 = vld [vmem:[%s6841_s7 + $0x330] sm:$0xff] }
 0x497   :  { %758 = vmatpush.msrb.mxu2 %v608_v46  ;;  %778 = vmatpush.msra.mxu3 %v624_v47  ;;  %v658_v43 = vld [vmem:[%s6841_s7 + $0x298] sm:$0xff]  ;;  %v693_v45 = vld [vmem:[%s6841_s7 + $0x3b0] sm:$0xff] }
 0x498   :  { %719 = vmatpush.msrb.mxu0 %v575_v48  ;;  %739 = vmatpush.msrb.mxu1 %v591_v49  ;;  %v641_v46 = vld [vmem:[%s6841_s7 + $0x210] sm:$0xff]  ;;  %v676_v48 = vld [vmem:[%s6841_s7 + $0x328] sm:$0xff] }
 0x499   :  { %759 = vmatpush.msrb.mxu2 %v607_v52  ;;  %779 = vmatpush.msra.mxu3 %v623_v53  ;;  %v657_v47 = vld [vmem:[%s6841_s7 + $0x290] sm:$0xff]  ;;  %v692_v49 = vld [vmem:[%s6841_s7 + $0x3a8] sm:$0xff]  ;;  %v675_v52 = vld [vmem:[%s6841_s7 + $0x320] sm:$0xff] }
 0x49a   :  { %784 = vmatpush.msra.mxu0 %v654_v50  ;;  %804 = vmatpush.msra.mxu1 %v670_v51  ;;  %v640_v50 = vld [vmem:[%s6841_s7 + $0x208] sm:$0xff]  ;;  %v691_v53 = vld [vmem:[%s6841_s7 + $0x3a0] sm:$0xff] }
 0x49b   :  { %824 = vmatpush.msra.mxu2 %v686_v56  ;;  %844 = vmatpush.msrb.mxu3 %v702_v57  ;;  %v656_v51 = vld [vmem:[%s6841_s7 + $0x288] sm:$0xff]  ;;  %v674_v56 = vld [vmem:[%s6841_s7 + $0x318] sm:$0xff] }
 0x49c   :  { %785 = vmatpush.msra.mxu0 %v653_v54  ;;  %805 = vmatpush.msra.mxu1 %v669_v55  ;;  %v639_v54 = vld [vmem:[%s6841_s7 + $0x200] sm:$0xff]  ;;  %v690_v57 = vld [vmem:[%s6841_s7 + $0x398] sm:$0xff] }
 0x49d   :  { %825 = vmatpush.msra.mxu2 %v685_v60  ;;  %845 = vmatpush.msrb.mxu3 %v701_v61  ;;  %v655_v55 = vld [vmem:[%s6841_s7 + $0x280] sm:$0xff]  ;;  %v672_v60 = vld [vmem:[%s6841_s7 + $0x308] sm:$0xff] }
 0x49e   :  { %786 = vmatpush.msra.mxu0 %v652_v58  ;;  %806 = vmatpush.msra.mxu1 %v668_v59  ;;  %v673_v58 = vld [vmem:[%s6841_s7 + $0x310] sm:$0xff]  ;;  %v688_v61 = vld [vmem:[%s6841_s7 + $0x388] sm:$0xff] }
 0x49f   :  { %826 = vmatpush.msra.mxu2 %v684_v0  ;;  %846 = vmatpush.msrb.mxu3 %v700_v1  ;;  %v689_v59 = vld [vmem:[%s6841_s7 + $0x390] sm:$0xff]  ;;  %v362_v0 = vld [vmem:[%s6840_s6] sm:$0xff] }
 0x4a0   :  { %787 = vmatpush.msra.mxu0 %v651_v62  ;;  %807 = vmatpush.msra.mxu1 %v667_v63  ;;  %v671_v62 = vld [vmem:[%s6841_s7 + $0x300] sm:$0xff]  ;;  %v364_v1 = vperm.slane %v362_v0, 0 }
 0x4a1   :  { %827 = vmatpush.msra.mxu2 %v683_v4  ;;  %847 = vmatpush.msrb.mxu3 %v699_v6  ;;  %v687_v63 = vld [vmem:[%s6841_s7 + $0x380] sm:$0xff] }
 0x4a2   :  { %788 = vmatpush.msra.mxu0 %v650_v2  ;;  %808 = vmatpush.msra.mxu1 %v666_v3  ;;  %v365_v2 = vperm.slane %v362_v0, 1 }
 0x4a3   :  { %828 = vmatpush.msra.mxu2 %v682_v11  ;;  %848 = vmatpush.msrb.mxu3 %v698_v12  ;;  %v366_v12 = vperm.slane %v362_v0, 2 }
 0x4a4   :  { %789 = vmatpush.msra.mxu0 %v649_v7  ;;  %809 = vmatpush.msra.mxu1 %v665_v9 }
 0x4a5   :  { %829 = vmatpush.msra.mxu2 %v681_v18  ;;  %849 = vmatpush.msrb.mxu3 %v697_v19  ;;  %v369_v18 = vperm.slane %v362_v0, 5 }
 0x4a6   :  { %790 = vmatpush.msra.mxu0 %v648_v16  ;;  %810 = vmatpush.msra.mxu1 %v664_v17  ;;  %v367_v16 = vperm.slane %v362_v0, 3  ;;  %v368_v17 = vperm.slane %v362_v0, 4 }
 0x4a7   :  { %830 = vmatpush.msra.mxu2 %v680_v31  ;;  %850 = vmatpush.msrb.mxu3 %v696_v32 }
 0x4a8   :  { %791 = vmatpush.msra.mxu0 %v647_v14  ;;  %811 = vmatpush.msra.mxu1 %v663_v26 }
 0x4a9   :  { %831 = vmatpush.msra.mxu2 %v679_v35  ;;  %851 = vmatpush.msrb.mxu3 %v695_v36  ;;  %v370_v36 = vperm.slane %v362_v0, 6 }
 0x4aa   :  { %792 = vmatpush.msra.mxu0 %v646_v10  ;;  %812 = vmatpush.msra.mxu1 %v662_v27 }
 0x4ab   :  { %832 = vmatpush.msra.mxu2 %v678_v41  ;;  %852 = vmatpush.msrb.mxu3 %v694_v42 }
 0x4ac   :  { %793 = vmatpush.msra.mxu0 %v645_v29  ;;  %813 = vmatpush.msra.mxu1 %v661_v30 }
 0x4ad   :  { %833 = vmatpush.msra.mxu2 %v677_v44  ;;  %853 = vmatpush.msrb.mxu3 %v693_v45 }
 0x4ae   :  { %794 = vmatpush.msra.mxu0 %v644_v33  ;;  %814 = vmatpush.msra.mxu1 %v660_v34 }
 0x4af   :  { %834 = vmatpush.msra.mxu2 %v676_v48  ;;  %854 = vmatpush.msrb.mxu3 %v692_v49 }
 0x4b0   :  { %795 = vmatpush.msra.mxu0 %v643_v37  ;;  %815 = vmatpush.msra.mxu1 %v659_v39 }
 0x4b1   :  { %835 = vmatpush.msra.mxu2 %v675_v52  ;;  %855 = vmatpush.msrb.mxu3 %v691_v53 }
 0x4b2   :  { %796 = vmatpush.msra.mxu0 %v642_v28  ;;  %816 = vmatpush.msra.mxu1 %v658_v43  ;;  %v703_v28 = vperm.slane %v4303_v5, 3 }
 0x4b3   :  { %836 = vmatpush.msra.mxu2 %v674_v56  ;;  %856 = vmatpush.msrb.mxu3 %v690_v57 }
 0x4b4   :  { %797 = vmatpush.msra.mxu0 %v641_v46  ;;  %817 = vmatpush.msra.mxu1 %v657_v47 }
 0x4b5   :  { %837 = vmatpush.msra.mxu2 %v673_v58  ;;  %857 = vmatpush.msrb.mxu3 %v689_v59 }
 0x4b6   :  { %798 = vmatpush.msra.mxu0 %v640_v50  ;;  %818 = vmatpush.msra.mxu1 %v656_v51 }
 0x4b7   :  { %838 = vmatpush.msra.mxu2 %v672_v60  ;;  %858 = vmatpush.msrb.mxu3 %v688_v61 }
 0x4b8   :  { %799 = vmatpush.msra.mxu0 %v639_v54  ;;  %819 = vmatpush.msra.mxu1 %v655_v55 }
 0x4b9   :  { %839 = vmatpush.msra.mxu2 %v671_v62  ;;  %859 = vmatpush.msrb.mxu3 %v687_v63 }
 0x4f3   :  { %v424_v3 = vpop.f32.mrf.mxu0  ;;  %v444_v4 = vpop.f32.mrf.mxu1 }
 0x4f4   :  { %v425_v6 = vadd.f32 %v424_v3, %v364_v1  ;;  %v445_v7 = vadd.f32 %v444_v4, %v365_v2 }
 0x4f6   :  { %v567_v9 = vmax.f32 %v425_v6, 0.0  ;;  %v568_v11 = vmax.f32 %v445_v7, 0.0 }
 0x4f8   :  { %720 = vmatmul.f32.vlgmr.msrb.gmra.mxu0 %v567_v9  ;;  %740 = vmatmul.f32.vlgmr.msrb.gmra.mxu1 %v568_v11  ;;  %v3422_v9 = vld [vmem:[%s6836_s2 + $0x48] sm:$0x1]  ;;  %v3421_v11 = vld [vmem:[%s6836_s2 + $0x40] sm:$0xff] }
 0x4f9   :  { %3426 = vmatpush.msk.msrb.mxu1 %vm98_vm1, %v4242_v20  ;;  %v371_v20 = vperm.slane %v362_v0, 7  ;;  %3424 = vmatpush.msk.msrb.mxu0 %vm98_vm1, %v3422_v9  ;;  %v3433_v9 = vld [vmem:[%s6838_s4 + $0x40] sm:$0xff] }
 0x4fa   :  { %v464_v19 = vpop.f32.mrf.mxu2  ;;  %v484_v14 = vpop.f32.mrf.mxu3 }
 0x4fb   :  { %v465_v26 = vadd.f32 %v464_v19, %v366_v12  ;;  %v485_v10 = vadd.f32 %v484_v14, %v367_v16  ;;  %v504_v27 = vpop.f32.mrf.mxu0  ;;  %v524_v29 = vpop.f32.mrf.mxu1  ;;  %974 = vmatpush.msrb.mxu1 %v4249_v21  ;;  %936 = vmatpush.msrb.mxu0 %v3421_v11  ;;  %v3420_v16 = vld [vmem:[%s6836_s2 + $0x38] sm:$0xff] }
 0x4fc   :  { %v505_v30 = vadd.f32 %v504_v27, %v368_v17  ;;  %v525_v31 = vadd.f32 %v524_v29, %v369_v18  ;;  %v3419_v17 = vld [vmem:[%s6836_s2 + $0x30] sm:$0xff]  ;;  %v3418_v18 = vld [vmem:[%s6836_s2 + $0x28] sm:$0xff]  ;;  %v3432_v11 = vld [vmem:[%s6838_s4 + $0x38] sm:$0xff] }
 0x4fd   :  { %v569_v32 = vmax.f32 %v465_v26, 0.0  ;;  %v570_v33 = vmax.f32 %v485_v10, 0.0  ;;  %975 = vmatpush.msrb.mxu1 %v4254_v22  ;;  %937 = vmatpush.msrb.mxu0 %v3420_v16  ;;  %v3430_v16 = vld [vmem:[%s6838_s4 + $0x28] sm:$0xff] }
 0x4fe   :  { %v571_v34 = vmax.f32 %v505_v30, 0.0  ;;  %v572_v35 = vmax.f32 %v525_v31, 0.0 }
 0x4ff   :  { %760 = vmatmul.f32.vlgmr.msrb.gmra.mxu2 %v569_v32  ;;  %780 = vmatmul.f32.vlgmr.msra.gmra.mxu3 %v570_v33 }
 0x500   :  { %800 = vmatmul.f32.vlgmr.msra.gmra.mxu0 %v571_v34  ;;  %820 = vmatmul.f32.vlgmr.msra.gmra.mxu1 %v572_v35  ;;  %v901_v35 = vperm.slane %v4303_v5, 4 }
 0x501   :  { %976 = vmatpush.msrb.mxu1 %v4260_v23  ;;  %3428 = vmatpush.msk.msrb.mxu2 %vm59_vm0, %v4276_v38 }
 0x502   :  { %v544_v21 = vpop.f32.mrf.mxu2  ;;  %v564_v37 = vpop.f32.mrf.mxu3  ;;  %938 = vmatpush.msrb.mxu0 %v3419_v17 }
 0x503   :  { %v545_v39 = vadd.f32 %v544_v21, %v370_v36  ;;  %v565_v41 = vadd.f32 %v564_v37, %v371_v20  ;;  %977 = vmatpush.msrb.mxu1 %v4266_v24  ;;  %v903_v21 = vperm.slane %v4303_v5, 5 }
 0x504   :  { %939 = vmatpush.msrb.mxu0 %v3418_v18 }
 0x505   :  { %v573_v22 = vmax.f32 %v545_v39, 0.0  ;;  %v574_v42 = vmax.f32 %v565_v41, 0.0  ;;  %v4038_v41 = vld [vmem:[%s6837_s3 + $0x1] ss:$0 sm:$0xff] }
 0x507   :  { %840 = vmatmul.f32.vlgmr.msra.gmra.mxu2 %v573_v22  ;;  %860 = vmatmul.f32.vlgmr.msrb.gmra.mxu3 %v574_v42 }
 0x575   :  { %v721_v43 = vpop.f32.mrf.mxu0  ;;  %v741_v45 = vpop.f32.mrf.mxu1 }
 0x576   :  { %v722_v44 = vadd.f32 %v721_v43, %v703_v28 }
 0x578   :  { %v742_v46 = vadd.f32 %v741_v45, %v722_v44 }
 0x57d   :  { %v801_v49 = vpop.f32.mrf.mxu0  ;;  %v821_v51 = vpop.f32.mrf.mxu1 }
 0x582   :  { %v761_v23 = vpop.f32.mrf.mxu2  ;;  %v781_v47 = vpop.f32.mrf.mxu3 }
 0x583   :  { %v762_v48 = vadd.f32 %v761_v23, %v742_v46 }
 0x585   :  { %v782_v38 = vadd.f32 %v781_v47, %v762_v48 }
 0x587   :  { %v802_v50 = vadd.f32 %v801_v49, %v782_v38 }
 0x589   :  { %v822_v52 = vadd.f32 %v821_v51, %v802_v50 }
 0x58a   :  { %v841_v53 = vpop.f32.mrf.mxu2  ;;  %v861_v54 = vpop.f32.mrf.mxu3 }
 0x58b   :  { %v842_v24 = vadd.f32 %v841_v53, %v822_v52 }
 0x58d   :  { %v862_v55 = vadd.f32 %v861_v54, %v842_v24 }
 0x58f   :  { %v864_v56 = vadd.f32 %v862_v55, %v4467_v40 }
 0x591   :  { %v865_v57 = vmul.f32 %v864_v56, %v4307_v8  ;;  %v870_v59 = vmul.f32 %v864_v56, %v4313_v15 }
 0x593   :  { %v866_v58 = vsel %vm128_vm4, %v865_v57, 0.0  ;;  %v871_v60 = vsel %vm128_vm4, %v870_v59, 0.0 }
 0x594   :  { %867 = vadd.xlane.f32.xlu2 %v866_v58 }
 0x59c   :  { %872 = vadd.xlane.f32.xlu2 %v871_v60 }
 0x607   :  { %v868_v61 = vpop.xlane.xlu2 %867 }
 0x608   :  { %v869_v63 = vmul.f32 %v868_v61, %v4319_v25 }
 0x60f   :  { %v873_v62 = vpop.xlane.xlu2 %872 }
 0x610   :  { %v874_v0 = vmul.f32 %v873_v62, %v4322_v13 }
 0x612   :  { %v875_v1 = vadd.f32 %v874_v0, %v869_v63 }
 0x614   :  { %v876_v2 = vsub.f32 %v864_v56, %v875_v1  ;;  %v3434_v56 = vld [vmem:[%s6838_s4 + $0x48] sm:$0x1] }
 0x615   :  { %3435 = vmatpush.msk.msra.mxu3 %vm98_vm1, %v3434_v56  ;;  %v3446_v56 = vld [vmem:[%s6839_s5 + $0x188] sm:$0xff] }
 0x616   :  { %v877_v3 = vmul.f32 %v876_v2, %v876_v2 }
 0x617   :  { %1082 = vmatpush.msra.mxu3 %v3433_v9 }
 0x618   :  { %v878_v40 = vmul.f32 %v877_v3, %v4307_v8  ;;  %v883_v6 = vmul.f32 %v877_v3, %v4313_v15 }
 0x619   :  { %1083 = vmatpush.msra.mxu3 %v3432_v11 }
 0x61a   :  { %v879_v4 = vsel %vm128_vm4, %v878_v40, 0.0  ;;  %v884_v7 = vsel %vm128_vm4, %v883_v6, 0.0 }
 0x61b   :  { %880 = vadd.xlane.f32.xlu2 %v879_v4 }
 0x623   :  { %885 = vadd.xlane.f32.xlu2 %v884_v7 }
 0x68e   :  { %v881_v12 = vpop.xlane.xlu2 %880 }
 0x68f   :  { %v882_v14 = vmul.f32 %v881_v12, %v4319_v25  ;;  %v3431_v12 = vld [vmem:[%s6838_s4 + $0x30] sm:$0xff] }
 0x690   :  { %1084 = vmatpush.msra.mxu3 %v3431_v12  ;;  %v3468_v12 = vld [vmem:[%s6839_s5 + $0x238] sm:$0xff] }
 0x692   :  { %1085 = vmatpush.msra.mxu3 %v3430_v16  ;;  %v3457_v16 = vld [vmem:[%s6839_s5 + $0x1e0] sm:$0xff] }
 0x696   :  { %v886_v19 = vpop.xlane.xlu2 %885 }
 0x697   :  { %v887_v26 = vmul.f32 %v886_v19, %v4322_v13 }
 0x699   :  { %v888_v10 = vadd.f32 %v887_v26, %v882_v14 }
 0x69b   :  { %v889_v27 = vadd.f32 1e-05, %v888_v10 }
 0x69d   :  { %4050 = vrsqrt.f32 %v889_v27  ;;  %vm896_vm2 = vweird.f32 %v889_v27 }
 0x6a3   :  { %v4051_v29 = vpop.eup %4050 }
 0x6a4   :  { %v891_v30 = vmul.f32 %v4051_v29, %v889_v27  ;;  %vm897_vm15 = vweird.f32 %v4051_v29 }
 0x6a5   :  { %vm898_vm5 = vmor %vm896_vm2, %vm897_vm15 }
 0x6a6   :  { %v892_v31 = vmul.f32 %v4051_v29, %v891_v30 }
 0x6a8   :  { %v893_v32 = vmul.f32 0.5, %v892_v31 }
 0x6aa   :  { %v894_v33 = vsub.f32 1.5, %v893_v32 }
 0x6ac   :  { %v895_v34 = vmul.f32 %v4051_v29, %v894_v33 }
 0x6ae   :  { %v899_v36 = vsel %vm898_vm5, %v4051_v29, %v895_v34  ;;  %v4949_v29 = vld [vmem:[%s6842_s8 + $0x8] sm:$0x3f] }
 0x6af   :  { %v900_v20 = vmul.f32 %v899_v36, %v876_v2  ;;  %v1063_v30 = vperm.slane %v4949_v29, 0 }
 0x6b1   :  { %v902_v37 = vmul.f32 %v901_v35, %v900_v20 }
 0x6b3   :  { %v4912_v39 = vadd.f32 %v903_v21, %v902_v37 }
 0x6b5   :  { %3425 = vmatmul.msk.f32.vlgmr.msrb.gmra.mxu0 %vm94_vm3, %v4912_v39 }
 0x732   :  { %v941_v22 = vpop.f32.mrf.mxu0 }
 0x733   :  { %v942_v42 = vadd.f32 %v4038_v41, %v941_v22 }
 0x735   :  { %v951_v28 = vperm.slane %v942_v42, 1  ;;  %v944_v43 = vperm.slane %v942_v42, 0 }
 0x737   :  { %1049 = vrot.lane.b32.xlu1 %v951_v28, %s4120_s25  ;;  %953 = vrot.lane.b32.xlu0 %v951_v28, %s4121_s26 }
 0x738   :  { %946 = vrot.lane.b32.xlu2 %v944_v43, %s4121_s26 }
 0x740   :  { %1045 = vrot.lane.b32.xlu2 %v944_v43, %s4120_s25 }
 0x792   :  { %v947_v5 = vpop.permute.xlu2 %946 }
 0x793   :  { %v949_v44 = vmul.f32 %v947_v5, %v942_v42 }
 0x795   :  { %950 = vst.msk [vmem:[#allocation2] sm:$0x3] %vm128_vm4, %v949_v44 }
 0x79a   :  { %v1046_v14 = vpop.permute.xlu2 %1045 }
 0x7a9   :  { %v954_v45 = vpop.permute.xlu0 %953  ;;  %v1050_v17 = vpop.permute.xlu1 %1049 }
 0x7aa   :  { %v956_v46 = vmul.f32 %v954_v45, %v942_v42 }
 0x7ac   :  { %957 = vst.msk [vmem:[#allocation2 + $0x2] sm:$0x3] %vm128_vm4, %v956_v46  ;;  %v3469_v46 = vld [vmem:[%s6839_s5 + $0x240] sm:$0x1] }
 0x7ad   :  { %3478 = vmatpush.msk.msra.mxu0 %vm98_vm1, %v3469_v46  ;;  %v3509_v46 = vld [vmem:[%s6841_s7 + $0x478] sm:$0xff] }
 0x7b3   :  { %v958_v23 = vld [vmem:[#allocation2] sm:$0xf] }
 0x7b4   :  { %3427 = vmatmul.msk.f32.vlgmr.msrb.gmra.mxu1 %vm94_vm3, %v958_v23  ;;  %v3470_v23 = vld [vmem:[%s6839_s5 + $0x248] sm:$0x1] }
 0x7b5   :  { %3480 = vmatpush.msk.msra.mxu2 %vm98_vm1, %v3470_v23  ;;  %v3541_v23 = vld [vmem:[%s6841_s7 + $0x578] sm:$0xff] }
 0x831   :  { %v979_v47 = vpop.f32.mrf.mxu1 }
 0x832   :  { %v983_v48 = vrot.slane %v979_v47, 2 }
 0x834   :  { %v985_v38 = vmax.f32 %v979_v47, %v983_v48  ;;  %v3472_v48 = vld [vmem:[%s6839_s5 + $0x258] sm:$0x1] }
 0x835   :  { %3484 = vmatpush.msk.msrb.mxu3 %vm98_vm1, %v3472_v48  ;;  %v3508_v48 = vld [vmem:[%s6841_s7 + $0x470] sm:$0xff] }
 0x836   :  { %v986_v49 = vsub.f32 %v979_v47, %v985_v38  ;;  %v990_v50 = vrot.slane %v985_v38, 6  ;;  %v3461_v38 = vld [vmem:[%s6839_s5 + $0x200] sm:$0xff] }
 0x837   :  { %1230 = vmatpush.msra.mxu0 %v3461_v38  ;;  %v3540_v38 = vld [vmem:[%s6841_s7 + $0x570] sm:$0xff] }
 0x838   :  { %v992_v51 = vsub.f32 %v979_v47, %v990_v50  ;;  %v987_v52 = vmul.f32 1.442695, %v986_v49  ;;  %v3471_v47 = vld [vmem:[%s6839_s5 + $0x250] sm:$0x1]  ;;  %v3462_v49 = vld [vmem:[%s6839_s5 + $0x208] sm:$0xff] }
 0x839   :  { %3482 = vmatpush.msk.msra.mxu1 %vm98_vm1, %v3471_v47  ;;  %v3463_v50 = vld [vmem:[%s6839_s5 + $0x210] sm:$0xff]  ;;  %1250 = vmatpush.msra.mxu2 %v3462_v49  ;;  %v3557_v47 = vld [vmem:[%s6841_s7 + $0x5f8] sm:$0xff] }
 0x83a   :  { %v993_v53 = vmul.f32 1.442695, %v992_v51  ;;  %v3464_v51 = vld [vmem:[%s6839_s5 + $0x218] sm:$0xff]  ;;  %v3524_v49 = vld [vmem:[%s6841_s7 + $0x4f0] sm:$0xff] }
 0x83b   :  { %1270 = vmatpush.msra.mxu1 %v3463_v50  ;;  %1290 = vmatpush.msrb.mxu3 %v3464_v51  ;;  %v3556_v50 = vld [vmem:[%s6841_s7 + $0x5f0] sm:$0xff]  ;;  %v3507_v51 = vld [vmem:[%s6841_s7 + $0x468] sm:$0xff] }
 0x83c   :  { %4052 = vpow2.f32 %v993_v53  ;;  %v3454_v53 = vld [vmem:[%s6839_s5 + $0x1c8] sm:$0xff] }
 0x83d   :  { %4054 = vpow2.f32 %v987_v52  ;;  %v3453_v52 = vld [vmem:[%s6839_s5 + $0x1c0] sm:$0xff]  ;;  %1251 = vmatpush.msra.mxu2 %v3454_v53  ;;  %v3523_v53 = vld [vmem:[%s6841_s7 + $0x4e8] sm:$0xff] }
 0x83e   :  { %1231 = vmatpush.msra.mxu0 %v3453_v52  ;;  %v3539_v52 = vld [vmem:[%s6841_s7 + $0x568] sm:$0xff] }
 0x83f   :  { %1252 = vmatpush.msra.mxu2 %v3446_v56  ;;  %v3522_v56 = vld [vmem:[%s6841_s7 + $0x4e0] sm:$0xff] }
 0x842   :  { %v4053_v24 = vpop.eup %4052 }
 0x843   :  { %v996_v54 = vrot.slane %v4053_v24, 2  ;;  %v4055_v55 = vpop.eup %4054 }
 0x845   :  { %v998_v57 = vadd.f32 %v4055_v55, %v996_v54  ;;  %v3456_v54 = vld [vmem:[%s6839_s5 + $0x1d8] sm:$0xff] }
 0x846   :  { %1291 = vmatpush.msrb.mxu3 %v3456_v54  ;;  %v3506_v54 = vld [vmem:[%s6841_s7 + $0x460] sm:$0xff] }
 0x847   :  { %4056 = vrcp.f32 %v998_v57  ;;  %v1010_v61 = vand.u32 2147483648, %v998_v57  ;;  %v1008_v63 = vand.u32 2147483647, %v998_v57  ;;  %vm1004_vm7 = vweird.f32 %v998_v57 }
 0x849   :  { %v1011_v1 = vor.u32 1.1754944e-38, %v1010_v61  ;;  %vm1009_vm12 = vcmp.eq.f32.partialorder %v1008_v63, 8.507059e+37  ;;  %v3439_v61 = vld [vmem:[%s6839_s5 + $0x150] sm:$0xff]  ;;  %v3473_v63 = vld [vmem:[%s6839_s5 + $0x260] sm:$0x1] }
 0x84d   :  { %v4057_v58 = vpop.eup %4056 }
 0x84e   :  { %v1000_v59 = vmul.f32 %v4057_v58, %v998_v57  ;;  %vm1005_vm6 = vweird.f32 %v4057_v58  ;;  %v3447_v57 = vld [vmem:[%s6839_s5 + $0x190] sm:$0xff] }
 0x84f   :  { %vm1006_vm8 = vmor %vm1004_vm7, %vm1005_vm6 }
 0x850   :  { %v1001_v60 = vsub.f32 1.0, %v1000_v59  ;;  %v3437_v59 = vld [vmem:[%s6839_s5 + $0x140] sm:$0xff] }
 0x852   :  { %v1002_v62 = vmul.f32 %v4057_v58, %v1001_v60  ;;  %v3438_v60 = vld [vmem:[%s6839_s5 + $0x148] sm:$0xff] }
 0x853   :  { %1253 = vmatpush.msra.mxu2 %v3438_v60  ;;  %v3521_v60 = vld [vmem:[%s6841_s7 + $0x4d8] sm:$0xff] }
 0x854   :  { %v1003_v0 = vadd.f32 %v4057_v58, %v1002_v62  ;;  %v3440_v62 = vld [vmem:[%s6839_s5 + $0x158] sm:$0xff] }
 0x856   :  { %v1007_v2 = vsel %vm1006_vm8, %v4057_v58, %v1003_v0  ;;  %v3448_v58 = vld [vmem:[%s6839_s5 + $0x198] sm:$0xff]  ;;  %v3474_v0 = vld [vmem:[%s6839_s5 + $0x268] sm:$0x1] }
 0x857   :  { %v1012_v3 = vsel %vm1009_vm12, %v1011_v1, %v1007_v2  ;;  %1292 = vmatpush.msrb.mxu3 %v3448_v58  ;;  %v3475_v1 = vld [vmem:[%s6839_s5 + $0x270] sm:$0x1]  ;;  %v3476_v2 = vld [vmem:[%s6839_s5 + $0x278] sm:$0x1] }
 0x858   :  { %v1014_v40 = vmul.f32 %v4055_v55, %v1012_v3  ;;  %v1017_v4 = vrot.slane %v1012_v3, 6  ;;  %v3445_v55 = vld [vmem:[%s6839_s5 + $0x180] sm:$0xff]  ;;  %v3505_v58 = vld [vmem:[%s6841_s7 + $0x458] sm:$0xff] }
 0x859   :  { %1232 = vmatpush.msra.mxu0 %v3445_v55  ;;  %1293 = vmatpush.msrb.mxu3 %v3440_v62  ;;  %v3538_v55 = vld [vmem:[%s6841_s7 + $0x560] sm:$0xff]  ;;  %v3504_v62 = vld [vmem:[%s6841_s7 + $0x450] sm:$0xff] }
 0x85a   :  { %1015 = vst.msk [vmem:[#allocation3] sm:$0x3] %vm197_vm9, %v1014_v40  ;;  %v1019_v6 = vmul.f32 %v4053_v24, %v1017_v4  ;;  %v3455_v24 = vld [vmem:[%s6839_s5 + $0x1d0] sm:$0xff]  ;;  %v3465_v4 = vld [vmem:[%s6839_s5 + $0x220] sm:$0xff] }
 0x85b   :  { %1271 = vmatpush.msra.mxu1 %v3455_v24  ;;  %1233 = vmatpush.msra.mxu0 %v3437_v59  ;;  %v3555_v24 = vld [vmem:[%s6841_s7 + $0x5e8] sm:$0xff]  ;;  %v3537_v59 = vld [vmem:[%s6841_s7 + $0x558] sm:$0xff] }
 0x85c   :  { %1020 = vst.msk [vmem:[#allocation3] sm:$0xc] %vm203_vm10, %v1019_v6  ;;  %v3466_v6 = vld [vmem:[%s6839_s5 + $0x228] sm:$0xff] }
 0x85d   :  { %1272 = vmatpush.msra.mxu1 %v3447_v57  ;;  %3486 = vmatpush.msk.msrb.mxu0 %vm98_vm1, %v3473_v63  ;;  %v3554_v57 = vld [vmem:[%s6841_s7 + $0x5e0] sm:$0xff]  ;;  %v3536_v63 = vld [vmem:[%s6841_s7 + $0x550] sm:$0xff] }
 0x85f   :  { %1273 = vmatpush.msra.mxu1 %v3439_v61  ;;  %1310 = vmatpush.msrb.mxu0 %v3465_v4  ;;  %v3553_v61 = vld [vmem:[%s6841_s7 + $0x5d8] sm:$0xff]  ;;  %v3551_v4 = vld [vmem:[%s6841_s7 + $0x5c8] sm:$0xff] }
 0x861   :  { %3490 = vmatpush.msk.msrb.mxu1 %vm98_vm1, %v3475_v1  ;;  %1311 = vmatpush.msrb.mxu0 %v3457_v16  ;;  %v3552_v1 = vld [vmem:[%s6841_s7 + $0x5d0] sm:$0xff]  ;;  %v3533_v16 = vld [vmem:[%s6841_s7 + $0x538] sm:$0xff] }
 0x863   :  { %v1021_v7 = vld [vmem:[#allocation3] sm:$0xf] }
 0x864   :  { %3429 = vmatmul.msk.f32.vlgmr.msrb.gmra.mxu2 %vm206_vm11, %v1021_v7  ;;  %v3467_v7 = vld [vmem:[%s6839_s5 + $0x230] sm:$0xff] }
 0x865   :  { %3488 = vmatpush.msk.msrb.mxu2 %vm98_vm1, %v3474_v0  ;;  %1350 = vmatpush.msrb.mxu1 %v3467_v7  ;;  %v3520_v0 = vld [vmem:[%s6841_s7 + $0x4d0] sm:$0xff]  ;;  %v3534_v7 = vld [vmem:[%s6841_s7 + $0x540] sm:$0xff] }
 0x867   :  { %1330 = vmatpush.msrb.mxu2 %v3466_v6  ;;  %v3502_v6 = vld [vmem:[%s6841_s7 + $0x440] sm:$0xff] }
 0x8e7   :  { %v1042_v18 = vpop.f32.mrf.mxu2 }
 0x8e8   :  { %v1052_v19 = vmul.f32 %v1050_v17, %v1042_v18  ;;  %v1048_v26 = vmul.f32 %v1046_v14, %v1042_v18  ;;  %v3458_v17 = vld [vmem:[%s6839_s5 + $0x1e8] sm:$0xff]  ;;  %v3459_v18 = vld [vmem:[%s6839_s5 + $0x1f0] sm:$0xff] }
 0x8e9   :  { %1331 = vmatpush.msrb.mxu2 %v3458_v17  ;;  %1351 = vmatpush.msrb.mxu1 %v3459_v18  ;;  %v3517_v17 = vld [vmem:[%s6841_s7 + $0x4b8] sm:$0xff] }
 0x8ea   :  { %v1054_v10 = vrot.slane %v1052_v19, 2  ;;  %v3460_v19 = vld [vmem:[%s6839_s5 + $0x1f8] sm:$0xff] }
 0x8eb   :  { %v3549_v18 = vld [vmem:[%s6841_s7 + $0x5b8] sm:$0xff] }
 0x8ec   :  { %v1056_v27 = vadd.f32 %v1054_v10, %v1048_v26  ;;  %v3449_v26 = vld [vmem:[%s6839_s5 + $0x1a0] sm:$0xff]  ;;  %v3450_v10 = vld [vmem:[%s6839_s5 + $0x1a8] sm:$0xff] }
 0x8ed   :  { %1312 = vmatpush.msrb.mxu0 %v3449_v26  ;;  %1332 = vmatpush.msrb.mxu2 %v3450_v10  ;;  %v3516_v26 = vld [vmem:[%s6841_s7 + $0x4b0] sm:$0xff] }
 0x8ee   :  { %3436 = vmatmul.msk.f32.vlgmr.msra.gmra.mxu3 %vm94_vm3, %v1056_v27  ;;  %v3451_v27 = vld [vmem:[%s6839_s5 + $0x1b0] sm:$0xff] }
 0x8ef   :  { %3492 = vmatpush.msk.msra.mxu3 %vm98_vm1, %v3476_v2  ;;  %1352 = vmatpush.msrb.mxu1 %v3451_v27  ;;  %v3503_v2 = vld [vmem:[%s6841_s7 + $0x448] sm:$0xff]  ;;  %v3548_v10 = vld [vmem:[%s6841_s7 + $0x5b0] sm:$0xff] }
 0x8f0   :  { %v3499_v27 = vld [vmem:[%s6841_s7 + $0x428] sm:$0xff] }
 0x8f1   :  { %1370 = vmatpush.msra.mxu3 %v3468_v12  ;;  %v3501_v12 = vld [vmem:[%s6841_s7 + $0x438] sm:$0xff] }
 0x8f3   :  { %1371 = vmatpush.msra.mxu3 %v3460_v19  ;;  %v3500_v19 = vld [vmem:[%s6841_s7 + $0x430] sm:$0xff] }
 0x971   :  { %v1087_v31 = vpop.f32.mrf.mxu3 }
 0x972   :  { %v1088_v32 = vadd.f32 %v1087_v31, %v1063_v30  ;;  %v3452_v30 = vld [vmem:[%s6839_s5 + $0x1b8] sm:$0xff] }
 0x973   :  { %1372 = vmatpush.msra.mxu3 %v3452_v30  ;;  %v3531_v30 = vld [vmem:[%s6841_s7 + $0x528] sm:$0xff] }
 0x974   :  { %v1090_v33 = vadd.f32 %v1088_v32, %v4912_v39  ;;  %v3441_v32 = vld [vmem:[%s6839_s5 + $0x160] sm:$0xff] }
 0x975   :  { %1313 = vmatpush.msrb.mxu0 %v3441_v32  ;;  %v3547_v32 = vld [vmem:[%s6841_s7 + $0x5a8] sm:$0xff] }
 0x976   :  { %v1096_v34 = vmul.f32 %v1090_v33, %v4313_v15  ;;  %v1091_v35 = vmul.f32 %v1090_v33, %v4307_v8 }
 0x978   :  { %v1097_v36 = vsel %vm128_vm4, %v1096_v34, 0.0  ;;  %v1092_v20 = vsel %vm128_vm4, %v1091_v35, 0.0  ;;  %v3443_v34 = vld [vmem:[%s6839_s5 + $0x170] sm:$0xff]  ;;  %v3444_v35 = vld [vmem:[%s6839_s5 + $0x178] sm:$0xff] }
 0x979   :  { %1098 = vadd.xlane.f32.xlu2 %v1097_v36  ;;  %1093 = vadd.xlane.f32.xlu0 %v1092_v20 }
 0x97a   :  { %1353 = vmatpush.msrb.mxu1 %v3443_v34  ;;  %1373 = vmatpush.msra.mxu3 %v3444_v35  ;;  %v3530_v34 = vld [vmem:[%s6841_s7 + $0x520] sm:$0xff] }
 0x97b   :  { %v3514_v35 = vld [vmem:[%s6841_s7 + $0x4a0] sm:$0xff] }
 0x9ec   :  { %v1099_v21 = vpop.xlane.xlu2 %1098  ;;  %v1094_v37 = vpop.xlane.xlu0 %1093 }
 0x9ed   :  { %v1100_v41 = vmul.f32 %v1099_v21, %v4322_v13  ;;  %v1095_v22 = vmul.f32 %v1094_v37, %v4319_v25 }
 0x9ef   :  { %v1101_v42 = vadd.f32 %v1100_v41, %v1095_v22 }
 0x9f1   :  { %v4959_v28 = vsub.f32 %v1090_v33, %v1101_v42  ;;  %v3442_v33 = vld [vmem:[%s6839_s5 + $0x168] sm:$0xff]  ;;  %v1127_v42 = vperm.slane %v4949_v29, 1 }
 0x9f2   :  { %1333 = vmatpush.msrb.mxu2 %v3442_v33  ;;  %v3498_v33 = vld [vmem:[%s6841_s7 + $0x420] sm:$0xff] }
 0x9f3   :  { %v1103_v39 = vmul.f32 %v4959_v28, %v4959_v28 }
 0x9f5   :  { %v1109_v43 = vmul.f32 %v1103_v39, %v4313_v15  ;;  %v1104_v5 = vmul.f32 %v1103_v39, %v4307_v8 }
 0x9f7   :  { %v1110_v44 = vsel %vm128_vm4, %v1109_v43, 0.0  ;;  %v1105_v45 = vsel %vm128_vm4, %v1104_v5, 0.0  ;;  %v1129_v43 = vperm.slane %v4949_v29, 2 }
 0x9f8   :  { %1111 = vadd.xlane.f32.xlu0 %v1110_v44  ;;  %1106 = vadd.xlane.f32.xlu1 %v1105_v45 }
 0xa6b   :  { %v1112_v3 = vpop.xlane.xlu0 %1111  ;;  %v1107_v40 = vpop.xlane.xlu1 %1106 }
 0xa6c   :  { %v1113_v9 = vmul.f32 %v1112_v3, %v4322_v13  ;;  %v1108_v11 = vmul.f32 %v1107_v40, %v4319_v25  ;;  %v3535_v3 = vld [vmem:[%s6841_s7 + $0x548] sm:$0xff] }
 0xa6d   :  { %v3519_v40 = vld [vmem:[%s6841_s7 + $0x4c8] sm:$0xff] }
 0xa6e   :  { %v1114_v14 = vadd.f32 %v1113_v9, %v1108_v11  ;;  %v3518_v9 = vld [vmem:[%s6841_s7 + $0x4c0] sm:$0xff] }
 0xa6f   :  { %v3550_v11 = vld [vmem:[%s6841_s7 + $0x5c0] sm:$0xff] }
 0xa70   :  { %v1115_v31 = vadd.f32 1e-05, %v1114_v14  ;;  %v3532_v14 = vld [vmem:[%s6841_s7 + $0x530] sm:$0xff] }
 0xa72   :  { %4058 = vrsqrt.f32 %v1115_v31  ;;  %vm1122_vm14 = vweird.f32 %v1115_v31 }
 0xa78   :  { %v4059_v36 = vpop.eup %4058 }
 0xa79   :  { %v1117_v20 = vmul.f32 %v4059_v36, %v1115_v31  ;;  %vm1123_vm13 = vweird.f32 %v4059_v36  ;;  %v3515_v31 = vld [vmem:[%s6841_s7 + $0x4a8] sm:$0xff] }
 0xa7a   :  { %vm1124_vm15 = vmor %vm1122_vm14, %vm1123_vm13 }
 0xa7b   :  { %v1118_v21 = vmul.f32 %v4059_v36, %v1117_v20  ;;  %v3497_v20 = vld [vmem:[%s6841_s7 + $0x418] sm:$0xff] }
 0xa7d   :  { %v1119_v37 = vmul.f32 0.5, %v1118_v21  ;;  %v3529_v21 = vld [vmem:[%s6841_s7 + $0x518] sm:$0xff] }
 0xa7f   :  { %v1120_v41 = vsub.f32 1.5, %v1119_v37  ;;  %v3513_v37 = vld [vmem:[%s6841_s7 + $0x498] sm:$0xff] }
 0xa81   :  { %v1121_v22 = vmul.f32 %v4059_v36, %v1120_v41  ;;  %v3545_v41 = vld [vmem:[%s6841_s7 + $0x598] sm:$0xff] }
 0xa83   :  { %v1125_v39 = vsel %vm1124_vm15, %v4059_v36, %v1121_v22  ;;  %v3546_v36 = vld [vmem:[%s6841_s7 + $0x5a0] sm:$0xff]  ;;  %v3496_v22 = vld [vmem:[%s6841_s7 + $0x410] sm:$0xff] }
 0xa84   :  { %v1126_v5 = vmul.f32 %v1125_v39, %v4959_v28  ;;  %v3525_v28 = vld [vmem:[%s6841_s7 + $0x4f8] sm:$0xff]  ;;  %v3512_v39 = vld [vmem:[%s6841_s7 + $0x490] sm:$0xff] }
 0xa86   :  { %v1128_v44 = vmul.f32 %v1127_v42, %v1126_v5  ;;  %v3528_v42 = vld [vmem:[%s6841_s7 + $0x510] sm:$0xff]  ;;  %v3495_v5 = vld [vmem:[%s6841_s7 + $0x408] sm:$0xff] }
 0xa88   :  { %v5100_v45 = vadd.f32 %v1129_v43, %v1128_v44  ;;  %v3544_v43 = vld [vmem:[%s6841_s7 + $0x590] sm:$0xff]  ;;  %v3527_v44 = vld [vmem:[%s6841_s7 + $0x508] sm:$0xff] }
 0xa8a   :  { %3479 = vmatmul.msk.f32.vlgmr.msra.gmra.mxu0 %vm94_vm3, %v5100_v45  ;;  %3481 = vmatmul.msk.f32.vlgmr.msra.gmra.mxu2 %vm94_vm3, %v5100_v45 }
 0xa8b   :  { %3483 = vmatmul.msk.f32.vlgmr.msra.gmra.mxu1 %vm94_vm3, %v5100_v45  ;;  %3485 = vmatmul.msk.f32.vlgmr.msrb.gmra.mxu3 %vm94_vm3, %v5100_v45 }
 0xa8c   :  { %1516 = vmatpush.msra.mxu0 %v3509_v46  ;;  %1556 = vmatpush.msra.mxu1 %v3541_v23  ;;  %v3511_v46 = vld [vmem:[%s6841_s7 + $0x488] sm:$0xff] }
 0xa8d   :  { %1536 = vmatpush.msra.mxu2 %v3525_v28  ;;  %1576 = vmatpush.msrb.mxu3 %v3557_v47  ;;  %v3543_v23 = vld [vmem:[%s6841_s7 + $0x588] sm:$0xff]  ;;  %v3494_v28 = vld [vmem:[%s6841_s7 + $0x400] sm:$0xff] }
 0xa8e   :  { %1517 = vmatpush.msra.mxu0 %v3508_v48  ;;  %1557 = vmatpush.msra.mxu1 %v3540_v38  ;;  %v3526_v47 = vld [vmem:[%s6841_s7 + $0x500] sm:$0xff]  ;;  %v3573_v48 = vld [vmem:[%s6841_s7 + $0x678] sm:$0xff] }
 0xa8f   :  { %1537 = vmatpush.msra.mxu2 %v3524_v49  ;;  %1577 = vmatpush.msrb.mxu3 %v3556_v50  ;;  %v3605_v38 = vld [vmem:[%s6841_s7 + $0x778] sm:$0xff]  ;;  %v3510_v49 = vld [vmem:[%s6841_s7 + $0x480] sm:$0xff] }
 0xa90   :  { %1518 = vmatpush.msra.mxu0 %v3507_v51  ;;  %1558 = vmatpush.msra.mxu1 %v3539_v52  ;;  %v3542_v50 = vld [vmem:[%s6841_s7 + $0x580] sm:$0xff]  ;;  %v3572_v51 = vld [vmem:[%s6841_s7 + $0x670] sm:$0xff] }
 0xa91   :  { %1538 = vmatpush.msra.mxu2 %v3523_v53  ;;  %1578 = vmatpush.msrb.mxu3 %v3555_v24  ;;  %v3604_v52 = vld [vmem:[%s6841_s7 + $0x770] sm:$0xff]  ;;  %v3589_v53 = vld [vmem:[%s6841_s7 + $0x6f8] sm:$0xff] }
 0xa92   :  { %3487 = vmatmul.msk.f32.vlgmr.msrb.gmra.mxu0 %vm94_vm3, %v5100_v45  ;;  %3489 = vmatmul.msk.f32.vlgmr.msrb.gmra.mxu2 %vm94_vm3, %v5100_v45  ;;  %v3621_v24 = vld [vmem:[%s6841_s7 + $0x7f8] sm:$0xff] }
 0xa93   :  { %3491 = vmatmul.msk.f32.vlgmr.msrb.gmra.mxu1 %vm94_vm3, %v5100_v45  ;;  %3493 = vmatmul.msk.f32.vlgmr.msra.gmra.mxu3 %vm94_vm3, %v5100_v45 }
 0xa94   :  { %1519 = vmatpush.msra.mxu0 %v3506_v54  ;;  %1559 = vmatpush.msra.mxu1 %v3538_v55  ;;  %v3571_v54 = vld [vmem:[%s6841_s7 + $0x668] sm:$0xff] }
 0xa95   :  { %1539 = vmatpush.msra.mxu2 %v3522_v56  ;;  %1579 = vmatpush.msrb.mxu3 %v3554_v57  ;;  %v3603_v55 = vld [vmem:[%s6841_s7 + $0x768] sm:$0xff]  ;;  %v3588_v56 = vld [vmem:[%s6841_s7 + $0x6f0] sm:$0xff] }
 0xa96   :  { %1520 = vmatpush.msra.mxu0 %v3505_v58  ;;  %1560 = vmatpush.msra.mxu1 %v3537_v59  ;;  %v3620_v57 = vld [vmem:[%s6841_s7 + $0x7f0] sm:$0xff]  ;;  %v3570_v58 = vld [vmem:[%s6841_s7 + $0x660] sm:$0xff] }
 0xa97   :  { %1540 = vmatpush.msra.mxu2 %v3521_v60  ;;  %1580 = vmatpush.msrb.mxu3 %v3553_v61  ;;  %v3602_v59 = vld [vmem:[%s6841_s7 + $0x760] sm:$0xff]  ;;  %v3587_v60 = vld [vmem:[%s6841_s7 + $0x6e8] sm:$0xff] }
 0xa98   :  { %1521 = vmatpush.msra.mxu0 %v3504_v62  ;;  %1561 = vmatpush.msra.mxu1 %v3536_v63  ;;  %v3619_v61 = vld [vmem:[%s6841_s7 + $0x7e8] sm:$0xff]  ;;  %v3569_v62 = vld [vmem:[%s6841_s7 + $0x658] sm:$0xff] }
 0xa99   :  { %1541 = vmatpush.msra.mxu2 %v3520_v0  ;;  %1581 = vmatpush.msrb.mxu3 %v3552_v1  ;;  %v3601_v63 = vld [vmem:[%s6841_s7 + $0x758] sm:$0xff]  ;;  %v3586_v0 = vld [vmem:[%s6841_s7 + $0x6e0] sm:$0xff] }
 0xa9a   :  { %1522 = vmatpush.msra.mxu0 %v3503_v2  ;;  %1562 = vmatpush.msra.mxu1 %v3535_v3  ;;  %v3618_v1 = vld [vmem:[%s6841_s7 + $0x7e0] sm:$0xff]  ;;  %v3568_v2 = vld [vmem:[%s6841_s7 + $0x650] sm:$0xff] }
 0xa9b   :  { %1542 = vmatpush.msra.mxu2 %v3519_v40  ;;  %1582 = vmatpush.msrb.mxu3 %v3551_v4  ;;  %v3600_v3 = vld [vmem:[%s6841_s7 + $0x750] sm:$0xff]  ;;  %v3585_v40 = vld [vmem:[%s6841_s7 + $0x6d8] sm:$0xff] }
 0xa9c   :  { %1523 = vmatpush.msra.mxu0 %v3502_v6  ;;  %1563 = vmatpush.msra.mxu1 %v3534_v7  ;;  %v3617_v4 = vld [vmem:[%s6841_s7 + $0x7d8] sm:$0xff]  ;;  %v3567_v6 = vld [vmem:[%s6841_s7 + $0x648] sm:$0xff] }
 0xa9d   :  { %1543 = vmatpush.msra.mxu2 %v3518_v9  ;;  %1583 = vmatpush.msrb.mxu3 %v3550_v11  ;;  %v3599_v7 = vld [vmem:[%s6841_s7 + $0x748] sm:$0xff]  ;;  %v3584_v9 = vld [vmem:[%s6841_s7 + $0x6d0] sm:$0xff] }
 0xa9e   :  { %1524 = vmatpush.msra.mxu0 %v3501_v12  ;;  %1564 = vmatpush.msra.mxu1 %v3533_v16  ;;  %v3616_v11 = vld [vmem:[%s6841_s7 + $0x7d0] sm:$0xff]  ;;  %v3566_v12 = vld [vmem:[%s6841_s7 + $0x640] sm:$0xff] }
 0xa9f   :  { %1544 = vmatpush.msra.mxu2 %v3517_v17  ;;  %1584 = vmatpush.msrb.mxu3 %v3549_v18  ;;  %v3598_v16 = vld [vmem:[%s6841_s7 + $0x740] sm:$0xff]  ;;  %v3565_v17 = vld [vmem:[%s6841_s7 + $0x638] sm:$0xff] }
 0xaa0   :  { %1525 = vmatpush.msra.mxu0 %v3500_v19  ;;  %1565 = vmatpush.msra.mxu1 %v3532_v14  ;;  %v3597_v18 = vld [vmem:[%s6841_s7 + $0x738] sm:$0xff]  ;;  %v3564_v19 = vld [vmem:[%s6841_s7 + $0x630] sm:$0xff]  ;;  %v3583_v14 = vld [vmem:[%s6841_s7 + $0x6c8] sm:$0xff] }
 0xaa1   :  { %1545 = vmatpush.msra.mxu2 %v3516_v26  ;;  %1585 = vmatpush.msrb.mxu3 %v3548_v10  ;;  %v3596_v26 = vld [vmem:[%s6841_s7 + $0x730] sm:$0xff]  ;;  %v3615_v10 = vld [vmem:[%s6841_s7 + $0x7c8] sm:$0xff] }
 0xaa2   :  { %1526 = vmatpush.msra.mxu0 %v3499_v27  ;;  %1566 = vmatpush.msra.mxu1 %v3531_v30  ;;  %v3563_v27 = vld [vmem:[%s6841_s7 + $0x628] sm:$0xff]  ;;  %v3582_v30 = vld [vmem:[%s6841_s7 + $0x6c0] sm:$0xff] }
 0xaa3   :  { %1546 = vmatpush.msra.mxu2 %v3515_v31  ;;  %1586 = vmatpush.msrb.mxu3 %v3547_v32  ;;  %v3595_v31 = vld [vmem:[%s6841_s7 + $0x728] sm:$0xff]  ;;  %v3614_v32 = vld [vmem:[%s6841_s7 + $0x7c0] sm:$0xff] }
 0xaa4   :  { %1527 = vmatpush.msra.mxu0 %v3498_v33  ;;  %1567 = vmatpush.msra.mxu1 %v3530_v34  ;;  %v3562_v33 = vld [vmem:[%s6841_s7 + $0x620] sm:$0xff]  ;;  %v3581_v34 = vld [vmem:[%s6841_s7 + $0x6b8] sm:$0xff] }
 0xaa5   :  { %1547 = vmatpush.msra.mxu2 %v3514_v35  ;;  %1587 = vmatpush.msrb.mxu3 %v3546_v36  ;;  %v3594_v35 = vld [vmem:[%s6841_s7 + $0x720] sm:$0xff]  ;;  %v3613_v36 = vld [vmem:[%s6841_s7 + $0x7b8] sm:$0xff] }
 0xaa6   :  { %1528 = vmatpush.msra.mxu0 %v3497_v20  ;;  %1568 = vmatpush.msra.mxu1 %v3529_v21  ;;  %v3561_v20 = vld [vmem:[%s6841_s7 + $0x618] sm:$0xff]  ;;  %v3580_v21 = vld [vmem:[%s6841_s7 + $0x6b0] sm:$0xff] }
 0xaa7   :  { %1548 = vmatpush.msra.mxu2 %v3513_v37  ;;  %1588 = vmatpush.msrb.mxu3 %v3545_v41  ;;  %v3593_v37 = vld [vmem:[%s6841_s7 + $0x718] sm:$0xff]  ;;  %v3612_v41 = vld [vmem:[%s6841_s7 + $0x7b0] sm:$0xff] }
 0xaa8   :  { %1529 = vmatpush.msra.mxu0 %v3496_v22  ;;  %1569 = vmatpush.msra.mxu1 %v3528_v42  ;;  %v3560_v22 = vld [vmem:[%s6841_s7 + $0x610] sm:$0xff]  ;;  %v3579_v42 = vld [vmem:[%s6841_s7 + $0x6a8] sm:$0xff] }
 0xaa9   :  { %1549 = vmatpush.msra.mxu2 %v3512_v39  ;;  %1589 = vmatpush.msrb.mxu3 %v3544_v43  ;;  %v3592_v39 = vld [vmem:[%s6841_s7 + $0x710] sm:$0xff]  ;;  %v3611_v43 = vld [vmem:[%s6841_s7 + $0x7a8] sm:$0xff] }
 0xaaa   :  { %1530 = vmatpush.msra.mxu0 %v3495_v5  ;;  %1570 = vmatpush.msra.mxu1 %v3527_v44  ;;  %v3559_v5 = vld [vmem:[%s6841_s7 + $0x608] sm:$0xff]  ;;  %v3578_v44 = vld [vmem:[%s6841_s7 + $0x6a0] sm:$0xff] }
 0xaab   :  { %1550 = vmatpush.msra.mxu2 %v3511_v46  ;;  %1590 = vmatpush.msrb.mxu3 %v3543_v23  ;;  %v3591_v46 = vld [vmem:[%s6841_s7 + $0x708] sm:$0xff]  ;;  %v3610_v23 = vld [vmem:[%s6841_s7 + $0x7a0] sm:$0xff] }
 0xaac   :  { %1531 = vmatpush.msra.mxu0 %v3494_v28  ;;  %1571 = vmatpush.msra.mxu1 %v3526_v47  ;;  %v3558_v28 = vld [vmem:[%s6841_s7 + $0x600] sm:$0xff]  ;;  %v3577_v47 = vld [vmem:[%s6841_s7 + $0x698] sm:$0xff] }
 0xaad   :  { %1551 = vmatpush.msra.mxu2 %v3510_v49  ;;  %1591 = vmatpush.msrb.mxu3 %v3542_v50  ;;  %v3576_v49 = vld [vmem:[%s6841_s7 + $0x690] sm:$0xff] }
 0xaae   :  { %1596 = vmatpush.msrb.mxu0 %v3573_v48  ;;  %1636 = vmatpush.msrb.mxu1 %v3605_v38  ;;  %v3590_v48 = vld [vmem:[%s6841_s7 + $0x700] sm:$0xff]  ;;  %v3609_v38 = vld [vmem:[%s6841_s7 + $0x798] sm:$0xff]  ;;  %v3608_v50 = vld [vmem:[%s6841_s7 + $0x790] sm:$0xff] }
 0xaaf   :  { %1616 = vmatpush.msrb.mxu2 %v3589_v53  ;;  %1656 = vmatpush.msra.mxu3 %v3621_v24  ;;  %v3574_v53 = vld [vmem:[%s6841_s7 + $0x680] sm:$0xff] }
 0xab0   :  { %1597 = vmatpush.msrb.mxu0 %v3572_v51  ;;  %1637 = vmatpush.msrb.mxu1 %v3604_v52  ;;  %v3575_v51 = vld [vmem:[%s6841_s7 + $0x688] sm:$0xff]  ;;  %v3606_v24 = vld [vmem:[%s6841_s7 + $0x780] sm:$0xff] }
 0xab1   :  { %1617 = vmatpush.msrb.mxu2 %v3588_v56  ;;  %1657 = vmatpush.msra.mxu3 %v3620_v57  ;;  %v3607_v52 = vld [vmem:[%s6841_s7 + $0x788] sm:$0xff] }
 0xab2   :  { %1598 = vmatpush.msrb.mxu0 %v3571_v54  ;;  %1638 = vmatpush.msrb.mxu1 %v3603_v55  ;;  %v3477_v54 = vld [vmem:[%s6840_s6 + $0x8] sm:$0xff] }
 0xab3   :  { %1618 = vmatpush.msrb.mxu2 %v3587_v60  ;;  %1658 = vmatpush.msra.mxu3 %v3619_v61  ;;  %v1175_v55 = vperm.slane %v3477_v54, 0  ;;  %v1177_v56 = vperm.slane %v3477_v54, 2 }
 0xab4   :  { %1599 = vmatpush.msrb.mxu0 %v3570_v58  ;;  %1639 = vmatpush.msrb.mxu1 %v3602_v59 }
 0xab5   :  { %1619 = vmatpush.msrb.mxu2 %v3586_v0  ;;  %1659 = vmatpush.msra.mxu3 %v3618_v1  ;;  %v1178_v0 = vperm.slane %v3477_v54, 3  ;;  %v1179_v1 = vperm.slane %v3477_v54, 4 }
 0xab6   :  { %1600 = vmatpush.msrb.mxu0 %v3569_v62  ;;  %1640 = vmatpush.msrb.mxu1 %v3601_v63  ;;  %v1176_v62 = vperm.slane %v3477_v54, 1 }
 0xab7   :  { %1620 = vmatpush.msrb.mxu2 %v3585_v40  ;;  %1660 = vmatpush.msra.mxu3 %v3617_v4 }
 0xab8   :  { %1601 = vmatpush.msrb.mxu0 %v3568_v2  ;;  %1641 = vmatpush.msrb.mxu1 %v3600_v3  ;;  %v1181_v3 = vperm.slane %v3477_v54, 6 }
 0xab9   :  { %1621 = vmatpush.msrb.mxu2 %v3584_v9  ;;  %1661 = vmatpush.msra.mxu3 %v3616_v11 }
 0xaba   :  { %1602 = vmatpush.msrb.mxu0 %v3567_v6  ;;  %1642 = vmatpush.msrb.mxu1 %v3599_v7  ;;  %v4082_v6 = vld [vmem:[%s6843_s9] sm:$0xff] }
 0xabb   :  { %1622 = vmatpush.msrb.mxu2 %v3583_v14  ;;  %1662 = vmatpush.msra.mxu3 %v3615_v10  ;;  %v1180_v14 = vperm.slane %v3477_v54, 5  ;;  %v1182_v10 = vperm.slane %v3477_v54, 7 }
 0xabc   :  { %1603 = vmatpush.msrb.mxu0 %v3566_v12  ;;  %1643 = vmatpush.msrb.mxu1 %v3598_v16 }
 0xabd   :  { %1623 = vmatpush.msrb.mxu2 %v3582_v30  ;;  %1663 = vmatpush.msra.mxu3 %v3614_v32 }
 0xabe   :  { %1604 = vmatpush.msrb.mxu0 %v3565_v17  ;;  %1644 = vmatpush.msrb.mxu1 %v3597_v18 }
 0xabf   :  { %1624 = vmatpush.msrb.mxu2 %v3581_v34  ;;  %1664 = vmatpush.msra.mxu3 %v3613_v36 }
 0xac0   :  { %1605 = vmatpush.msrb.mxu0 %v3564_v19  ;;  %1645 = vmatpush.msrb.mxu1 %v3596_v26 }
 0xac1   :  { %1625 = vmatpush.msrb.mxu2 %v3580_v21  ;;  %1665 = vmatpush.msra.mxu3 %v3612_v41  ;;  %v4086_v21 = vld [vmem:[%s6844_s10 + $0x8] sm:$0xff]  ;;  %v1515_v41 = vperm.slane %v4949_v29, 3 }
 0xac2   :  { %1606 = vmatpush.msrb.mxu0 %v3563_v27  ;;  %1646 = vmatpush.msrb.mxu1 %v3595_v31  ;;  %v4083_v27 = vld [vmem:[%s6844_s10 + $0x20] sm:$0x1]  ;;  %v4084_v31 = vld [vmem:[%s6844_s10 + $0x18] sm:$0xff] }
 0xac3   :  { %1626 = vmatpush.msrb.mxu2 %v3579_v42  ;;  %1666 = vmatpush.msra.mxu3 %v3611_v43 }
 0xac4   :  { %1607 = vmatpush.msrb.mxu0 %v3562_v33  ;;  %1647 = vmatpush.msrb.mxu1 %v3594_v35  ;;  %v4085_v35 = vld [vmem:[%s6844_s10 + $0x10] sm:$0xff] }
 0xac5   :  { %1627 = vmatpush.msrb.mxu2 %v3578_v44  ;;  %1667 = vmatpush.msra.mxu3 %v3610_v23 }
 0xac6   :  { %1608 = vmatpush.msrb.mxu0 %v3561_v20  ;;  %1648 = vmatpush.msrb.mxu1 %v3593_v37  ;;  %v4087_v37 = vld [vmem:[%s6844_s10] sm:$0xff] }
 0xac7   :  { %1628 = vmatpush.msrb.mxu2 %v3577_v47  ;;  %1668 = vmatpush.msra.mxu3 %v3609_v38 }
 0xac8   :  { %1609 = vmatpush.msrb.mxu0 %v3560_v22  ;;  %1649 = vmatpush.msrb.mxu1 %v3592_v39 }
 0xac9   :  { %1629 = vmatpush.msrb.mxu2 %v3576_v49  ;;  %1669 = vmatpush.msra.mxu3 %v3608_v50 }
 0xaca   :  { %1610 = vmatpush.msrb.mxu0 %v3559_v5  ;;  %1650 = vmatpush.msrb.mxu1 %v3591_v46 }
 0xacb   :  { %1630 = vmatpush.msrb.mxu2 %v3575_v51  ;;  %1670 = vmatpush.msra.mxu3 %v3607_v52 }
 0xacc   :  { %1611 = vmatpush.msrb.mxu0 %v3558_v28  ;;  %1651 = vmatpush.msrb.mxu1 %v3590_v48 }
 0xacd   :  { %1631 = vmatpush.msrb.mxu2 %v3574_v53  ;;  %1671 = vmatpush.msra.mxu3 %v3606_v24 }
 0xb07   :  { %v1235_v57 = vpop.f32.mrf.mxu0 }
 0xb08   :  { %v1236_v58 = vadd.f32 %v1235_v57, %v1175_v55  ;;  %v1275_v59 = vpop.f32.mrf.mxu1 }
 0xb09   :  { %v1276_v60 = vadd.f32 %v1275_v59, %v1177_v56 }
 0xb0a   :  { %v1378_v61 = vmax.f32 %v1236_v58, 0.0 }
 0xb0b   :  { %v1380_v63 = vmax.f32 %v1276_v60, 0.0 }
 0xb0c   :  { %1532 = vmatmul.f32.vlgmr.msra.gmra.mxu0 %v1378_v61 }
 0xb0d   :  { %1572 = vmatmul.f32.vlgmr.msra.gmra.mxu1 %v1380_v63  ;;  %v1255_v2 = vpop.f32.mrf.mxu2 }
 0xb0e   :  { %v1256_v40 = vadd.f32 %v1255_v2, %v1176_v62  ;;  %v1295_v4 = vpop.f32.mrf.mxu3  ;;  %3633 = vmatpush.msk.msra.mxu1 %vm59_vm0, %v4082_v6  ;;  %v3624_v6 = vld [vmem:[%s6836_s2 + $0x58] sm:$0xff] }
 0xb0f   :  { %v1296_v7 = vadd.f32 %v1295_v4, %v1178_v0  ;;  %v1315_v9 = vpop.f32.mrf.mxu0  ;;  %v3625_v4 = vld [vmem:[%s6836_s2 + $0x60] sm:$0xff] }
 0xb10   :  { %v1379_v11 = vmax.f32 %v1256_v40, 0.0  ;;  %v1316_v12 = vadd.f32 %v1315_v9, %v1179_v1  ;;  %v1355_v16 = vpop.f32.mrf.mxu1  ;;  %v3626_v40 = vld [vmem:[%s6836_s2 + $0x68] sm:$0xff] }
 0xb11   :  { %v1381_v17 = vmax.f32 %v1296_v7, 0.0  ;;  %v1356_v18 = vadd.f32 %v1355_v16, %v1181_v3  ;;  %v3627_v3 = vld [vmem:[%s6836_s2 + $0x70] sm:$0x1] }
 0xb12   :  { %v1382_v19 = vmax.f32 %v1316_v12, 0.0  ;;  %1552 = vmatmul.f32.vlgmr.msra.gmra.mxu2 %v1379_v11  ;;  %3629 = vmatpush.msk.msra.mxu0 %vm98_vm1, %v3627_v3  ;;  %v3623_v7 = vld [vmem:[%s6836_s2 + $0x50] sm:$0xff]  ;;  %v3638_v3 = vld [vmem:[%s6838_s4 + $0x68] sm:$0xff] }
 0xb13   :  { %v1384_v26 = vmax.f32 %v1356_v18, 0.0  ;;  %1592 = vmatmul.f32.vlgmr.msrb.gmra.mxu3 %v1381_v17  ;;  %3631 = vmatpush.msk.msra.mxu2 %vm98_vm1, %v4083_v27 }
 0xb14   :  { %1612 = vmatmul.f32.vlgmr.msrb.gmra.mxu0 %v1382_v19 }
 0xb15   :  { %1652 = vmatmul.f32.vlgmr.msrb.gmra.mxu1 %v1384_v26  ;;  %v1335_v30 = vpop.f32.mrf.mxu2  ;;  %1786 = vmatpush.msra.mxu2 %v4084_v31  ;;  %v1713_v31 = vperm.slane %v4949_v29, 4 }
 0xb16   :  { %v1336_v32 = vadd.f32 %v1335_v30, %v1180_v14  ;;  %v1375_v33 = vpop.f32.mrf.mxu3  ;;  %1748 = vmatpush.msra.mxu0 %v3626_v40  ;;  %v3637_v40 = vld [vmem:[%s6838_s4 + $0x60] sm:$0xff] }
 0xb17   :  { %v1376_v34 = vadd.f32 %v1375_v33, %v1182_v10  ;;  %1787 = vmatpush.msra.mxu2 %v4085_v35 }
 0xb18   :  { %v1383_v36 = vmax.f32 %v1336_v32, 0.0  ;;  %1749 = vmatpush.msra.mxu0 %v3625_v4  ;;  %v3636_v4 = vld [vmem:[%s6838_s4 + $0x58] sm:$0xff] }
 0xb19   :  { %v1385_v20 = vmax.f32 %v1376_v34, 0.0  ;;  %1788 = vmatpush.msra.mxu2 %v4086_v21  ;;  %v1715_v34 = vperm.slane %v4949_v29, 5 }
 0xb1a   :  { %1632 = vmatmul.f32.vlgmr.msrb.gmra.mxu2 %v1383_v36  ;;  %1750 = vmatpush.msra.mxu0 %v3624_v6  ;;  %v3635_v6 = vld [vmem:[%s6838_s4 + $0x50] sm:$0xff] }
 0xb1b   :  { %1672 = vmatmul.f32.vlgmr.msra.gmra.mxu3 %v1385_v20  ;;  %1789 = vmatpush.msra.mxu2 %v4087_v37  ;;  %v4039_v20 = vld [vmem:[%s6837_s3 + $0x2] ss:$0 sm:$0xff] }
 0xb1c   :  { %1751 = vmatpush.msra.mxu0 %v3623_v7 }
 0xb89   :  { %v1533_v22 = vpop.f32.mrf.mxu0 }
 0xb8a   :  { %v1534_v42 = vadd.f32 %v1533_v22, %v1515_v41  ;;  %v1573_v39 = vpop.f32.mrf.mxu1 }
 0xb91   :  { %v1613_v28 = vpop.f32.mrf.mxu0 }
 0xb92   :  { %v1653_v49 = vpop.f32.mrf.mxu1 }
 0xb95   :  { %v1553_v43 = vpop.f32.mrf.mxu2 }
 0xb96   :  { %v1554_v5 = vadd.f32 %v1553_v43, %v1534_v42  ;;  %v1593_v44 = vpop.f32.mrf.mxu3 }
 0xb98   :  { %v1574_v46 = vadd.f32 %v1573_v39, %v1554_v5 }
 0xb9a   :  { %v1594_v23 = vadd.f32 %v1593_v44, %v1574_v46 }
 0xb9c   :  { %v1614_v47 = vadd.f32 %v1613_v28, %v1594_v23 }
 0xb9d   :  { %v1633_v48 = vpop.f32.mrf.mxu2 }
 0xb9e   :  { %v1634_v38 = vadd.f32 %v1633_v48, %v1614_v47  ;;  %v1673_v51 = vpop.f32.mrf.mxu3 }
 0xba0   :  { %v1654_v50 = vadd.f32 %v1653_v49, %v1634_v38 }
 0xba2   :  { %v1674_v52 = vadd.f32 %v1673_v51, %v1654_v50 }
 0xba4   :  { %v1676_v53 = vadd.f32 %v1674_v52, %v5100_v45 }
 0xba6   :  { %v1682_v24 = vmul.f32 %v1676_v53, %v4313_v15  ;;  %v1677_v54 = vmul.f32 %v1676_v53, %v4307_v8 }
 0xba8   :  { %v1683_v55 = vsel %vm128_vm4, %v1682_v24, 0.0  ;;  %v1678_v56 = vsel %vm128_vm4, %v1677_v54, 0.0 }
 0xba9   :  { %1684 = vadd.xlane.f32.xlu1 %v1683_v55  ;;  %1679 = vadd.xlane.f32.xlu2 %v1678_v56 }
 0xc1c   :  { %v1685_v57 = vpop.xlane.xlu1 %1684  ;;  %v1680_v58 = vpop.xlane.xlu2 %1679 }
 0xc1d   :  { %v1686_v59 = vmul.f32 %v1685_v57, %v4322_v13  ;;  %v1681_v60 = vmul.f32 %v1680_v58, %v4319_v25 }
 0xc1f   :  { %v1687_v61 = vadd.f32 %v1686_v59, %v1681_v60 }
 0xc21   :  { %v1688_v62 = vsub.f32 %v1676_v53, %v1687_v61  ;;  %v3639_v53 = vld [vmem:[%s6838_s4 + $0x70] sm:$0x1] }
 0xc22   :  { %3640 = vmatpush.msk.msrb.mxu3 %vm98_vm1, %v3639_v53  ;;  %v3651_v53 = vld [vmem:[%s6839_s5 + $0x2c8] sm:$0xff] }
 0xc23   :  { %v1689_v63 = vmul.f32 %v1688_v62, %v1688_v62 }
 0xc24   :  { %1894 = vmatpush.msrb.mxu3 %v3638_v3 }
 0xc25   :  { %v1695_v45 = vmul.f32 %v1689_v63, %v4313_v15  ;;  %v1690_v0 = vmul.f32 %v1689_v63, %v4307_v8 }
 0xc26   :  { %1895 = vmatpush.msrb.mxu3 %v3637_v40 }
 0xc27   :  { %v1696_v1 = vsel %vm128_vm4, %v1695_v45, 0.0  ;;  %v1691_v2 = vsel %vm128_vm4, %v1690_v0, 0.0 }
 0xc28   :  { %1697 = vadd.xlane.f32.xlu2 %v1696_v1  ;;  %1692 = vadd.xlane.f32.xlu0 %v1691_v2 }
 0xc29   :  { %1896 = vmatpush.msrb.mxu3 %v3636_v4  ;;  %v3673_v4 = vld [vmem:[%s6839_s5 + $0x378] sm:$0xff] }
 0xc2b   :  { %1897 = vmatpush.msrb.mxu3 %v3635_v6  ;;  %v3662_v6 = vld [vmem:[%s6839_s5 + $0x320] sm:$0xff] }
 0xc9b   :  { %v1698_v9 = vpop.xlane.xlu2 %1697  ;;  %v1693_v11 = vpop.xlane.xlu0 %1692 }
 0xc9c   :  { %v1699_v12 = vmul.f32 %v1698_v9, %v4322_v13  ;;  %v1694_v16 = vmul.f32 %v1693_v11, %v4319_v25 }
 0xc9e   :  { %v1700_v17 = vadd.f32 %v1699_v12, %v1694_v16 }
 0xca0   :  { %v1701_v18 = vadd.f32 1e-05, %v1700_v17 }
 0xca2   :  { %4060 = vrsqrt.f32 %v1701_v18  ;;  %vm1708_vm5 = vweird.f32 %v1701_v18 }
 0xca8   :  { %v4061_v19 = vpop.eup %4060 }
 0xca9   :  { %v1703_v14 = vmul.f32 %v4061_v19, %v1701_v18  ;;  %vm1709_vm2 = vweird.f32 %v4061_v19 }
 0xcaa   :  { %vm1710_vm6 = vmor %vm1708_vm5, %vm1709_vm2 }
 0xcab   :  { %v1704_v26 = vmul.f32 %v4061_v19, %v1703_v14 }
 0xcad   :  { %v1705_v10 = vmul.f32 0.5, %v1704_v26 }
 0xcaf   :  { %v1706_v27 = vsub.f32 1.5, %v1705_v10 }
 0xcb1   :  { %v1707_v30 = vmul.f32 %v4061_v19, %v1706_v27 }
 0xcb3   :  { %v1711_v32 = vsel %vm1710_vm6, %v4061_v19, %v1707_v30  ;;  %v5594_v19 = vld [vmem:[%s6842_s8 + $0x10] sm:$0x3f] }
 0xcb4   :  { %v1712_v33 = vmul.f32 %v1711_v32, %v1688_v62  ;;  %v1875_v14 = vperm.slane %v5594_v19, 0 }
 0xcb6   :  { %v1714_v35 = vmul.f32 %v1713_v31, %v1712_v33 }
 0xcb8   :  { %v5557_v36 = vadd.f32 %v1715_v34, %v1714_v35 }
 0xcba   :  { %3630 = vmatmul.msk.f32.vlgmr.msra.gmra.mxu0 %vm94_vm3, %v5557_v36 }
 0xd37   :  { %v1753_v21 = vpop.f32.mrf.mxu0 }
 0xd38   :  { %v1754_v37 = vadd.f32 %v4039_v20, %v1753_v21 }
 0xd3a   :  { %v1763_v41 = vperm.slane %v1754_v37, 1  ;;  %v1756_v22 = vperm.slane %v1754_v37, 0 }
 0xd3c   :  { %1861 = vrot.lane.b32.xlu2 %v1763_v41, %s4120_s25  ;;  %1765 = vrot.lane.b32.xlu0 %v1763_v41, %s4121_s26 }
 0xd3d   :  { %1758 = vrot.lane.b32.xlu1 %v1756_v22, %s4121_s26 }
 0xd44   :  { %1857 = vrot.lane.b32.xlu0 %v1756_v22, %s4120_s25 }
 0xd96   :  { %v1862_v7 = vpop.permute.xlu2 %1861 }
 0xdae   :  { %v1766_v29 = vpop.permute.xlu0 %1765 }
 0xdaf   :  { %v1768_v42 = vmul.f32 %v1766_v29, %v1754_v37  ;;  %v1759_v39 = vpop.permute.xlu1 %1758 }
 0xdb0   :  { %v1761_v43 = vmul.f32 %v1759_v39, %v1754_v37 }
 0xdb1   :  { %1769 = vst.msk [vmem:[#allocation2 + $0x2] sm:$0x3] %vm128_vm4, %v1768_v42 }
 0xdb2   :  { %1762 = vst.msk [vmem:[#allocation2] sm:$0x3] %vm128_vm4, %v1761_v43  ;;  %v3674_v43 = vld [vmem:[%s6839_s5 + $0x380] sm:$0x1] }
 0xdb3   :  { %3683 = vmatpush.msk.msrb.mxu0 %vm98_vm1, %v3674_v43  ;;  %v3714_v43 = vld [vmem:[%s6841_s7 + $0x878] sm:$0xff] }
 0xdb6   :  { %v1858_v12 = vpop.permute.xlu0 %1857 }
 0xdb9   :  { %v1770_v5 = vld [vmem:[#allocation2] sm:$0xf] }
 0xdba   :  { %3632 = vmatmul.msk.f32.vlgmr.msra.gmra.mxu2 %vm94_vm3, %v1770_v5  ;;  %v3675_v5 = vld [vmem:[%s6839_s5 + $0x388] sm:$0x1] }
 0xdbb   :  { %3685 = vmatpush.msk.msrb.mxu1 %vm98_vm1, %v3675_v5  ;;  %v3730_v5 = vld [vmem:[%s6841_s7 + $0x8f8] sm:$0xff] }
 0xe3d   :  { %v1791_v44 = vpop.f32.mrf.mxu2 }
 0xe3e   :  { %v1795_v46 = vrot.slane %v1791_v44, 2 }
 0xe40   :  { %v1797_v23 = vmax.f32 %v1791_v44, %v1795_v46  ;;  %v3677_v46 = vld [vmem:[%s6839_s5 + $0x398] sm:$0x1] }
 0xe41   :  { %3689 = vmatpush.msk.msra.mxu3 %vm98_vm1, %v3677_v46  ;;  %v3713_v46 = vld [vmem:[%s6841_s7 + $0x870] sm:$0xff] }
 0xe42   :  { %v1798_v28 = vsub.f32 %v1791_v44, %v1797_v23  ;;  %v1802_v47 = vrot.slane %v1797_v23, 6  ;;  %v3666_v23 = vld [vmem:[%s6839_s5 + $0x340] sm:$0xff] }
 0xe43   :  { %2042 = vmatpush.msrb.mxu0 %v3666_v23  ;;  %v3729_v23 = vld [vmem:[%s6841_s7 + $0x8f0] sm:$0xff] }
 0xe44   :  { %v1804_v48 = vsub.f32 %v1791_v44, %v1802_v47  ;;  %v1799_v38 = vmul.f32 1.442695, %v1798_v28  ;;  %v3676_v44 = vld [vmem:[%s6839_s5 + $0x390] sm:$0x1]  ;;  %v3667_v28 = vld [vmem:[%s6839_s5 + $0x348] sm:$0xff] }
 0xe45   :  { %3687 = vmatpush.msk.msrb.mxu2 %vm98_vm1, %v3676_v44  ;;  %v3668_v47 = vld [vmem:[%s6839_s5 + $0x350] sm:$0xff]  ;;  %2062 = vmatpush.msrb.mxu1 %v3667_v28  ;;  %v3762_v44 = vld [vmem:[%s6841_s7 + $0x9f8] sm:$0xff] }
 0xe46   :  { %v1805_v49 = vmul.f32 1.442695, %v1804_v48  ;;  %v3669_v48 = vld [vmem:[%s6839_s5 + $0x358] sm:$0xff]  ;;  %v3745_v28 = vld [vmem:[%s6841_s7 + $0x970] sm:$0xff] }
 0xe47   :  { %2082 = vmatpush.msrb.mxu2 %v3668_v47  ;;  %2102 = vmatpush.msra.mxu3 %v3669_v48  ;;  %v3761_v47 = vld [vmem:[%s6841_s7 + $0x9f0] sm:$0xff]  ;;  %v3712_v48 = vld [vmem:[%s6841_s7 + $0x868] sm:$0xff] }
 0xe48   :  { %4062 = vpow2.f32 %v1805_v49  ;;  %v3659_v49 = vld [vmem:[%s6839_s5 + $0x308] sm:$0xff] }
 0xe49   :  { %4064 = vpow2.f32 %v1799_v38  ;;  %v3658_v38 = vld [vmem:[%s6839_s5 + $0x300] sm:$0xff]  ;;  %2063 = vmatpush.msrb.mxu1 %v3659_v49  ;;  %v3744_v49 = vld [vmem:[%s6841_s7 + $0x968] sm:$0xff] }
 0xe4a   :  { %2043 = vmatpush.msrb.mxu0 %v3658_v38  ;;  %v3728_v38 = vld [vmem:[%s6841_s7 + $0x8e8] sm:$0xff] }
 0xe4b   :  { %2064 = vmatpush.msrb.mxu1 %v3651_v53  ;;  %v3743_v53 = vld [vmem:[%s6841_s7 + $0x960] sm:$0xff] }
 0xe4e   :  { %v4063_v50 = vpop.eup %4062 }
 0xe4f   :  { %v1808_v51 = vrot.slane %v4063_v50, 2  ;;  %v4065_v52 = vpop.eup %4064 }
 0xe51   :  { %v1810_v24 = vadd.f32 %v4065_v52, %v1808_v51  ;;  %v3661_v51 = vld [vmem:[%s6839_s5 + $0x318] sm:$0xff] }
 0xe52   :  { %2103 = vmatpush.msra.mxu3 %v3661_v51  ;;  %v3711_v51 = vld [vmem:[%s6841_s7 + $0x860] sm:$0xff] }
 0xe53   :  { %4066 = vrcp.f32 %v1810_v24  ;;  %v1822_v57 = vand.u32 2147483648, %v1810_v24  ;;  %v1820_v59 = vand.u32 2147483647, %v1810_v24  ;;  %vm1816_vm8 = vweird.f32 %v1810_v24 }
 0xe55   :  { %v1823_v61 = vor.u32 1.1754944e-38, %v1822_v57  ;;  %vm1821_vm13 = vcmp.eq.f32.partialorder %v1820_v59, 8.507059e+37  ;;  %v3644_v57 = vld [vmem:[%s6839_s5 + $0x290] sm:$0xff]  ;;  %v3678_v59 = vld [vmem:[%s6839_s5 + $0x3a0] sm:$0x1] }
 0xe59   :  { %v4067_v54 = vpop.eup %4066 }
 0xe5a   :  { %v1812_v55 = vmul.f32 %v4067_v54, %v1810_v24  ;;  %vm1817_vm7 = vweird.f32 %v4067_v54  ;;  %v3652_v24 = vld [vmem:[%s6839_s5 + $0x2d0] sm:$0xff] }
 0xe5b   :  { %vm1818_vm12 = vmor %vm1816_vm8, %vm1817_vm7 }
 0xe5c   :  { %v1813_v56 = vsub.f32 1.0, %v1812_v55  ;;  %v3642_v55 = vld [vmem:[%s6839_s5 + $0x280] sm:$0xff] }
 0xe5e   :  { %v1814_v58 = vmul.f32 %v4067_v54, %v1813_v56  ;;  %v3643_v56 = vld [vmem:[%s6839_s5 + $0x288] sm:$0xff] }
 0xe5f   :  { %2065 = vmatpush.msrb.mxu1 %v3643_v56  ;;  %v3742_v56 = vld [vmem:[%s6841_s7 + $0x958] sm:$0xff] }
 0xe60   :  { %v1815_v60 = vadd.f32 %v4067_v54, %v1814_v58  ;;  %v3645_v58 = vld [vmem:[%s6839_s5 + $0x298] sm:$0xff] }
 0xe62   :  { %v1819_v62 = vsel %vm1818_vm12, %v4067_v54, %v1815_v60  ;;  %v3653_v54 = vld [vmem:[%s6839_s5 + $0x2d8] sm:$0xff]  ;;  %v3679_v60 = vld [vmem:[%s6839_s5 + $0x3a8] sm:$0x1] }
 0xe63   :  { %v1824_v63 = vsel %vm1821_vm13, %v1823_v61, %v1819_v62  ;;  %2104 = vmatpush.msra.mxu3 %v3653_v54  ;;  %v3680_v61 = vld [vmem:[%s6839_s5 + $0x3b0] sm:$0x1]  ;;  %v3681_v62 = vld [vmem:[%s6839_s5 + $0x3b8] sm:$0x1] }
 0xe64   :  { %v1826_v45 = vmul.f32 %v4065_v52, %v1824_v63  ;;  %v1829_v0 = vrot.slane %v1824_v63, 6  ;;  %v3650_v52 = vld [vmem:[%s6839_s5 + $0x2c0] sm:$0xff]  ;;  %v3710_v54 = vld [vmem:[%s6841_s7 + $0x858] sm:$0xff] }
 0xe65   :  { %2044 = vmatpush.msrb.mxu0 %v3650_v52  ;;  %2105 = vmatpush.msra.mxu3 %v3645_v58  ;;  %v3727_v52 = vld [vmem:[%s6841_s7 + $0x8e0] sm:$0xff]  ;;  %v3709_v58 = vld [vmem:[%s6841_s7 + $0x850] sm:$0xff] }
 0xe66   :  { %1827 = vst.msk [vmem:[#allocation3] sm:$0x3] %vm197_vm9, %v1826_v45  ;;  %v1831_v1 = vmul.f32 %v4063_v50, %v1829_v0  ;;  %v3660_v50 = vld [vmem:[%s6839_s5 + $0x310] sm:$0xff]  ;;  %v3670_v0 = vld [vmem:[%s6839_s5 + $0x360] sm:$0xff] }
 0xe67   :  { %2083 = vmatpush.msrb.mxu2 %v3660_v50  ;;  %2045 = vmatpush.msrb.mxu0 %v3642_v55  ;;  %v3760_v50 = vld [vmem:[%s6841_s7 + $0x9e8] sm:$0xff]  ;;  %v3726_v55 = vld [vmem:[%s6841_s7 + $0x8d8] sm:$0xff] }
 0xe68   :  { %1832 = vst.msk [vmem:[#allocation3] sm:$0xc] %vm203_vm10, %v1831_v1  ;;  %v3671_v1 = vld [vmem:[%s6839_s5 + $0x368] sm:$0xff] }
 0xe69   :  { %2084 = vmatpush.msrb.mxu2 %v3652_v24  ;;  %3691 = vmatpush.msk.msra.mxu0 %vm98_vm1, %v3678_v59  ;;  %v3759_v24 = vld [vmem:[%s6841_s7 + $0x9e0] sm:$0xff]  ;;  %v3725_v59 = vld [vmem:[%s6841_s7 + $0x8d0] sm:$0xff] }
 0xe6b   :  { %2085 = vmatpush.msrb.mxu2 %v3644_v57  ;;  %2122 = vmatpush.msra.mxu0 %v3670_v0  ;;  %v3758_v57 = vld [vmem:[%s6841_s7 + $0x9d8] sm:$0xff]  ;;  %v3756_v0 = vld [vmem:[%s6841_s7 + $0x9c8] sm:$0xff] }
 0xe6d   :  { %3695 = vmatpush.msk.msra.mxu2 %vm98_vm1, %v3680_v61  ;;  %2123 = vmatpush.msra.mxu0 %v3662_v6  ;;  %v3757_v61 = vld [vmem:[%s6841_s7 + $0x9d0] sm:$0xff]  ;;  %v3722_v6 = vld [vmem:[%s6841_s7 + $0x8b8] sm:$0xff] }
 0xe6f   :  { %v1833_v2 = vld [vmem:[#allocation3] sm:$0xf] }
 0xe70   :  { %3634 = vmatmul.msk.f32.vlgmr.msra.gmra.mxu1 %vm206_vm11, %v1833_v2  ;;  %v3672_v2 = vld [vmem:[%s6839_s5 + $0x370] sm:$0xff] }
 0xe71   :  { %3693 = vmatpush.msk.msra.mxu1 %vm98_vm1, %v3679_v60  ;;  %2162 = vmatpush.msra.mxu2 %v3672_v2  ;;  %v3741_v60 = vld [vmem:[%s6841_s7 + $0x950] sm:$0xff]  ;;  %v3723_v2 = vld [vmem:[%s6841_s7 + $0x8c0] sm:$0xff] }
 0xe73   :  { %2142 = vmatpush.msra.mxu1 %v3671_v1  ;;  %v3707_v1 = vld [vmem:[%s6841_s7 + $0x840] sm:$0xff] }
 0xeed   :  { %v1854_v9 = vpop.f32.mrf.mxu1 }
 0xeee   :  { %v1864_v11 = vmul.f32 %v1862_v7, %v1854_v9  ;;  %v1860_v16 = vmul.f32 %v1858_v12, %v1854_v9  ;;  %v3663_v7 = vld [vmem:[%s6839_s5 + $0x328] sm:$0xff]  ;;  %v3664_v9 = vld [vmem:[%s6839_s5 + $0x330] sm:$0xff]  ;;  %v3654_v12 = vld [vmem:[%s6839_s5 + $0x2e0] sm:$0xff] }
 0xeef   :  { %2143 = vmatpush.msra.mxu1 %v3663_v7  ;;  %2163 = vmatpush.msra.mxu2 %v3664_v9  ;;  %v3738_v7 = vld [vmem:[%s6841_s7 + $0x938] sm:$0xff] }
 0xef0   :  { %v1866_v17 = vrot.slane %v1864_v11, 2  ;;  %v3665_v11 = vld [vmem:[%s6839_s5 + $0x338] sm:$0xff]  ;;  %2124 = vmatpush.msra.mxu0 %v3654_v12  ;;  %v3721_v12 = vld [vmem:[%s6841_s7 + $0x8b0] sm:$0xff] }
 0xef1   :  { %v3754_v9 = vld [vmem:[%s6841_s7 + $0x9b8] sm:$0xff] }
 0xef2   :  { %v1868_v18 = vadd.f32 %v1866_v17, %v1860_v16  ;;  %v3655_v17 = vld [vmem:[%s6839_s5 + $0x2e8] sm:$0xff] }
 0xef3   :  { %2144 = vmatpush.msra.mxu1 %v3655_v17  ;;  %v3753_v17 = vld [vmem:[%s6841_s7 + $0x9b0] sm:$0xff] }
 0xef4   :  { %3641 = vmatmul.msk.f32.vlgmr.msrb.gmra.mxu3 %vm94_vm3, %v1868_v18  ;;  %v3656_v18 = vld [vmem:[%s6839_s5 + $0x2f0] sm:$0xff] }
 0xef5   :  { %3697 = vmatpush.msk.msrb.mxu3 %vm98_vm1, %v3681_v62  ;;  %2164 = vmatpush.msra.mxu2 %v3656_v18  ;;  %v3708_v62 = vld [vmem:[%s6841_s7 + $0x848] sm:$0xff] }
 0xef6   :  { %v3704_v18 = vld [vmem:[%s6841_s7 + $0x828] sm:$0xff] }
 0xef7   :  { %2182 = vmatpush.msrb.mxu3 %v3673_v4  ;;  %v3706_v4 = vld [vmem:[%s6841_s7 + $0x838] sm:$0xff] }
 0xef9   :  { %2183 = vmatpush.msrb.mxu3 %v3665_v11  ;;  %v3705_v11 = vld [vmem:[%s6841_s7 + $0x830] sm:$0xff] }
 0xf77   :  { %v1899_v26 = vpop.f32.mrf.mxu3 }
 0xf78   :  { %v1900_v10 = vadd.f32 %v1899_v26, %v1875_v14  ;;  %v3657_v14 = vld [vmem:[%s6839_s5 + $0x2f8] sm:$0xff]  ;;  %v3646_v26 = vld [vmem:[%s6839_s5 + $0x2a0] sm:$0xff] }
 0xf79   :  { %2184 = vmatpush.msrb.mxu3 %v3657_v14  ;;  %2125 = vmatpush.msra.mxu0 %v3646_v26  ;;  %v3720_v14 = vld [vmem:[%s6841_s7 + $0x8a8] sm:$0xff] }
 0xf7a   :  { %v1902_v27 = vadd.f32 %v1900_v10, %v5557_v36  ;;  %v3647_v10 = vld [vmem:[%s6839_s5 + $0x2a8] sm:$0xff] }
 0xf7b   :  { %2145 = vmatpush.msra.mxu1 %v3647_v10  ;;  %v3736_v26 = vld [vmem:[%s6841_s7 + $0x928] sm:$0xff] }
 0xf7c   :  { %v1908_v30 = vmul.f32 %v1902_v27, %v4313_v15  ;;  %v1903_v31 = vmul.f32 %v1902_v27, %v4307_v8  ;;  %v3752_v10 = vld [vmem:[%s6841_s7 + $0x9a8] sm:$0xff] }
 0xf7e   :  { %v1909_v32 = vsel %vm128_vm4, %v1908_v30, 0.0  ;;  %v1904_v33 = vsel %vm128_vm4, %v1903_v31, 0.0  ;;  %v3648_v30 = vld [vmem:[%s6839_s5 + $0x2b0] sm:$0xff]  ;;  %v3649_v31 = vld [vmem:[%s6839_s5 + $0x2b8] sm:$0xff] }
 0xf7f   :  { %1910 = vadd.xlane.f32.xlu2 %v1909_v32  ;;  %1905 = vadd.xlane.f32.xlu1 %v1904_v33 }
 0xf80   :  { %2165 = vmatpush.msra.mxu2 %v3648_v30  ;;  %2185 = vmatpush.msrb.mxu3 %v3649_v31  ;;  %v3719_v30 = vld [vmem:[%s6841_s7 + $0x8a0] sm:$0xff] }
 0xf81   :  { %v3735_v31 = vld [vmem:[%s6841_s7 + $0x920] sm:$0xff] }
 0xff2   :  { %v1911_v34 = vpop.xlane.xlu2 %1910  ;;  %v1906_v35 = vpop.xlane.xlu1 %1905 }
 0xff3   :  { %v1912_v20 = vmul.f32 %v1911_v34, %v4322_v13  ;;  %v1907_v21 = vmul.f32 %v1906_v35, %v4319_v25 }
 0xff5   :  { %v1913_v37 = vadd.f32 %v1912_v20, %v1907_v21 }
 0xff7   :  { %v5604_v41 = vsub.f32 %v1902_v27, %v1913_v37  ;;  %v1939_v37 = vperm.slane %v5594_v19, 1 }
 0xff9   :  { %v1915_v36 = vmul.f32 %v5604_v41, %v5604_v41 }
 0xffb   :  { %v1921_v22 = vmul.f32 %v1915_v36, %v4313_v15  ;;  %v1916_v29 = vmul.f32 %v1915_v36, %v4307_v8 }
 0xffd   :  { %v1922_v42 = vsel %vm128_vm4, %v1921_v22, 0.0  ;;  %v1917_v39 = vsel %vm128_vm4, %v1916_v29, 0.0  ;;  %v1941_v22 = vperm.slane %v5594_v19, 2 }
 0xffe   :  { %1923 = vadd.xlane.f32.xlu1 %v1922_v42  ;;  %1918 = vadd.xlane.f32.xlu0 %v1917_v39 }
0x1071   :  { %v1924_v63 = vpop.xlane.xlu1 %1923  ;;  %v1919_v45 = vpop.xlane.xlu0 %1918 }
0x1072   :  { %v1925_v3 = vmul.f32 %v1924_v63, %v4322_v13  ;;  %v1920_v40 = vmul.f32 %v1919_v45, %v4319_v25  ;;  %v3724_v63 = vld [vmem:[%s6841_s7 + $0x8c8] sm:$0xff] }
0x1073   :  { %v3740_v45 = vld [vmem:[%s6841_s7 + $0x948] sm:$0xff] }
0x1074   :  { %v1926_v16 = vadd.f32 %v1925_v3, %v1920_v40  ;;  %v3739_v3 = vld [vmem:[%s6841_s7 + $0x940] sm:$0xff] }
0x1075   :  { %v3755_v40 = vld [vmem:[%s6841_s7 + $0x9c0] sm:$0xff] }
0x1076   :  { %v1927_v27 = vadd.f32 1e-05, %v1926_v16  ;;  %v3737_v16 = vld [vmem:[%s6841_s7 + $0x930] sm:$0xff] }
0x1078   :  { %4068 = vrsqrt.f32 %v1927_v27  ;;  %vm1934_vm15 = vweird.f32 %v1927_v27 }
0x107e   :  { %v4069_v32 = vpop.eup %4068 }
0x107f   :  { %v1929_v33 = vmul.f32 %v4069_v32, %v1927_v27  ;;  %vm1935_vm14 = vweird.f32 %v4069_v32  ;;  %v3703_v27 = vld [vmem:[%s6841_s7 + $0x820] sm:$0xff] }
0x1080   :  { %vm1936_vm2 = vmor %vm1934_vm15, %vm1935_vm14 }
0x1081   :  { %v1930_v34 = vmul.f32 %v4069_v32, %v1929_v33  ;;  %v3702_v33 = vld [vmem:[%s6841_s7 + $0x818] sm:$0xff] }
0x1083   :  { %v1931_v35 = vmul.f32 0.5, %v1930_v34  ;;  %v3718_v34 = vld [vmem:[%s6841_s7 + $0x898] sm:$0xff] }
0x1085   :  { %v1932_v20 = vsub.f32 1.5, %v1931_v35  ;;  %v3734_v35 = vld [vmem:[%s6841_s7 + $0x918] sm:$0xff] }
0x1087   :  { %v1933_v21 = vmul.f32 %v4069_v32, %v1932_v20  ;;  %v3750_v20 = vld [vmem:[%s6841_s7 + $0x998] sm:$0xff] }
0x1089   :  { %v1937_v36 = vsel %vm1936_vm2, %v4069_v32, %v1933_v21  ;;  %v3751_v32 = vld [vmem:[%s6841_s7 + $0x9a0] sm:$0xff]  ;;  %v3701_v21 = vld [vmem:[%s6841_s7 + $0x810] sm:$0xff] }
0x108a   :  { %v1938_v29 = vmul.f32 %v1937_v36, %v5604_v41  ;;  %v3746_v41 = vld [vmem:[%s6841_s7 + $0x978] sm:$0xff]  ;;  %v3733_v36 = vld [vmem:[%s6841_s7 + $0x910] sm:$0xff] }
0x108c   :  { %v1940_v42 = vmul.f32 %v1939_v37, %v1938_v29  ;;  %v3717_v37 = vld [vmem:[%s6841_s7 + $0x890] sm:$0xff]  ;;  %v3700_v29 = vld [vmem:[%s6841_s7 + $0x808] sm:$0xff] }
0x108e   :  { %v5745_v39 = vadd.f32 %v1941_v22, %v1940_v42  ;;  %v3749_v22 = vld [vmem:[%s6841_s7 + $0x990] sm:$0xff]  ;;  %v3716_v42 = vld [vmem:[%s6841_s7 + $0x888] sm:$0xff] }
0x1090   :  { %3684 = vmatmul.msk.f32.vlgmr.msrb.gmra.mxu0 %vm94_vm3, %v5745_v39  ;;  %3686 = vmatmul.msk.f32.vlgmr.msrb.gmra.mxu1 %vm94_vm3, %v5745_v39 }
0x1091   :  { %3688 = vmatmul.msk.f32.vlgmr.msrb.gmra.mxu2 %vm94_vm3, %v5745_v39  ;;  %3690 = vmatmul.msk.f32.vlgmr.msra.gmra.mxu3 %vm94_vm3, %v5745_v39 }
0x1092   :  { %2328 = vmatpush.msrb.mxu0 %v3714_v43  ;;  %2348 = vmatpush.msrb.mxu1 %v3730_v5  ;;  %v3732_v43 = vld [vmem:[%s6841_s7 + $0x908] sm:$0xff] }
0x1093   :  { %2368 = vmatpush.msrb.mxu2 %v3746_v41  ;;  %2388 = vmatpush.msra.mxu3 %v3762_v44  ;;  %v3748_v5 = vld [vmem:[%s6841_s7 + $0x988] sm:$0xff]  ;;  %v3699_v41 = vld [vmem:[%s6841_s7 + $0x800] sm:$0xff] }
0x1094   :  { %2329 = vmatpush.msrb.mxu0 %v3713_v46  ;;  %2349 = vmatpush.msrb.mxu1 %v3729_v23  ;;  %v3715_v44 = vld [vmem:[%s6841_s7 + $0x880] sm:$0xff]  ;;  %v3778_v46 = vld [vmem:[%s6841_s7 + $0xa78] sm:$0xff] }
0x1095   :  { %2369 = vmatpush.msrb.mxu2 %v3745_v28  ;;  %2389 = vmatpush.msra.mxu3 %v3761_v47  ;;  %v3794_v23 = vld [vmem:[%s6841_s7 + $0xaf8] sm:$0xff]  ;;  %v3731_v28 = vld [vmem:[%s6841_s7 + $0x900] sm:$0xff] }
0x1096   :  { %2330 = vmatpush.msrb.mxu0 %v3712_v48  ;;  %2350 = vmatpush.msrb.mxu1 %v3728_v38  ;;  %v3747_v47 = vld [vmem:[%s6841_s7 + $0x980] sm:$0xff]  ;;  %v3777_v48 = vld [vmem:[%s6841_s7 + $0xa70] sm:$0xff] }
0x1097   :  { %2370 = vmatpush.msrb.mxu2 %v3744_v49  ;;  %2390 = vmatpush.msra.mxu3 %v3760_v50  ;;  %v3793_v38 = vld [vmem:[%s6841_s7 + $0xaf0] sm:$0xff]  ;;  %v3810_v49 = vld [vmem:[%s6841_s7 + $0xb78] sm:$0xff] }
0x1098   :  { %3692 = vmatmul.msk.f32.vlgmr.msra.gmra.mxu0 %vm94_vm3, %v5745_v39  ;;  %3694 = vmatmul.msk.f32.vlgmr.msra.gmra.mxu1 %vm94_vm3, %v5745_v39  ;;  %v3826_v50 = vld [vmem:[%s6841_s7 + $0xbf8] sm:$0xff] }
0x1099   :  { %3696 = vmatmul.msk.f32.vlgmr.msra.gmra.mxu2 %vm94_vm3, %v5745_v39  ;;  %3698 = vmatmul.msk.f32.vlgmr.msrb.gmra.mxu3 %vm94_vm3, %v5745_v39 }
0x109a   :  { %2331 = vmatpush.msrb.mxu0 %v3711_v51  ;;  %2351 = vmatpush.msrb.mxu1 %v3727_v52  ;;  %v3776_v51 = vld [vmem:[%s6841_s7 + $0xa68] sm:$0xff] }
0x109b   :  { %2371 = vmatpush.msrb.mxu2 %v3743_v53  ;;  %2391 = vmatpush.msra.mxu3 %v3759_v24  ;;  %v3792_v52 = vld [vmem:[%s6841_s7 + $0xae8] sm:$0xff]  ;;  %v3809_v53 = vld [vmem:[%s6841_s7 + $0xb70] sm:$0xff] }
0x109c   :  { %2332 = vmatpush.msrb.mxu0 %v3710_v54  ;;  %2352 = vmatpush.msrb.mxu1 %v3726_v55  ;;  %v3825_v24 = vld [vmem:[%s6841_s7 + $0xbf0] sm:$0xff]  ;;  %v3775_v54 = vld [vmem:[%s6841_s7 + $0xa60] sm:$0xff] }
0x109d   :  { %2372 = vmatpush.msrb.mxu2 %v3742_v56  ;;  %2392 = vmatpush.msra.mxu3 %v3758_v57  ;;  %v3791_v55 = vld [vmem:[%s6841_s7 + $0xae0] sm:$0xff]  ;;  %v3808_v56 = vld [vmem:[%s6841_s7 + $0xb68] sm:$0xff] }
0x109e   :  { %2333 = vmatpush.msrb.mxu0 %v3709_v58  ;;  %2353 = vmatpush.msrb.mxu1 %v3725_v59  ;;  %v3824_v57 = vld [vmem:[%s6841_s7 + $0xbe8] sm:$0xff]  ;;  %v3774_v58 = vld [vmem:[%s6841_s7 + $0xa58] sm:$0xff] }
0x109f   :  { %2373 = vmatpush.msrb.mxu2 %v3741_v60  ;;  %2393 = vmatpush.msra.mxu3 %v3757_v61  ;;  %v3790_v59 = vld [vmem:[%s6841_s7 + $0xad8] sm:$0xff]  ;;  %v3807_v60 = vld [vmem:[%s6841_s7 + $0xb60] sm:$0xff] }
0x10a0   :  { %2334 = vmatpush.msrb.mxu0 %v3708_v62  ;;  %2354 = vmatpush.msrb.mxu1 %v3724_v63  ;;  %v3823_v61 = vld [vmem:[%s6841_s7 + $0xbe0] sm:$0xff]  ;;  %v3773_v62 = vld [vmem:[%s6841_s7 + $0xa50] sm:$0xff] }
0x10a1   :  { %2374 = vmatpush.msrb.mxu2 %v3740_v45  ;;  %2394 = vmatpush.msra.mxu3 %v3756_v0  ;;  %v3789_v63 = vld [vmem:[%s6841_s7 + $0xad0] sm:$0xff]  ;;  %v3806_v45 = vld [vmem:[%s6841_s7 + $0xb58] sm:$0xff] }
0x10a2   :  { %2335 = vmatpush.msrb.mxu0 %v3707_v1  ;;  %2355 = vmatpush.msrb.mxu1 %v3723_v2  ;;  %v3822_v0 = vld [vmem:[%s6841_s7 + $0xbd8] sm:$0xff]  ;;  %v3772_v1 = vld [vmem:[%s6841_s7 + $0xa48] sm:$0xff] }
0x10a3   :  { %2375 = vmatpush.msrb.mxu2 %v3739_v3  ;;  %2395 = vmatpush.msra.mxu3 %v3755_v40  ;;  %v3788_v2 = vld [vmem:[%s6841_s7 + $0xac8] sm:$0xff]  ;;  %v3805_v3 = vld [vmem:[%s6841_s7 + $0xb50] sm:$0xff] }
0x10a4   :  { %2336 = vmatpush.msrb.mxu0 %v3706_v4  ;;  %2356 = vmatpush.msrb.mxu1 %v3722_v6  ;;  %v3821_v40 = vld [vmem:[%s6841_s7 + $0xbd0] sm:$0xff]  ;;  %v3771_v4 = vld [vmem:[%s6841_s7 + $0xa40] sm:$0xff] }
0x10a5   :  { %2376 = vmatpush.msrb.mxu2 %v3738_v7  ;;  %2396 = vmatpush.msra.mxu3 %v3754_v9  ;;  %v3787_v6 = vld [vmem:[%s6841_s7 + $0xac0] sm:$0xff]  ;;  %v3770_v7 = vld [vmem:[%s6841_s7 + $0xa38] sm:$0xff] }
0x10a6   :  { %2337 = vmatpush.msrb.mxu0 %v3705_v11  ;;  %2357 = vmatpush.msrb.mxu1 %v3721_v12  ;;  %v3786_v9 = vld [vmem:[%s6841_s7 + $0xab8] sm:$0xff]  ;;  %v3769_v11 = vld [vmem:[%s6841_s7 + $0xa30] sm:$0xff] }
0x10a7   :  { %2377 = vmatpush.msrb.mxu2 %v3737_v16  ;;  %2397 = vmatpush.msra.mxu3 %v3753_v17  ;;  %v3785_v12 = vld [vmem:[%s6841_s7 + $0xab0] sm:$0xff]  ;;  %v3804_v16 = vld [vmem:[%s6841_s7 + $0xb48] sm:$0xff] }
0x10a8   :  { %2338 = vmatpush.msrb.mxu0 %v3704_v18  ;;  %2358 = vmatpush.msrb.mxu1 %v3720_v14  ;;  %v3820_v17 = vld [vmem:[%s6841_s7 + $0xbc8] sm:$0xff] }
0x10a9   :  { %2378 = vmatpush.msrb.mxu2 %v3736_v26  ;;  %2398 = vmatpush.msra.mxu3 %v3752_v10  ;;  %v3768_v18 = vld [vmem:[%s6841_s7 + $0xa28] sm:$0xff]  ;;  %v3803_v26 = vld [vmem:[%s6841_s7 + $0xb40] sm:$0xff] }
0x10aa   :  { %2339 = vmatpush.msrb.mxu0 %v3703_v27  ;;  %2359 = vmatpush.msrb.mxu1 %v3719_v30  ;;  %v3784_v14 = vld [vmem:[%s6841_s7 + $0xaa8] sm:$0xff]  ;;  %v3819_v10 = vld [vmem:[%s6841_s7 + $0xbc0] sm:$0xff] }
0x10ab   :  { %2379 = vmatpush.msrb.mxu2 %v3735_v31  ;;  %2399 = vmatpush.msra.mxu3 %v3751_v32  ;;  %v3767_v27 = vld [vmem:[%s6841_s7 + $0xa20] sm:$0xff]  ;;  %v3802_v31 = vld [vmem:[%s6841_s7 + $0xb38] sm:$0xff] }
0x10ac   :  { %2340 = vmatpush.msrb.mxu0 %v3702_v33  ;;  %2360 = vmatpush.msrb.mxu1 %v3718_v34  ;;  %v3783_v30 = vld [vmem:[%s6841_s7 + $0xaa0] sm:$0xff]  ;;  %v3818_v32 = vld [vmem:[%s6841_s7 + $0xbb8] sm:$0xff] }
0x10ad   :  { %2380 = vmatpush.msrb.mxu2 %v3734_v35  ;;  %2400 = vmatpush.msra.mxu3 %v3750_v20  ;;  %v3766_v33 = vld [vmem:[%s6841_s7 + $0xa18] sm:$0xff]  ;;  %v3801_v35 = vld [vmem:[%s6841_s7 + $0xb30] sm:$0xff] }
0x10ae   :  { %2341 = vmatpush.msrb.mxu0 %v3701_v21  ;;  %2361 = vmatpush.msrb.mxu1 %v3717_v37  ;;  %v3782_v34 = vld [vmem:[%s6841_s7 + $0xa98] sm:$0xff]  ;;  %v3817_v20 = vld [vmem:[%s6841_s7 + $0xbb0] sm:$0xff] }
0x10af   :  { %2381 = vmatpush.msrb.mxu2 %v3733_v36  ;;  %2401 = vmatpush.msra.mxu3 %v3749_v22  ;;  %v3765_v21 = vld [vmem:[%s6841_s7 + $0xa10] sm:$0xff]  ;;  %v3800_v36 = vld [vmem:[%s6841_s7 + $0xb28] sm:$0xff] }
0x10b0   :  { %2342 = vmatpush.msrb.mxu0 %v3700_v29  ;;  %2362 = vmatpush.msrb.mxu1 %v3716_v42  ;;  %v3781_v37 = vld [vmem:[%s6841_s7 + $0xa90] sm:$0xff]  ;;  %v3816_v22 = vld [vmem:[%s6841_s7 + $0xba8] sm:$0xff] }
0x10b1   :  { %2382 = vmatpush.msrb.mxu2 %v3732_v43  ;;  %2402 = vmatpush.msra.mxu3 %v3748_v5  ;;  %v3764_v29 = vld [vmem:[%s6841_s7 + $0xa08] sm:$0xff]  ;;  %v3799_v43 = vld [vmem:[%s6841_s7 + $0xb20] sm:$0xff] }
0x10b2   :  { %2343 = vmatpush.msrb.mxu0 %v3699_v41  ;;  %2363 = vmatpush.msrb.mxu1 %v3715_v44  ;;  %v3780_v42 = vld [vmem:[%s6841_s7 + $0xa88] sm:$0xff]  ;;  %v3815_v5 = vld [vmem:[%s6841_s7 + $0xba0] sm:$0xff] }
0x10b3   :  { %2383 = vmatpush.msrb.mxu2 %v3731_v28  ;;  %2403 = vmatpush.msra.mxu3 %v3747_v47  ;;  %v3763_v41 = vld [vmem:[%s6841_s7 + $0xa00] sm:$0xff]  ;;  %v3797_v28 = vld [vmem:[%s6841_s7 + $0xb10] sm:$0xff] }
0x10b4   :  { %2408 = vmatpush.msra.mxu0 %v3778_v46  ;;  %2428 = vmatpush.msra.mxu1 %v3794_v23  ;;  %v3779_v44 = vld [vmem:[%s6841_s7 + $0xa80] sm:$0xff]  ;;  %v3798_v46 = vld [vmem:[%s6841_s7 + $0xb18] sm:$0xff]  ;;  %v3813_v47 = vld [vmem:[%s6841_s7 + $0xb90] sm:$0xff] }
0x10b5   :  { %2448 = vmatpush.msra.mxu2 %v3810_v49  ;;  %2468 = vmatpush.msrb.mxu3 %v3826_v50  ;;  %v3814_v23 = vld [vmem:[%s6841_s7 + $0xb98] sm:$0xff]  ;;  %v3795_v49 = vld [vmem:[%s6841_s7 + $0xb00] sm:$0xff] }
0x10b6   :  { %2409 = vmatpush.msra.mxu0 %v3777_v48  ;;  %2429 = vmatpush.msra.mxu1 %v3793_v38  ;;  %v3796_v48 = vld [vmem:[%s6841_s7 + $0xb08] sm:$0xff]  ;;  %v3811_v50 = vld [vmem:[%s6841_s7 + $0xb80] sm:$0xff] }
0x10b7   :  { %2449 = vmatpush.msra.mxu2 %v3809_v53  ;;  %2469 = vmatpush.msrb.mxu3 %v3825_v24  ;;  %v3812_v38 = vld [vmem:[%s6841_s7 + $0xb88] sm:$0xff] }
0x10b8   :  { %2410 = vmatpush.msra.mxu0 %v3776_v51  ;;  %2430 = vmatpush.msra.mxu1 %v3792_v52  ;;  %v3682_v51 = vld [vmem:[%s6840_s6 + $0x10] sm:$0xff] }
0x10b9   :  { %2450 = vmatpush.msra.mxu2 %v3808_v56  ;;  %2470 = vmatpush.msrb.mxu3 %v3824_v57  ;;  %v1987_v52 = vperm.slane %v3682_v51, 0  ;;  %v1988_v53 = vperm.slane %v3682_v51, 1 }
0x10ba   :  { %2411 = vmatpush.msra.mxu0 %v3775_v54  ;;  %2431 = vmatpush.msra.mxu1 %v3791_v55 }
0x10bb   :  { %2451 = vmatpush.msra.mxu2 %v3807_v60  ;;  %2471 = vmatpush.msrb.mxu3 %v3823_v61  ;;  %v1990_v60 = vperm.slane %v3682_v51, 3  ;;  %v1991_v61 = vperm.slane %v3682_v51, 4 }
0x10bc   :  { %2412 = vmatpush.msra.mxu0 %v3774_v58  ;;  %2432 = vmatpush.msra.mxu1 %v3790_v59  ;;  %v1989_v59 = vperm.slane %v3682_v51, 2 }
0x10bd   :  { %2452 = vmatpush.msra.mxu2 %v3806_v45  ;;  %2472 = vmatpush.msrb.mxu3 %v3822_v0 }
0x10be   :  { %2413 = vmatpush.msra.mxu0 %v3773_v62  ;;  %2433 = vmatpush.msra.mxu1 %v3789_v63  ;;  %v1992_v62 = vperm.slane %v3682_v51, 5  ;;  %v4088_v63 = vld [vmem:[%s6844_s10 + $0x20] sm:$0x1] }
0x10bf   :  { %2453 = vmatpush.msra.mxu2 %v3805_v3  ;;  %2473 = vmatpush.msrb.mxu3 %v3821_v40 }
0x10c0   :  { %2414 = vmatpush.msra.mxu0 %v3772_v1  ;;  %2434 = vmatpush.msra.mxu1 %v3788_v2 }
0x10c1   :  { %2454 = vmatpush.msra.mxu2 %v3804_v16  ;;  %2474 = vmatpush.msrb.mxu3 %v3820_v17 }
0x10c2   :  { %2415 = vmatpush.msra.mxu0 %v3771_v4  ;;  %2435 = vmatpush.msra.mxu1 %v3787_v6  ;;  %v4089_v4 = vld [vmem:[%s6844_s10 + $0x18] sm:$0xff] }
0x10c3   :  { %2455 = vmatpush.msra.mxu2 %v3803_v26  ;;  %2475 = vmatpush.msrb.mxu3 %v3819_v10  ;;  %v4091_v26 = vld [vmem:[%s6844_s10 + $0x8] sm:$0xff]  ;;  %v4092_v10 = vld [vmem:[%s6843_s9] sm:$0xff] }
0x10c4   :  { %2416 = vmatpush.msra.mxu0 %v3770_v7  ;;  %2436 = vmatpush.msra.mxu1 %v3786_v9 }
0x10c5   :  { %2456 = vmatpush.msra.mxu2 %v3802_v31  ;;  %2476 = vmatpush.msrb.mxu3 %v3818_v32 }
0x10c6   :  { %2417 = vmatpush.msra.mxu0 %v3769_v11  ;;  %2437 = vmatpush.msra.mxu1 %v3785_v12  ;;  %v4090_v12 = vld [vmem:[%s6844_s10 + $0x10] sm:$0xff] }
0x10c7   :  { %2457 = vmatpush.msra.mxu2 %v3801_v35  ;;  %2477 = vmatpush.msrb.mxu3 %v3817_v20  ;;  %v2327_v20 = vperm.slane %v5594_v19, 3 }
0x10c8   :  { %2418 = vmatpush.msra.mxu0 %v3768_v18  ;;  %2438 = vmatpush.msra.mxu1 %v3784_v14  ;;  %v1993_v18 = vperm.slane %v3682_v51, 6  ;;  %v1994_v14 = vperm.slane %v3682_v51, 7 }
0x10c9   :  { %2458 = vmatpush.msra.mxu2 %v3800_v36  ;;  %2478 = vmatpush.msrb.mxu3 %v3816_v22 }
0x10ca   :  { %2419 = vmatpush.msra.mxu0 %v3767_v27  ;;  %2439 = vmatpush.msra.mxu1 %v3783_v30 }
0x10cb   :  { %2459 = vmatpush.msra.mxu2 %v3799_v43  ;;  %2479 = vmatpush.msrb.mxu3 %v3815_v5 }
0x10cc   :  { %2420 = vmatpush.msra.mxu0 %v3766_v33  ;;  %2440 = vmatpush.msra.mxu1 %v3782_v34  ;;  %v4093_v33 = vld [vmem:[%s6844_s10] sm:$0xff]  ;;  %s3382_s10 = sshll.u32 %s6846_s12, 4  ;;  %s3383_s10 = int_to_ptr.hbm [resolvable:$true] %s3382_s10 }
0x10cd   :  { %2460 = vmatpush.msra.mxu2 %v3798_v46  ;;  %2480 = vmatpush.msrb.mxu3 %v3814_v23 }
0x10ce   :  { %2421 = vmatpush.msra.mxu0 %v3765_v21  ;;  %2441 = vmatpush.msra.mxu1 %v3781_v37 }
0x10cf   :  { %2461 = vmatpush.msra.mxu2 %v3797_v28  ;;  %2481 = vmatpush.msrb.mxu3 %v3813_v47 }
0x10d0   :  { %2422 = vmatpush.msra.mxu0 %v3764_v29  ;;  %2442 = vmatpush.msra.mxu1 %v3780_v42 }
0x10d1   :  { %2462 = vmatpush.msra.mxu2 %v3796_v48  ;;  %2482 = vmatpush.msrb.mxu3 %v3812_v38 }
0x10d2   :  { %2423 = vmatpush.msra.mxu0 %v3763_v41  ;;  %2443 = vmatpush.msra.mxu1 %v3779_v44 }
0x10d3   :  { %2463 = vmatpush.msra.mxu2 %v3795_v49  ;;  %2483 = vmatpush.msrb.mxu3 %v3811_v50 }
0x110d   :  { %v2047_v24 = vpop.f32.mrf.mxu0  ;;  %v2067_v54 = vpop.f32.mrf.mxu1 }
0x110e   :  { %v2048_v55 = vadd.f32 %v2047_v24, %v1987_v52  ;;  %v2068_v56 = vadd.f32 %v2067_v54, %v1988_v53 }
0x1110   :  { %v2190_v57 = vmax.f32 %v2048_v55, 0.0  ;;  %v2191_v58 = vmax.f32 %v2068_v56, 0.0 }
0x1112   :  { %2344 = vmatmul.f32.vlgmr.msrb.gmra.mxu0 %v2190_v57  ;;  %2364 = vmatmul.f32.vlgmr.msrb.gmra.mxu1 %v2191_v58 }
0x1113   :  { %3836 = vmatpush.msk.msrb.mxu1 %vm98_vm1, %v4088_v63  ;;  %v3832_v63 = vld [vmem:[%s6836_s2 + $0x98] sm:$0x1] }
0x1114   :  { %v2087_v45 = vpop.f32.mrf.mxu2  ;;  %v2107_v0 = vpop.f32.mrf.mxu3  ;;  %3834 = vmatpush.msk.msrb.mxu0 %vm98_vm1, %v3832_v63  ;;  %v3843_v63 = vld [vmem:[%s6838_s4 + $0x90] sm:$0xff] }
0x1115   :  { %v2088_v1 = vadd.f32 %v2087_v45, %v1989_v59  ;;  %v2108_v2 = vadd.f32 %v2107_v0, %v1990_v60  ;;  %v2127_v3 = vpop.f32.mrf.mxu0  ;;  %v2147_v40 = vpop.f32.mrf.mxu1  ;;  %2598 = vmatpush.msrb.mxu1 %v4089_v4  ;;  %v3831_v45 = vld [vmem:[%s6836_s2 + $0x90] sm:$0xff]  ;;  %v3830_v0 = vld [vmem:[%s6836_s2 + $0x88] sm:$0xff] }
0x1116   :  { %v2128_v6 = vadd.f32 %v2127_v3, %v1991_v61  ;;  %v2148_v7 = vadd.f32 %v2147_v40, %v1992_v62  ;;  %2560 = vmatpush.msrb.mxu0 %v3831_v45  ;;  %v3842_v45 = vld [vmem:[%s6838_s4 + $0x88] sm:$0xff] }
0x1117   :  { %v2192_v9 = vmax.f32 %v2088_v1, 0.0  ;;  %v2193_v11 = vmax.f32 %v2108_v2, 0.0  ;;  %2599 = vmatpush.msrb.mxu1 %v4090_v12  ;;  %v3829_v1 = vld [vmem:[%s6836_s2 + $0x80] sm:$0xff]  ;;  %v3828_v2 = vld [vmem:[%s6836_s2 + $0x78] sm:$0xff] }
0x1118   :  { %v2194_v16 = vmax.f32 %v2128_v6, 0.0  ;;  %v2195_v17 = vmax.f32 %v2148_v7, 0.0  ;;  %2561 = vmatpush.msrb.mxu0 %v3830_v0  ;;  %v3841_v0 = vld [vmem:[%s6838_s4 + $0x80] sm:$0xff] }
0x1119   :  { %2384 = vmatmul.f32.vlgmr.msrb.gmra.mxu2 %v2192_v9  ;;  %2404 = vmatmul.f32.vlgmr.msra.gmra.mxu3 %v2193_v11 }
0x111a   :  { %2424 = vmatmul.f32.vlgmr.msra.gmra.mxu0 %v2194_v16  ;;  %2444 = vmatmul.f32.vlgmr.msra.gmra.mxu1 %v2195_v17 }
0x111b   :  { %2600 = vmatpush.msrb.mxu1 %v4091_v26  ;;  %3838 = vmatpush.msk.msrb.mxu2 %vm59_vm0, %v4092_v10  ;;  %v2525_v26 = vperm.slane %v5594_v19, 4 }
0x111c   :  { %v2167_v27 = vpop.f32.mrf.mxu2  ;;  %v2187_v30 = vpop.f32.mrf.mxu3  ;;  %2562 = vmatpush.msrb.mxu0 %v3829_v1  ;;  %v3840_v1 = vld [vmem:[%s6838_s4 + $0x78] sm:$0xff] }
0x111d   :  { %v2168_v31 = vadd.f32 %v2167_v27, %v1993_v18  ;;  %v2188_v32 = vadd.f32 %v2187_v30, %v1994_v14  ;;  %2601 = vmatpush.msrb.mxu1 %v4093_v33  ;;  %v2527_v30 = vperm.slane %v5594_v19, 5  ;;  %v4040_v33 = vld [vmem:[%s6837_s3 + $0x3] ss:$0 sm:$0xff] }
0x111e   :  { %2563 = vmatpush.msrb.mxu0 %v3828_v2 }
0x111f   :  { %v2196_v34 = vmax.f32 %v2168_v31, 0.0  ;;  %v2197_v35 = vmax.f32 %v2188_v32, 0.0 }
0x1121   :  { %2464 = vmatmul.f32.vlgmr.msra.gmra.mxu2 %v2196_v34  ;;  %2484 = vmatmul.f32.vlgmr.msrb.gmra.mxu3 %v2197_v35 }
0x118f   :  { %v2345_v21 = vpop.f32.mrf.mxu0  ;;  %v2365_v36 = vpop.f32.mrf.mxu1 }
0x1190   :  { %v2346_v37 = vadd.f32 %v2345_v21, %v2327_v20 }
0x1192   :  { %v2366_v22 = vadd.f32 %v2365_v36, %v2346_v37 }
0x1197   :  { %v2425_v41 = vpop.f32.mrf.mxu0  ;;  %v2445_v46 = vpop.f32.mrf.mxu1 }
0x119c   :  { %v2385_v29 = vpop.f32.mrf.mxu2  ;;  %v2405_v42 = vpop.f32.mrf.mxu3 }
0x119d   :  { %v2386_v43 = vadd.f32 %v2385_v29, %v2366_v22 }
0x119f   :  { %v2406_v5 = vadd.f32 %v2405_v42, %v2386_v43 }
0x11a1   :  { %v2426_v44 = vadd.f32 %v2425_v41, %v2406_v5 }
0x11a3   :  { %v2446_v23 = vadd.f32 %v2445_v46, %v2426_v44 }
0x11a4   :  { %v2465_v28 = vpop.f32.mrf.mxu2  ;;  %v2485_v48 = vpop.f32.mrf.mxu3 }
0x11a5   :  { %v2466_v47 = vadd.f32 %v2465_v28, %v2446_v23 }
0x11a7   :  { %v2486_v38 = vadd.f32 %v2485_v48, %v2466_v47 }
0x11a9   :  { %v2488_v49 = vadd.f32 %v2486_v38, %v5745_v39 }
0x11ab   :  { %v2494_v50 = vmul.f32 %v2488_v49, %v4313_v15  ;;  %v2489_v51 = vmul.f32 %v2488_v49, %v4307_v8 }
0x11ad   :  { %v2495_v52 = vsel %vm128_vm4, %v2494_v50, 0.0  ;;  %v2490_v53 = vsel %vm128_vm4, %v2489_v51, 0.0 }
0x11ae   :  { %2496 = vadd.xlane.f32.xlu0 %v2495_v52  ;;  %2491 = vadd.xlane.f32.xlu2 %v2490_v53 }
0x1221   :  { %v2497_v24 = vpop.xlane.xlu0 %2496  ;;  %v2492_v54 = vpop.xlane.xlu2 %2491 }
0x1222   :  { %v2498_v55 = vmul.f32 %v2497_v24, %v4322_v13  ;;  %v2493_v56 = vmul.f32 %v2492_v54, %v4319_v25 }
0x1224   :  { %v2499_v57 = vadd.f32 %v2498_v55, %v2493_v56 }
0x1226   :  { %v2500_v58 = vsub.f32 %v2488_v49, %v2499_v57  ;;  %v3844_v49 = vld [vmem:[%s6838_s4 + $0x98] sm:$0x1]  ;;  %s4122_s4 = smov [#allocation4]  }
0x1227   :  { %3845 = vmatpush.msk.msra.mxu3 %vm98_vm1, %v3844_v49  ;;  %v3856_v49 = vld [vmem:[%s6839_s5 + $0x408] sm:$0xff] }
0x1228   :  { %v2501_v59 = vmul.f32 %v2500_v58, %v2500_v58 }
0x1229   :  { %2706 = vmatpush.msra.mxu3 %v3843_v63 }
0x122a   :  { %v2507_v39 = vmul.f32 %v2501_v59, %v4313_v15  ;;  %v2502_v60 = vmul.f32 %v2501_v59, %v4307_v8 }
0x122b   :  { %2707 = vmatpush.msra.mxu3 %v3842_v45 }
0x122c   :  { %v2508_v61 = vsel %vm128_vm4, %v2507_v39, 0.0  ;;  %v2503_v62 = vsel %vm128_vm4, %v2502_v60, 0.0 }
0x122d   :  { %2509 = vadd.xlane.f32.xlu2 %v2508_v61  ;;  %2504 = vadd.xlane.f32.xlu1 %v2503_v62 }
0x122e   :  { %2708 = vmatpush.msra.mxu3 %v3841_v0  ;;  %v3878_v0 = vld [vmem:[%s6839_s5 + $0x4b8] sm:$0xff] }
0x1230   :  { %2709 = vmatpush.msra.mxu3 %v3840_v1  ;;  %v3867_v1 = vld [vmem:[%s6839_s5 + $0x460] sm:$0xff] }
0x12a0   :  { %v2510_v3 = vpop.xlane.xlu2 %2509  ;;  %v2505_v40 = vpop.xlane.xlu1 %2504 }
0x12a1   :  { %v2511_v4 = vmul.f32 %v2510_v3, %v4322_v13  ;;  %v2506_v6 = vmul.f32 %v2505_v40, %v4319_v25 }
0x12a3   :  { %v2512_v7 = vadd.f32 %v2511_v4, %v2506_v6 }
0x12a5   :  { %v2513_v9 = vadd.f32 1e-05, %v2512_v7 }
0x12a7   :  { %4070 = vrsqrt.f32 %v2513_v9  ;;  %vm2520_vm5 = vweird.f32 %v2513_v9 }
0x12ad   :  { %v4071_v11 = vpop.eup %4070 }
0x12ae   :  { %v2515_v12 = vmul.f32 %v4071_v11, %v2513_v9  ;;  %vm2521_vm0 = vweird.f32 %v4071_v11 }
0x12af   :  { %vm2522_vm6 = vmor %vm2520_vm5, %vm2521_vm0 }
0x12b0   :  { %v2516_v16 = vmul.f32 %v4071_v11, %v2515_v12 }
0x12b2   :  { %v2517_v17 = vmul.f32 0.5, %v2516_v16 }
0x12b4   :  { %v2518_v18 = vsub.f32 1.5, %v2517_v17 }
0x12b6   :  { %v2519_v14 = vmul.f32 %v4071_v11, %v2518_v18 }
0x12b8   :  { %v2523_v10 = vsel %vm2522_vm6, %v4071_v11, %v2519_v14  ;;  %v6239_v11 = vld [vmem:[%s6842_s8 + $0x18] sm:$0x3f]  ;;  %s3380_s8 = sshll.u32 %s4122_s4, 4  ;;  %s3381_s8 = int_to_ptr.vmem [resolvable:$true] %s3380_s8 }
0x12b9   :  { %v2524_v27 = vmul.f32 %v2523_v10, %v2500_v58  ;;  %v2687_v12 = vperm.slane %v6239_v11, 0 }
0x12bb   :  { %v2526_v31 = vmul.f32 %v2525_v26, %v2524_v27 }
0x12bd   :  { %v6202_v32 = vadd.f32 %v2527_v30, %v2526_v31 }
0x12bf   :  { %3835 = vmatmul.msk.f32.vlgmr.msrb.gmra.mxu0 %vm94_vm3, %v6202_v32 }
0x133c   :  { %v2565_v34 = vpop.f32.mrf.mxu0 }
0x133d   :  { %v2566_v35 = vadd.f32 %v4040_v33, %v2565_v34 }
0x133f   :  { %v2575_v20 = vperm.slane %v2566_v35, 1  ;;  %v2568_v21 = vperm.slane %v2566_v35, 0 }
0x1341   :  { %2673 = vrot.lane.b32.xlu2 %v2575_v20, %s4120_s25  ;;  %2577 = vrot.lane.b32.xlu1 %v2575_v20, %s4121_s26 }
0x1342   :  { %2570 = vrot.lane.b32.xlu0 %v2568_v21, %s4121_s26 }
0x134a   :  { %2669 = vrot.lane.b32.xlu0 %v2568_v21, %s4120_s25 }
0x139b   :  { %v2674_v2 = vpop.permute.xlu2 %2673 }
0x13b3   :  { %v2578_v19 = vpop.permute.xlu1 %2577 }
0x13b4   :  { %v2580_v37 = vmul.f32 %v2578_v19, %v2566_v35  ;;  %v2571_v36 = vpop.permute.xlu0 %2570 }
0x13b5   :  { %v2573_v22 = vmul.f32 %v2571_v36, %v2566_v35 }
0x13b6   :  { %2581 = vst.msk [vmem:[#allocation2 + $0x2] sm:$0x3] %vm128_vm4, %v2580_v37 }
0x13b7   :  { %2574 = vst.msk [vmem:[#allocation2] sm:$0x3] %vm128_vm4, %v2573_v22  ;;  %v3879_v22 = vld [vmem:[%s6839_s5 + $0x4c0] sm:$0x1] }
0x13b8   :  { %3888 = vmatpush.msk.msra.mxu2 %vm98_vm1, %v3879_v22  ;;  %v3935_v22 = vld [vmem:[%s6841_s7 + $0xcf8] sm:$0xff] }
0x13bc   :  { %v2670_v4 = vpop.permute.xlu0 %2669 }
0x13be   :  { %v2582_v29 = vld [vmem:[#allocation2] sm:$0xf] }
0x13bf   :  { %3837 = vmatmul.msk.f32.vlgmr.msrb.gmra.mxu1 %vm94_vm3, %v2582_v29  ;;  %v3880_v29 = vld [vmem:[%s6839_s5 + $0x4c8] sm:$0x1] }
0x13c0   :  { %3890 = vmatpush.msk.msra.mxu0 %vm98_vm1, %v3880_v29  ;;  %v3951_v29 = vld [vmem:[%s6841_s7 + $0xd78] sm:$0xff] }
0x143c   :  { %v2603_v42 = vpop.f32.mrf.mxu1 }
0x143d   :  { %v2607_v43 = vrot.slane %v2603_v42, 2 }
0x143f   :  { %v2609_v5 = vmax.f32 %v2603_v42, %v2607_v43  ;;  %v3882_v43 = vld [vmem:[%s6839_s5 + $0x4d8] sm:$0x1] }
0x1440   :  { %3894 = vmatpush.msk.msrb.mxu3 %vm98_vm1, %v3882_v43  ;;  %v3934_v43 = vld [vmem:[%s6841_s7 + $0xcf0] sm:$0xff] }
0x1441   :  { %v2610_v41 = vsub.f32 %v2603_v42, %v2609_v5  ;;  %v2614_v44 = vrot.slane %v2609_v5, 6  ;;  %v3871_v5 = vld [vmem:[%s6839_s5 + $0x480] sm:$0xff] }
0x1442   :  { %2854 = vmatpush.msra.mxu2 %v3871_v5  ;;  %v3950_v5 = vld [vmem:[%s6841_s7 + $0xd70] sm:$0xff] }
0x1443   :  { %v2616_v46 = vsub.f32 %v2603_v42, %v2614_v44  ;;  %v2611_v23 = vmul.f32 1.442695, %v2610_v41  ;;  %v3881_v42 = vld [vmem:[%s6839_s5 + $0x4d0] sm:$0x1]  ;;  %v3872_v41 = vld [vmem:[%s6839_s5 + $0x488] sm:$0xff] }
0x1444   :  { %3892 = vmatpush.msk.msra.mxu1 %vm98_vm1, %v3881_v42  ;;  %v3873_v44 = vld [vmem:[%s6839_s5 + $0x490] sm:$0xff]  ;;  %2874 = vmatpush.msra.mxu0 %v3872_v41  ;;  %v3967_v42 = vld [vmem:[%s6841_s7 + $0xdf8] sm:$0xff] }
0x1445   :  { %v2617_v28 = vmul.f32 1.442695, %v2616_v46  ;;  %v3874_v46 = vld [vmem:[%s6839_s5 + $0x498] sm:$0xff]  ;;  %v3918_v41 = vld [vmem:[%s6841_s7 + $0xc70] sm:$0xff] }
0x1446   :  { %2894 = vmatpush.msra.mxu1 %v3873_v44  ;;  %2914 = vmatpush.msrb.mxu3 %v3874_v46  ;;  %v3966_v44 = vld [vmem:[%s6841_s7 + $0xdf0] sm:$0xff]  ;;  %v3933_v46 = vld [vmem:[%s6841_s7 + $0xce8] sm:$0xff] }
0x1447   :  { %4072 = vpow2.f32 %v2617_v28  ;;  %v3864_v28 = vld [vmem:[%s6839_s5 + $0x448] sm:$0xff] }
0x1448   :  { %4074 = vpow2.f32 %v2611_v23  ;;  %v3863_v23 = vld [vmem:[%s6839_s5 + $0x440] sm:$0xff]  ;;  %2875 = vmatpush.msra.mxu0 %v3864_v28  ;;  %v3917_v28 = vld [vmem:[%s6841_s7 + $0xc68] sm:$0xff] }
0x1449   :  { %2855 = vmatpush.msra.mxu2 %v3863_v23  ;;  %v3949_v23 = vld [vmem:[%s6841_s7 + $0xd68] sm:$0xff] }
0x144a   :  { %2876 = vmatpush.msra.mxu0 %v3856_v49  ;;  %v3916_v49 = vld [vmem:[%s6841_s7 + $0xc60] sm:$0xff] }
0x144d   :  { %v4073_v47 = vpop.eup %4072 }
0x144e   :  { %v2620_v48 = vrot.slane %v4073_v47, 2  ;;  %v4075_v38 = vpop.eup %4074 }
0x1450   :  { %v2622_v50 = vadd.f32 %v4075_v38, %v2620_v48  ;;  %v3866_v48 = vld [vmem:[%s6839_s5 + $0x458] sm:$0xff] }
0x1451   :  { %2915 = vmatpush.msrb.mxu3 %v3866_v48  ;;  %v3932_v48 = vld [vmem:[%s6841_s7 + $0xce0] sm:$0xff] }
0x1452   :  { %4076 = vrcp.f32 %v2622_v50  ;;  %v2634_v24 = vand.u32 2147483648, %v2622_v50  ;;  %v2632_v55 = vand.u32 2147483647, %v2622_v50  ;;  %vm2628_vm8 = vweird.f32 %v2622_v50 }
0x1454   :  { %v2635_v57 = vor.u32 1.1754944e-38, %v2634_v24  ;;  %vm2633_vm13 = vcmp.eq.f32.partialorder %v2632_v55, 8.507059e+37  ;;  %v3849_v24 = vld [vmem:[%s6839_s5 + $0x3d0] sm:$0xff]  ;;  %v3883_v55 = vld [vmem:[%s6839_s5 + $0x4e0] sm:$0x1] }
0x1458   :  { %v4077_v51 = vpop.eup %4076 }
0x1459   :  { %v2624_v52 = vmul.f32 %v4077_v51, %v2622_v50  ;;  %vm2629_vm7 = vweird.f32 %v4077_v51  ;;  %v3857_v50 = vld [vmem:[%s6839_s5 + $0x410] sm:$0xff] }
0x145a   :  { %vm2630_vm12 = vmor %vm2628_vm8, %vm2629_vm7 }
0x145b   :  { %v2625_v53 = vsub.f32 1.0, %v2624_v52  ;;  %v3847_v52 = vld [vmem:[%s6839_s5 + $0x3c0] sm:$0xff] }
0x145d   :  { %v2626_v54 = vmul.f32 %v4077_v51, %v2625_v53  ;;  %v3848_v53 = vld [vmem:[%s6839_s5 + $0x3c8] sm:$0xff] }
0x145e   :  { %2877 = vmatpush.msra.mxu0 %v3848_v53  ;;  %v3915_v53 = vld [vmem:[%s6841_s7 + $0xc58] sm:$0xff] }
0x145f   :  { %v2627_v56 = vadd.f32 %v4077_v51, %v2626_v54  ;;  %v3850_v54 = vld [vmem:[%s6839_s5 + $0x3d8] sm:$0xff] }
0x1461   :  { %v2631_v58 = vsel %vm2630_vm12, %v4077_v51, %v2627_v56  ;;  %v3858_v51 = vld [vmem:[%s6839_s5 + $0x418] sm:$0xff]  ;;  %v3884_v56 = vld [vmem:[%s6839_s5 + $0x4e8] sm:$0x1] }
0x1462   :  { %v2636_v59 = vsel %vm2633_vm13, %v2635_v57, %v2631_v58  ;;  %2916 = vmatpush.msrb.mxu3 %v3858_v51  ;;  %v3885_v57 = vld [vmem:[%s6839_s5 + $0x4f0] sm:$0x1]  ;;  %v3886_v58 = vld [vmem:[%s6839_s5 + $0x4f8] sm:$0x1]  ;;  %3898 = vmatpush.msk.msrb.mxu0 %vm98_vm1, %v3884_v56 }
0x1463   :  { %v2638_v39 = vmul.f32 %v4075_v38, %v2636_v59  ;;  %v2641_v60 = vrot.slane %v2636_v59, 6  ;;  %v3855_v38 = vld [vmem:[%s6839_s5 + $0x400] sm:$0xff]  ;;  %v3931_v51 = vld [vmem:[%s6841_s7 + $0xcd8] sm:$0xff]  ;;  %v3914_v56 = vld [vmem:[%s6841_s7 + $0xc50] sm:$0xff] }
0x1464   :  { %2856 = vmatpush.msra.mxu2 %v3855_v38  ;;  %2917 = vmatpush.msrb.mxu3 %v3850_v54  ;;  %v3948_v38 = vld [vmem:[%s6841_s7 + $0xd60] sm:$0xff]  ;;  %v3930_v54 = vld [vmem:[%s6841_s7 + $0xcd0] sm:$0xff] }
0x1465   :  { %2639 = vst.msk [vmem:[#allocation3] sm:$0x3] %vm197_vm9, %v2638_v39  ;;  %v2643_v61 = vmul.f32 %v4073_v47, %v2641_v60  ;;  %v3865_v47 = vld [vmem:[%s6839_s5 + $0x450] sm:$0xff]  ;;  %v3875_v60 = vld [vmem:[%s6839_s5 + $0x4a0] sm:$0xff] }
0x1466   :  { %2895 = vmatpush.msra.mxu1 %v3865_v47  ;;  %2857 = vmatpush.msra.mxu2 %v3847_v52  ;;  %v3965_v47 = vld [vmem:[%s6841_s7 + $0xde8] sm:$0xff]  ;;  %v3947_v52 = vld [vmem:[%s6841_s7 + $0xd58] sm:$0xff] }
0x1467   :  { %2644 = vst.msk [vmem:[#allocation3] sm:$0xc] %vm203_vm10, %v2643_v61  ;;  %v3876_v61 = vld [vmem:[%s6839_s5 + $0x4a8] sm:$0xff] }
0x1468   :  { %2896 = vmatpush.msra.mxu1 %v3857_v50  ;;  %2954 = vmatpush.msrb.mxu0 %v3876_v61  ;;  %v3964_v50 = vld [vmem:[%s6841_s7 + $0xde0] sm:$0xff] }
0x1469   :  { %v3928_v61 = vld [vmem:[%s6841_s7 + $0xcc0] sm:$0xff] }
0x146a   :  { %2897 = vmatpush.msra.mxu1 %v3849_v24  ;;  %v3963_v24 = vld [vmem:[%s6841_s7 + $0xdd8] sm:$0xff] }
0x146c   :  { %3900 = vmatpush.msk.msrb.mxu1 %vm98_vm1, %v3885_v57  ;;  %v3962_v57 = vld [vmem:[%s6841_s7 + $0xdd0] sm:$0xff] }
0x146e   :  { %v2645_v62 = vld [vmem:[#allocation3] sm:$0xf] }
0x146f   :  { %3839 = vmatmul.msk.f32.vlgmr.msrb.gmra.mxu2 %vm206_vm11, %v2645_v62  ;;  %v3877_v62 = vld [vmem:[%s6839_s5 + $0x4b0] sm:$0xff] }
0x1470   :  { %3896 = vmatpush.msk.msrb.mxu2 %vm98_vm1, %v3883_v55  ;;  %2974 = vmatpush.msrb.mxu1 %v3877_v62  ;;  %v3946_v55 = vld [vmem:[%s6841_s7 + $0xd50] sm:$0xff]  ;;  %v3944_v62 = vld [vmem:[%s6841_s7 + $0xd40] sm:$0xff] }
0x1472   :  { %2934 = vmatpush.msrb.mxu2 %v3875_v60  ;;  %v3961_v60 = vld [vmem:[%s6841_s7 + $0xdc8] sm:$0xff] }
0x1474   :  { %2935 = vmatpush.msrb.mxu2 %v3867_v1  ;;  %v3943_v1 = vld [vmem:[%s6841_s7 + $0xd38] sm:$0xff] }
0x14f2   :  { %v2666_v3 = vpop.f32.mrf.mxu2 }
0x14f3   :  { %v2676_v40 = vmul.f32 %v2674_v2, %v2666_v3  ;;  %v2672_v6 = vmul.f32 %v2670_v4, %v2666_v3  ;;  %v3868_v2 = vld [vmem:[%s6839_s5 + $0x468] sm:$0xff]  ;;  %v3869_v3 = vld [vmem:[%s6839_s5 + $0x470] sm:$0xff]  ;;  %v3859_v4 = vld [vmem:[%s6839_s5 + $0x420] sm:$0xff] }
0x14f4   :  { %2955 = vmatpush.msrb.mxu0 %v3868_v2  ;;  %2975 = vmatpush.msrb.mxu1 %v3869_v3  ;;  %v3911_v2 = vld [vmem:[%s6841_s7 + $0xc38] sm:$0xff] }
0x14f5   :  { %v2678_v7 = vrot.slane %v2676_v40, 2  ;;  %v3870_v40 = vld [vmem:[%s6839_s5 + $0x478] sm:$0xff]  ;;  %2936 = vmatpush.msrb.mxu2 %v3859_v4  ;;  %v3942_v4 = vld [vmem:[%s6841_s7 + $0xd30] sm:$0xff] }
0x14f6   :  { %v3959_v3 = vld [vmem:[%s6841_s7 + $0xdb8] sm:$0xff] }
0x14f7   :  { %v2680_v9 = vadd.f32 %v2678_v7, %v2672_v6  ;;  %v3860_v7 = vld [vmem:[%s6839_s5 + $0x428] sm:$0xff] }
0x14f8   :  { %2956 = vmatpush.msrb.mxu0 %v3860_v7  ;;  %v3958_v7 = vld [vmem:[%s6841_s7 + $0xdb0] sm:$0xff] }
0x14f9   :  { %3846 = vmatmul.msk.f32.vlgmr.msra.gmra.mxu3 %vm94_vm3, %v2680_v9  ;;  %v3861_v9 = vld [vmem:[%s6839_s5 + $0x430] sm:$0xff] }
0x14fa   :  { %3902 = vmatpush.msk.msra.mxu3 %vm98_vm1, %v3886_v58  ;;  %2976 = vmatpush.msrb.mxu1 %v3861_v9  ;;  %v3929_v58 = vld [vmem:[%s6841_s7 + $0xcc8] sm:$0xff] }
0x14fb   :  { %v3925_v9 = vld [vmem:[%s6841_s7 + $0xca8] sm:$0xff] }
0x14fc   :  { %2994 = vmatpush.msra.mxu3 %v3878_v0  ;;  %v3927_v0 = vld [vmem:[%s6841_s7 + $0xcb8] sm:$0xff] }
0x14fe   :  { %2995 = vmatpush.msra.mxu3 %v3870_v40  ;;  %v3926_v40 = vld [vmem:[%s6841_s7 + $0xcb0] sm:$0xff] }
0x157c   :  { %v2711_v16 = vpop.f32.mrf.mxu3 }
0x157d   :  { %v2712_v17 = vadd.f32 %v2711_v16, %v2687_v12  ;;  %v3862_v12 = vld [vmem:[%s6839_s5 + $0x438] sm:$0xff]  ;;  %v3851_v16 = vld [vmem:[%s6839_s5 + $0x3e0] sm:$0xff] }
0x157e   :  { %2996 = vmatpush.msra.mxu3 %v3862_v12  ;;  %2937 = vmatpush.msrb.mxu2 %v3851_v16  ;;  %v3941_v12 = vld [vmem:[%s6841_s7 + $0xd28] sm:$0xff] }
0x157f   :  { %v2714_v18 = vadd.f32 %v2712_v17, %v6202_v32  ;;  %v3852_v17 = vld [vmem:[%s6839_s5 + $0x3e8] sm:$0xff] }
0x1580   :  { %2957 = vmatpush.msrb.mxu0 %v3852_v17  ;;  %v3909_v16 = vld [vmem:[%s6841_s7 + $0xc28] sm:$0xff] }
0x1581   :  { %v2720_v14 = vmul.f32 %v2714_v18, %v4313_v15  ;;  %v2715_v26 = vmul.f32 %v2714_v18, %v4307_v8  ;;  %v3957_v17 = vld [vmem:[%s6841_s7 + $0xda8] sm:$0xff] }
0x1583   :  { %v2721_v10 = vsel %vm128_vm4, %v2720_v14, 0.0  ;;  %v2716_v27 = vsel %vm128_vm4, %v2715_v26, 0.0  ;;  %v3853_v14 = vld [vmem:[%s6839_s5 + $0x3f0] sm:$0xff]  ;;  %v3854_v26 = vld [vmem:[%s6839_s5 + $0x3f8] sm:$0xff] }
0x1584   :  { %2722 = vadd.xlane.f32.xlu0 %v2721_v10  ;;  %2717 = vadd.xlane.f32.xlu1 %v2716_v27 }
0x1585   :  { %2977 = vmatpush.msrb.mxu1 %v3853_v14  ;;  %2997 = vmatpush.msra.mxu3 %v3854_v26  ;;  %v3940_v14 = vld [vmem:[%s6841_s7 + $0xd20] sm:$0xff] }
0x1586   :  { %v3908_v26 = vld [vmem:[%s6841_s7 + $0xc20] sm:$0xff] }
0x15f7   :  { %v2723_v30 = vpop.xlane.xlu0 %2722  ;;  %v2718_v31 = vpop.xlane.xlu1 %2717 }
0x15f8   :  { %v2724_v33 = vmul.f32 %v2723_v30, %v4322_v13  ;;  %v2719_v34 = vmul.f32 %v2718_v31, %v4319_v25 }
0x15fa   :  { %v2725_v35 = vadd.f32 %v2724_v33, %v2719_v34 }
0x15fc   :  { %v6249_v20 = vsub.f32 %v2714_v18, %v2725_v35  ;;  %v2751_v35 = vperm.slane %v6239_v11, 1 }
0x15fe   :  { %v2727_v32 = vmul.f32 %v6249_v20, %v6249_v20 }
0x1600   :  { %v2733_v21 = vmul.f32 %v2727_v32, %v4313_v15  ;;  %v2728_v19 = vmul.f32 %v2727_v32, %v4307_v8 }
0x1602   :  { %v2734_v37 = vsel %vm128_vm4, %v2733_v21, 0.0  ;;  %v2729_v36 = vsel %vm128_vm4, %v2728_v19, 0.0  ;;  %v2753_v21 = vperm.slane %v6239_v11, 2 }
0x1603   :  { %2735 = vadd.xlane.f32.xlu1 %v2734_v37  ;;  %2730 = vadd.xlane.f32.xlu2 %v2729_v36 }
0x1676   :  { %v2736_v59 = vpop.xlane.xlu1 %2735  ;;  %v2731_v39 = vpop.xlane.xlu2 %2730 }
0x1677   :  { %v2737_v63 = vmul.f32 %v2736_v59, %v4322_v13  ;;  %v2732_v45 = vmul.f32 %v2731_v39, %v4319_v25  ;;  %v3945_v59 = vld [vmem:[%s6841_s7 + $0xd48] sm:$0xff] }
0x1678   :  { %v3913_v39 = vld [vmem:[%s6841_s7 + $0xc48] sm:$0xff] }
0x1679   :  { %v2738_v6 = vadd.f32 %v2737_v63, %v2732_v45  ;;  %v3912_v63 = vld [vmem:[%s6841_s7 + $0xc40] sm:$0xff] }
0x167a   :  { %v3960_v45 = vld [vmem:[%s6841_s7 + $0xdc0] sm:$0xff] }
0x167b   :  { %v2739_v18 = vadd.f32 1e-05, %v2738_v6  ;;  %v3910_v6 = vld [vmem:[%s6841_s7 + $0xc30] sm:$0xff] }
0x167d   :  { %4078 = vrsqrt.f32 %v2739_v18  ;;  %vm2746_vm10 = vweird.f32 %v2739_v18 }
0x1683   :  { %v4079_v10 = vpop.eup %4078 }
0x1684   :  { %v2741_v27 = vmul.f32 %v4079_v10, %v2739_v18  ;;  %vm2747_vm9 = vweird.f32 %v4079_v10  ;;  %v3924_v18 = vld [vmem:[%s6841_s7 + $0xca0] sm:$0xff] }
0x1685   :  { %vm2748_vm11 = vmor %vm2746_vm10, %vm2747_vm9 }
0x1686   :  { %v2742_v30 = vmul.f32 %v4079_v10, %v2741_v27  ;;  %v3923_v27 = vld [vmem:[%s6841_s7 + $0xc98] sm:$0xff] }
0x1688   :  { %v2743_v31 = vmul.f32 0.5, %v2742_v30  ;;  %v3939_v30 = vld [vmem:[%s6841_s7 + $0xd18] sm:$0xff] }
0x168a   :  { %v2744_v33 = vsub.f32 1.5, %v2743_v31  ;;  %v3907_v31 = vld [vmem:[%s6841_s7 + $0xc18] sm:$0xff] }
0x168c   :  { %v2745_v34 = vmul.f32 %v4079_v10, %v2744_v33  ;;  %v3955_v33 = vld [vmem:[%s6841_s7 + $0xd98] sm:$0xff] }
0x168e   :  { %v2749_v32 = vsel %vm2748_vm11, %v4079_v10, %v2745_v34  ;;  %v3956_v10 = vld [vmem:[%s6841_s7 + $0xda0] sm:$0xff]  ;;  %v3922_v34 = vld [vmem:[%s6841_s7 + $0xc90] sm:$0xff] }
0x168f   :  { %v2750_v19 = vmul.f32 %v2749_v32, %v6249_v20  ;;  %v3919_v20 = vld [vmem:[%s6841_s7 + $0xc78] sm:$0xff]  ;;  %v3906_v32 = vld [vmem:[%s6841_s7 + $0xc10] sm:$0xff] }
0x1691   :  { %v2752_v37 = vmul.f32 %v2751_v35, %v2750_v19  ;;  %v3938_v35 = vld [vmem:[%s6841_s7 + $0xd10] sm:$0xff]  ;;  %v3921_v19 = vld [vmem:[%s6841_s7 + $0xc88] sm:$0xff] }
0x1693   :  { %v6390_v36 = vadd.f32 %v2753_v21, %v2752_v37  ;;  %v3954_v21 = vld [vmem:[%s6841_s7 + $0xd90] sm:$0xff]  ;;  %v3937_v37 = vld [vmem:[%s6841_s7 + $0xd08] sm:$0xff] }
0x1695   :  { %3889 = vmatmul.msk.f32.vlgmr.msra.gmra.mxu2 %vm94_vm3, %v6390_v36  ;;  %3891 = vmatmul.msk.f32.vlgmr.msra.gmra.mxu0 %vm94_vm3, %v6390_v36 }
0x1696   :  { %3893 = vmatmul.msk.f32.vlgmr.msra.gmra.mxu1 %vm94_vm3, %v6390_v36  ;;  %3895 = vmatmul.msk.f32.vlgmr.msrb.gmra.mxu3 %vm94_vm3, %v6390_v36 }
0x1697   :  { %3160 = vmatpush.msra.mxu0 %v3935_v22  ;;  %3180 = vmatpush.msra.mxu1 %v3951_v29  ;;  %v3905_v22 = vld [vmem:[%s6841_s7 + $0xc08] sm:$0xff] }
0x1698   :  { %3140 = vmatpush.msra.mxu2 %v3919_v20  ;;  %3200 = vmatpush.msrb.mxu3 %v3967_v42  ;;  %v3953_v29 = vld [vmem:[%s6841_s7 + $0xd88] sm:$0xff]  ;;  %v3920_v20 = vld [vmem:[%s6841_s7 + $0xc80] sm:$0xff] }
0x1699   :  { %3161 = vmatpush.msra.mxu0 %v3934_v43  ;;  %3181 = vmatpush.msra.mxu1 %v3950_v5  ;;  %v3936_v42 = vld [vmem:[%s6841_s7 + $0xd00] sm:$0xff]  ;;  %v3999_v43 = vld [vmem:[%s6841_s7 + $0xef8] sm:$0xff] }
0x169a   :  { %3141 = vmatpush.msra.mxu2 %v3918_v41  ;;  %3201 = vmatpush.msrb.mxu3 %v3966_v44  ;;  %v4015_v5 = vld [vmem:[%s6841_s7 + $0xf78] sm:$0xff]  ;;  %v3904_v41 = vld [vmem:[%s6841_s7 + $0xc00] sm:$0xff] }
0x169b   :  { %3162 = vmatpush.msra.mxu0 %v3933_v46  ;;  %3182 = vmatpush.msra.mxu1 %v3949_v23  ;;  %v3952_v44 = vld [vmem:[%s6841_s7 + $0xd80] sm:$0xff]  ;;  %v3998_v46 = vld [vmem:[%s6841_s7 + $0xef0] sm:$0xff] }
0x169c   :  { %3142 = vmatpush.msra.mxu2 %v3917_v28  ;;  %3202 = vmatpush.msrb.mxu3 %v3965_v47  ;;  %v4014_v23 = vld [vmem:[%s6841_s7 + $0xf70] sm:$0xff]  ;;  %v3983_v28 = vld [vmem:[%s6841_s7 + $0xe78] sm:$0xff] }
0x169d   :  { %3897 = vmatmul.msk.f32.vlgmr.msrb.gmra.mxu2 %vm94_vm3, %v6390_v36  ;;  %3899 = vmatmul.msk.f32.vlgmr.msrb.gmra.mxu0 %vm94_vm3, %v6390_v36  ;;  %v4031_v47 = vld [vmem:[%s6841_s7 + $0xff8] sm:$0xff] }
0x169e   :  { %3901 = vmatmul.msk.f32.vlgmr.msrb.gmra.mxu1 %vm94_vm3, %v6390_v36  ;;  %3903 = vmatmul.msk.f32.vlgmr.msra.gmra.mxu3 %vm94_vm3, %v6390_v36 }
0x169f   :  { %3163 = vmatpush.msra.mxu0 %v3932_v48  ;;  %3183 = vmatpush.msra.mxu1 %v3948_v38  ;;  %v3997_v48 = vld [vmem:[%s6841_s7 + $0xee8] sm:$0xff] }
0x16a0   :  { %3143 = vmatpush.msra.mxu2 %v3916_v49  ;;  %3203 = vmatpush.msrb.mxu3 %v3964_v50  ;;  %v4013_v38 = vld [vmem:[%s6841_s7 + $0xf68] sm:$0xff]  ;;  %v3982_v49 = vld [vmem:[%s6841_s7 + $0xe70] sm:$0xff] }
0x16a1   :  { %3164 = vmatpush.msra.mxu0 %v3931_v51  ;;  %3184 = vmatpush.msra.mxu1 %v3947_v52  ;;  %v4030_v50 = vld [vmem:[%s6841_s7 + $0xff0] sm:$0xff]  ;;  %v3996_v51 = vld [vmem:[%s6841_s7 + $0xee0] sm:$0xff] }
0x16a2   :  { %3144 = vmatpush.msra.mxu2 %v3915_v53  ;;  %3204 = vmatpush.msrb.mxu3 %v3963_v24  ;;  %v4012_v52 = vld [vmem:[%s6841_s7 + $0xf60] sm:$0xff]  ;;  %v3981_v53 = vld [vmem:[%s6841_s7 + $0xe68] sm:$0xff] }
0x16a3   :  { %3165 = vmatpush.msra.mxu0 %v3930_v54  ;;  %3185 = vmatpush.msra.mxu1 %v3946_v55  ;;  %v4029_v24 = vld [vmem:[%s6841_s7 + $0xfe8] sm:$0xff]  ;;  %v3995_v54 = vld [vmem:[%s6841_s7 + $0xed8] sm:$0xff] }
0x16a4   :  { %3145 = vmatpush.msra.mxu2 %v3914_v56  ;;  %3205 = vmatpush.msrb.mxu3 %v3962_v57  ;;  %v4011_v55 = vld [vmem:[%s6841_s7 + $0xf58] sm:$0xff]  ;;  %v3980_v56 = vld [vmem:[%s6841_s7 + $0xe60] sm:$0xff] }
0x16a5   :  { %3166 = vmatpush.msra.mxu0 %v3929_v58  ;;  %3186 = vmatpush.msra.mxu1 %v3945_v59  ;;  %v4028_v57 = vld [vmem:[%s6841_s7 + $0xfe0] sm:$0xff]  ;;  %v3994_v58 = vld [vmem:[%s6841_s7 + $0xed0] sm:$0xff] }
0x16a6   :  { %3146 = vmatpush.msra.mxu2 %v3913_v39  ;;  %3206 = vmatpush.msrb.mxu3 %v3961_v60  ;;  %v4010_v59 = vld [vmem:[%s6841_s7 + $0xf50] sm:$0xff]  ;;  %v3979_v39 = vld [vmem:[%s6841_s7 + $0xe58] sm:$0xff] }
0x16a7   :  { %3167 = vmatpush.msra.mxu0 %v3928_v61  ;;  %3187 = vmatpush.msra.mxu1 %v3944_v62  ;;  %v4027_v60 = vld [vmem:[%s6841_s7 + $0xfd8] sm:$0xff]  ;;  %v3993_v61 = vld [vmem:[%s6841_s7 + $0xec8] sm:$0xff] }
0x16a8   :  { %3147 = vmatpush.msra.mxu2 %v3912_v63  ;;  %3207 = vmatpush.msrb.mxu3 %v3960_v45  ;;  %v4009_v62 = vld [vmem:[%s6841_s7 + $0xf48] sm:$0xff]  ;;  %v3978_v63 = vld [vmem:[%s6841_s7 + $0xe50] sm:$0xff] }
0x16a9   :  { %3168 = vmatpush.msra.mxu0 %v3927_v0  ;;  %3188 = vmatpush.msra.mxu1 %v3943_v1  ;;  %v4026_v45 = vld [vmem:[%s6841_s7 + $0xfd0] sm:$0xff]  ;;  %v3992_v0 = vld [vmem:[%s6841_s7 + $0xec0] sm:$0xff] }
0x16aa   :  { %3148 = vmatpush.msra.mxu2 %v3911_v2  ;;  %3208 = vmatpush.msrb.mxu3 %v3959_v3  ;;  %v4008_v1 = vld [vmem:[%s6841_s7 + $0xf40] sm:$0xff]  ;;  %v3991_v2 = vld [vmem:[%s6841_s7 + $0xeb8] sm:$0xff] }
0x16ab   :  { %3169 = vmatpush.msra.mxu0 %v3926_v40  ;;  %3189 = vmatpush.msra.mxu1 %v3942_v4  ;;  %v4007_v3 = vld [vmem:[%s6841_s7 + $0xf38] sm:$0xff]  ;;  %v3977_v40 = vld [vmem:[%s6841_s7 + $0xe48] sm:$0xff]  ;;  %v3990_v4 = vld [vmem:[%s6841_s7 + $0xeb0] sm:$0xff] }
0x16ac   :  { %3149 = vmatpush.msra.mxu2 %v3910_v6  ;;  %3209 = vmatpush.msrb.mxu3 %v3958_v7  ;;  %v4006_v6 = vld [vmem:[%s6841_s7 + $0xf30] sm:$0xff]  ;;  %v4025_v7 = vld [vmem:[%s6841_s7 + $0xfc8] sm:$0xff] }
0x16ad   :  { %3170 = vmatpush.msra.mxu0 %v3925_v9  ;;  %3190 = vmatpush.msra.mxu1 %v3941_v12  ;;  %v3976_v9 = vld [vmem:[%s6841_s7 + $0xe40] sm:$0xff]  ;;  %v3989_v12 = vld [vmem:[%s6841_s7 + $0xea8] sm:$0xff] }
0x16ae   :  { %3150 = vmatpush.msra.mxu2 %v3909_v16  ;;  %3210 = vmatpush.msrb.mxu3 %v3957_v17  ;;  %v4005_v16 = vld [vmem:[%s6841_s7 + $0xf28] sm:$0xff]  ;;  %v4024_v17 = vld [vmem:[%s6841_s7 + $0xfc0] sm:$0xff] }
0x16af   :  { %3171 = vmatpush.msra.mxu0 %v3924_v18  ;;  %3191 = vmatpush.msra.mxu1 %v3940_v14  ;;  %v3975_v18 = vld [vmem:[%s6841_s7 + $0xe38] sm:$0xff]  ;;  %v3988_v14 = vld [vmem:[%s6841_s7 + $0xea0] sm:$0xff] }
0x16b0   :  { %3151 = vmatpush.msra.mxu2 %v3908_v26  ;;  %3211 = vmatpush.msrb.mxu3 %v3956_v10  ;;  %v4004_v26 = vld [vmem:[%s6841_s7 + $0xf20] sm:$0xff]  ;;  %v4023_v10 = vld [vmem:[%s6841_s7 + $0xfb8] sm:$0xff] }
0x16b1   :  { %3172 = vmatpush.msra.mxu0 %v3923_v27  ;;  %3192 = vmatpush.msra.mxu1 %v3939_v30  ;;  %v3974_v27 = vld [vmem:[%s6841_s7 + $0xe30] sm:$0xff]  ;;  %v3987_v30 = vld [vmem:[%s6841_s7 + $0xe98] sm:$0xff] }
0x16b2   :  { %3152 = vmatpush.msra.mxu2 %v3907_v31  ;;  %3212 = vmatpush.msrb.mxu3 %v3955_v33  ;;  %v4003_v31 = vld [vmem:[%s6841_s7 + $0xf18] sm:$0xff]  ;;  %v4022_v33 = vld [vmem:[%s6841_s7 + $0xfb0] sm:$0xff] }
0x16b3   :  { %3173 = vmatpush.msra.mxu0 %v3922_v34  ;;  %3193 = vmatpush.msra.mxu1 %v3938_v35  ;;  %v3973_v34 = vld [vmem:[%s6841_s7 + $0xe28] sm:$0xff]  ;;  %v3986_v35 = vld [vmem:[%s6841_s7 + $0xe90] sm:$0xff] }
0x16b4   :  { %3153 = vmatpush.msra.mxu2 %v3906_v32  ;;  %3213 = vmatpush.msrb.mxu3 %v3954_v21  ;;  %v4002_v32 = vld [vmem:[%s6841_s7 + $0xf10] sm:$0xff]  ;;  %v4021_v21 = vld [vmem:[%s6841_s7 + $0xfa8] sm:$0xff] }
0x16b5   :  { %3174 = vmatpush.msra.mxu0 %v3921_v19  ;;  %3194 = vmatpush.msra.mxu1 %v3937_v37  ;;  %v3972_v19 = vld [vmem:[%s6841_s7 + $0xe20] sm:$0xff]  ;;  %v3985_v37 = vld [vmem:[%s6841_s7 + $0xe88] sm:$0xff] }
0x16b6   :  { %3154 = vmatpush.msra.mxu2 %v3905_v22  ;;  %3214 = vmatpush.msrb.mxu3 %v3953_v29  ;;  %v4001_v22 = vld [vmem:[%s6841_s7 + $0xf08] sm:$0xff]  ;;  %v4020_v29 = vld [vmem:[%s6841_s7 + $0xfa0] sm:$0xff] }
0x16b7   :  { %3175 = vmatpush.msra.mxu0 %v3920_v20  ;;  %3195 = vmatpush.msra.mxu1 %v3936_v42  ;;  %v3971_v20 = vld [vmem:[%s6841_s7 + $0xe18] sm:$0xff]  ;;  %v3984_v42 = vld [vmem:[%s6841_s7 + $0xe80] sm:$0xff] }
0x16b8   :  { %3155 = vmatpush.msra.mxu2 %v3904_v41  ;;  %3215 = vmatpush.msrb.mxu3 %v3952_v44  ;;  %v3970_v41 = vld [vmem:[%s6841_s7 + $0xe10] sm:$0xff] }
0x16b9   :  { %3240 = vmatpush.msrb.mxu0 %v3999_v43  ;;  %3260 = vmatpush.msrb.mxu1 %v4015_v5  ;;  %v4000_v43 = vld [vmem:[%s6841_s7 + $0xf00] sm:$0xff]  ;;  %v4019_v5 = vld [vmem:[%s6841_s7 + $0xf98] sm:$0xff]  ;;  %v4018_v44 = vld [vmem:[%s6841_s7 + $0xf90] sm:$0xff] }
0x16ba   :  { %3220 = vmatpush.msrb.mxu2 %v3983_v28  ;;  %3280 = vmatpush.msra.mxu3 %v4031_v47  ;;  %v3968_v28 = vld [vmem:[%s6841_s7 + $0xe00] sm:$0xff] }
0x16bb   :  { %3241 = vmatpush.msrb.mxu0 %v3998_v46  ;;  %3261 = vmatpush.msrb.mxu1 %v4014_v23  ;;  %v3969_v46 = vld [vmem:[%s6841_s7 + $0xe08] sm:$0xff]  ;;  %v4016_v47 = vld [vmem:[%s6841_s7 + $0xf80] sm:$0xff] }
0x16bc   :  { %3221 = vmatpush.msrb.mxu2 %v3982_v49  ;;  %3281 = vmatpush.msra.mxu3 %v4030_v50  ;;  %v4017_v23 = vld [vmem:[%s6841_s7 + $0xf88] sm:$0xff] }
0x16bd   :  { %3242 = vmatpush.msrb.mxu0 %v3997_v48  ;;  %3262 = vmatpush.msrb.mxu1 %v4013_v38  ;;  %v3887_v48 = vld [vmem:[%s6840_s6 + $0x18] sm:$0xff] }
0x16be   :  { %3222 = vmatpush.msrb.mxu2 %v3981_v53  ;;  %3282 = vmatpush.msra.mxu3 %v4029_v24  ;;  %v2800_v38 = vperm.slane %v3887_v48, 1  ;;  %v2801_v49 = vperm.slane %v3887_v48, 2 }
0x16bf   :  { %3243 = vmatpush.msrb.mxu0 %v3996_v51  ;;  %3263 = vmatpush.msrb.mxu1 %v4012_v52 }
0x16c0   :  { %3223 = vmatpush.msrb.mxu2 %v3980_v56  ;;  %3283 = vmatpush.msra.mxu3 %v4028_v57  ;;  %v2802_v56 = vperm.slane %v3887_v48, 3  ;;  %v2804_v57 = vperm.slane %v3887_v48, 5 }
0x16c1   :  { %3244 = vmatpush.msrb.mxu0 %v3995_v54  ;;  %3264 = vmatpush.msrb.mxu1 %v4011_v55  ;;  %v2799_v54 = vperm.slane %v3887_v48, 0 }
0x16c2   :  { %3224 = vmatpush.msrb.mxu2 %v3979_v39  ;;  %3284 = vmatpush.msra.mxu3 %v4027_v60 }
0x16c3   :  { %3245 = vmatpush.msrb.mxu0 %v3994_v58  ;;  %3265 = vmatpush.msrb.mxu1 %v4010_v59  ;;  %v2805_v59 = vperm.slane %v3887_v48, 6 }
0x16c4   :  { %3225 = vmatpush.msrb.mxu2 %v3978_v63  ;;  %3285 = vmatpush.msra.mxu3 %v4026_v45 }
0x16c5   :  { %3246 = vmatpush.msrb.mxu0 %v3993_v61  ;;  %3266 = vmatpush.msrb.mxu1 %v4009_v62 }
0x16c6   :  { %3226 = vmatpush.msrb.mxu2 %v3977_v40  ;;  %3286 = vmatpush.msra.mxu3 %v4025_v7  ;;  %v2803_v40 = vperm.slane %v3887_v48, 4 }
0x16c7   :  { %3247 = vmatpush.msrb.mxu0 %v3992_v0  ;;  %3267 = vmatpush.msrb.mxu1 %v4008_v1 }
0x16c8   :  { %3227 = vmatpush.msrb.mxu2 %v3976_v9  ;;  %3287 = vmatpush.msra.mxu3 %v4024_v17 }
0x16c9   :  { %3248 = vmatpush.msrb.mxu0 %v3991_v2  ;;  %3268 = vmatpush.msrb.mxu1 %v4007_v3 }
0x16ca   :  { %3228 = vmatpush.msrb.mxu2 %v3975_v18  ;;  %3288 = vmatpush.msra.mxu3 %v4023_v10 }
0x16cb   :  { %3249 = vmatpush.msrb.mxu0 %v3990_v4  ;;  %3269 = vmatpush.msrb.mxu1 %v4006_v6  ;;  %v2806_v6 = vperm.slane %v3887_v48, 7 }
0x16cc   :  { %3229 = vmatpush.msrb.mxu2 %v3974_v27  ;;  %3289 = vmatpush.msra.mxu3 %v4022_v33 }
0x16cd   :  { %3250 = vmatpush.msrb.mxu0 %v3989_v12  ;;  %3270 = vmatpush.msrb.mxu1 %v4005_v16 }
0x16ce   :  { %3230 = vmatpush.msrb.mxu2 %v3973_v34  ;;  %3290 = vmatpush.msra.mxu3 %v4021_v21 }
0x16cf   :  { %3251 = vmatpush.msrb.mxu0 %v3988_v14  ;;  %3271 = vmatpush.msrb.mxu1 %v4004_v26  ;;  %v3139_v14 = vperm.slane %v6239_v11, 3 }
0x16d0   :  { %3231 = vmatpush.msrb.mxu2 %v3972_v19  ;;  %3291 = vmatpush.msra.mxu3 %v4020_v29 }
0x16d1   :  { %3252 = vmatpush.msrb.mxu0 %v3987_v30  ;;  %3272 = vmatpush.msrb.mxu1 %v4003_v31 }
0x16d2   :  { %3232 = vmatpush.msrb.mxu2 %v3971_v20  ;;  %3292 = vmatpush.msra.mxu3 %v4019_v5 }
0x16d3   :  { %3253 = vmatpush.msrb.mxu0 %v3986_v35  ;;  %3273 = vmatpush.msrb.mxu1 %v4002_v32 }
0x16d4   :  { %3233 = vmatpush.msrb.mxu2 %v3970_v41  ;;  %3293 = vmatpush.msra.mxu3 %v4018_v44 }
0x16d5   :  { %3254 = vmatpush.msrb.mxu0 %v3985_v37  ;;  %3274 = vmatpush.msrb.mxu1 %v4001_v22 }
0x16d6   :  { %3234 = vmatpush.msrb.mxu2 %v3969_v46  ;;  %3294 = vmatpush.msra.mxu3 %v4017_v23 }
0x16d7   :  { %3255 = vmatpush.msrb.mxu0 %v3984_v42  ;;  %3275 = vmatpush.msrb.mxu1 %v4000_v43 }
0x16d8   :  { %3235 = vmatpush.msrb.mxu2 %v3968_v28  ;;  %3295 = vmatpush.msra.mxu3 %v4016_v47 }
0x1712   :  { %v2879_v50 = vpop.f32.mrf.mxu0 }
0x1713   :  { %v2880_v51 = vadd.f32 %v2879_v50, %v2800_v38  ;;  %v2899_v52 = vpop.f32.mrf.mxu1 }
0x1714   :  { %v2900_v53 = vadd.f32 %v2899_v52, %v2801_v49 }
0x1715   :  { %v3003_v24 = vmax.f32 %v2880_v51, 0.0 }
0x1716   :  { %v3004_v55 = vmax.f32 %v2900_v53, 0.0 }
0x1717   :  { %3176 = vmatmul.f32.vlgmr.msra.gmra.mxu0 %v3003_v24  ;;  %v3345_v24 = vld [vmem:[%s6845_s11 + $0x20] sm:$0x1] }
0x1718   :  { %3196 = vmatmul.f32.vlgmr.msra.gmra.mxu1 %v3004_v55  ;;  %v2859_v58 = vpop.f32.mrf.mxu2  ;;  %v3341_v55 = vld [vmem:[%s6845_s11] sm:$0xff] }
0x1719   :  { %v2860_v39 = vadd.f32 %v2859_v58, %v2799_v54  ;;  %v2919_v60 = vpop.f32.mrf.mxu3  ;;  %v3344_v54 = vld [vmem:[%s6845_s11 + $0x18] sm:$0xff] }
0x171a   :  { %v2920_v61 = vadd.f32 %v2919_v60, %v2802_v56  ;;  %v2959_v62 = vpop.f32.mrf.mxu0 }
0x171b   :  { %v3002_v63 = vmax.f32 %v2860_v39, 0.0  ;;  %v2960_v45 = vadd.f32 %v2959_v62, %v2804_v57  ;;  %v2979_v0 = vpop.f32.mrf.mxu1 }
0x171c   :  { %v3005_v1 = vmax.f32 %v2920_v61, 0.0  ;;  %v2980_v2 = vadd.f32 %v2979_v0, %v2805_v59 }
0x171d   :  { %v3007_v3 = vmax.f32 %v2960_v45, 0.0  ;;  %3156 = vmatmul.f32.vlgmr.msra.gmra.mxu2 %v3002_v63 }
0x171e   :  { %v3008_v4 = vmax.f32 %v2980_v2, 0.0  ;;  %3216 = vmatmul.f32.vlgmr.msrb.gmra.mxu3 %v3005_v1  ;;  %4032 = vmatpush.msk.msra.mxu2 %vm98_vm1, %v3345_v24  ;;  %v3337_v2 = vperm.slane %v6239_v11, 4 }
0x171f   :  { %3256 = vmatmul.f32.vlgmr.msrb.gmra.mxu0 %v3007_v3 }
0x1720   :  { %3276 = vmatmul.f32.vlgmr.msrb.gmra.mxu1 %v3008_v4  ;;  %v2939_v7 = vpop.f32.mrf.mxu2  ;;  %3366 = vmatpush.msra.mxu2 %v3344_v54 }
0x1721   :  { %v2940_v9 = vadd.f32 %v2939_v7, %v2803_v40  ;;  %v2999_v12 = vpop.f32.mrf.mxu3 }
0x1722   :  { %v3000_v16 = vadd.f32 %v2999_v12, %v2806_v6  ;;  %v4041_v6 = vld [vmem:[%s6845_s11 + $0x21] ss:$0 sm:$0xff] }
0x1723   :  { %v3006_v17 = vmax.f32 %v2940_v9, 0.0 }
0x1724   :  { %v3009_v18 = vmax.f32 %v3000_v16, 0.0 }
0x1725   :  { %3236 = vmatmul.f32.vlgmr.msrb.gmra.mxu2 %v3006_v17 }
0x1726   :  { %3296 = vmatmul.f32.vlgmr.msra.gmra.mxu3 %v3009_v18 }
0x1794   :  { %v3177_v26 = vpop.f32.mrf.mxu0 }
0x1795   :  { %v3197_v30 = vpop.f32.mrf.mxu1 }
0x179c   :  { %v3257_v19 = vpop.f32.mrf.mxu0 }
0x179d   :  { %v3277_v22 = vpop.f32.mrf.mxu1 }
0x17a0   :  { %v3157_v10 = vpop.f32.mrf.mxu2 }
0x17a1   :  { %v3158_v27 = vadd.f32 %v3157_v10, %v3139_v14  ;;  %v3217_v33 = vpop.f32.mrf.mxu3 }
0x17a3   :  { %v3178_v31 = vadd.f32 %v3177_v26, %v3158_v27 }
0x17a5   :  { %v3198_v34 = vadd.f32 %v3197_v30, %v3178_v31 }
0x17a7   :  { %v3218_v35 = vadd.f32 %v3217_v33, %v3198_v34 }
0x17a8   :  { %v3237_v32 = vpop.f32.mrf.mxu2 }
0x17a9   :  { %v3238_v21 = vadd.f32 %v3237_v32, %v3218_v35  ;;  %v3297_v20 = vpop.f32.mrf.mxu3 }
0x17ab   :  { %v3258_v37 = vadd.f32 %v3257_v19, %v3238_v21 }
0x17ad   :  { %v3278_v29 = vadd.f32 %v3277_v22, %v3258_v37 }
0x17af   :  { %v3298_v42 = vadd.f32 %v3297_v20, %v3278_v29 }
0x17b1   :  { %v3300_v43 = vadd.f32 %v3298_v42, %v6390_v36 }
0x17b3   :  { %v3306_v5 = vmul.f32 %v3300_v43, %v4313_v15  ;;  %v3301_v41 = vmul.f32 %v3300_v43, %v4307_v8 }
0x17b5   :  { %v3307_v44 = vsel %vm128_vm4, %v3306_v5, 0.0  ;;  %v3302_v46 = vsel %vm128_vm4, %v3301_v41, 0.0 }
0x17b6   :  { %3308 = vadd.xlane.f32.xlu0 %v3307_v44  ;;  %3303 = vadd.xlane.f32.xlu2 %v3302_v46 }
0x1829   :  { %v3309_v23 = vpop.xlane.xlu0 %3308  ;;  %v3304_v28 = vpop.xlane.xlu2 %3303 }
0x182a   :  { %v3310_v47 = vmul.f32 %v3309_v23, %v4322_v13  ;;  %v3305_v48 = vmul.f32 %v3304_v28, %v4319_v25 }
0x182c   :  { %v3311_v38 = vadd.f32 %v3310_v47, %v3305_v48 }
0x182e   :  { %v3312_v49 = vsub.f32 %v3300_v43, %v3311_v38 }
0x1830   :  { %v3313_v50 = vmul.f32 %v3312_v49, %v3312_v49 }
0x1832   :  { %v3319_v36 = vmul.f32 %v3313_v50, %v4313_v15  ;;  %v3314_v51 = vmul.f32 %v3313_v50, %v4307_v8  ;;  %v3343_v8 = vld [vmem:[%s6845_s11 + $0x10] sm:$0xff]  ;;  %v3342_v15 = vld [vmem:[%s6845_s11 + $0x8] sm:$0xff] }
0x1833   :  { %3367 = vmatpush.msra.mxu2 %v3343_v8 }
0x1834   :  { %v3320_v52 = vsel %vm128_vm4, %v3319_v36, 0.0  ;;  %v3315_v53 = vsel %vm128_vm4, %v3314_v51, 0.0 }
0x1835   :  { %3321 = vadd.xlane.f32.xlu2 %v3320_v52  ;;  %3316 = vadd.xlane.f32.xlu1 %v3315_v53 }
0x1836   :  { %3368 = vmatpush.msra.mxu2 %v3342_v15 }
0x1838   :  { %3369 = vmatpush.msra.mxu2 %v3341_v55 }
0x18a8   :  { %v3322_v56 = vpop.xlane.xlu2 %3321  ;;  %v3317_v57 = vpop.xlane.xlu1 %3316 }
0x18a9   :  { %v3323_v58 = vmul.f32 %v3322_v56, %v4322_v13  ;;  %v3318_v59 = vmul.f32 %v3317_v57, %v4319_v25  ;;  %v3339_v13 = vperm.slane %v6239_v11, 5 }
0x18ab   :  { %v3324_v39 = vadd.f32 %v3323_v58, %v3318_v59 }
0x18ad   :  { %v3325_v60 = vadd.f32 1e-05, %v3324_v39 }
0x18af   :  { %4080 = vrsqrt.f32 %v3325_v60  ;;  %vm3332_vm4 = vweird.f32 %v3325_v60 }
0x18b5   :  { %v4081_v61 = vpop.eup %4080 }
0x18b6   :  { %v3327_v62 = vmul.f32 %v4081_v61, %v3325_v60  ;;  %vm3333_vm1 = vweird.f32 %v4081_v61 }
0x18b7   :  { %vm3334_vm14 = vmor %vm3332_vm4, %vm3333_vm1 }
0x18b8   :  { %v3328_v63 = vmul.f32 %v4081_v61, %v3327_v62 }
0x18ba   :  { %v3329_v45 = vmul.f32 0.5, %v3328_v63 }
0x18bc   :  { %v3330_v0 = vsub.f32 1.5, %v3329_v45 }
0x18be   :  { %v3331_v1 = vmul.f32 %v4081_v61, %v3330_v0 }
0x18c0   :  { %v3335_v3 = vsel %vm3334_vm14, %v4081_v61, %v3331_v1 }
0x18c1   :  { %v3336_v40 = vmul.f32 %v3335_v3, %v3312_v49 }
0x18c3   :  { %v3338_v4 = vmul.f32 %v3337_v2, %v3336_v40 }
0x18c5   :  { %v3340_v25 = vadd.f32 %v3339_v13, %v3338_v4 }
0x18c7   :  { %4033 = vmatmul.msk.f32.vlgmr.msra.gmra.mxu2 %vm94_vm3, %v3340_v25 }
0x194a   :  { %v3371_v7 = vpop.f32.mrf.mxu2 }
0x194b   :  { %v3372_v9 = vadd.f32 %v4041_v6, %v3371_v7 }
0x194d   :  { %3374 = vst [vmem:[#allocation4] sm:$0x3] %v3372_v9 }
0x194e   :  { %3385 = dma.vmem_to_hbm [thread:$0]  %s3381_s8, 32, %s3383_s10, [#allocation5]  }
0x194f   :  { %4118 = dma.done.wait [#allocation5], 32  }
0x1950   :  { %4119 = vsyncadd [#allocation5], 4294967264 }
0x1951   :  { %3390 = vsyncpa [#allocation5], 1 }

</bundles_post_ra>
